<compile_context>
chip_gen: v6e
topology: v6e:2x2x1
jax: 0.10.0
libtpu: 0.0.40
codegen_flags: <defaults>
</compile_context>

<pallas_src>
import jax
import jax.numpy as jnp
from jax import lax
from jax.experimental import pallas as pl
from jax.experimental.pallas import tpu as pltpu

FOCAL_GAMMA = 2.0   # exactly 2 -> explicit square, no pow/exp-log
FOCAL_ALPHA = 0.25  # folded into alpha_w = 0.75 - 0.5*t
DICE_BETA = 0.7
SMOOTH = 1e-6


# ---------------------------------------------------------------------------
# kernel factory (static tile shape baked in)
# ---------------------------------------------------------------------------
def _make_kernel(tb, H, W):
    beta2 = DICE_BETA * DICE_BETA
    TBH = tb * H

    def kernel(pred_ref, target_ref, out_ref):
        x3 = jnp.clip(pred_ref[...].astype(jnp.float32), -10.0, 10.0)
        t3 = target_ref[...].astype(jnp.float32)

        # shared transcendentals: one exp(-|x|) drives softplus + sigmoid
        e = jnp.exp(-jnp.abs(x3))                           # EUP
        softplus = jnp.log1p(e)                             # EUP
        inv1pe = pl.reciprocal(1.0 + e, approx=True)        # EUP, not VALU divide
        p_raw = jnp.where(x3 >= 0.0, inv1pe, e * inv1pe)    # stable sigmoid(x)

        # ---------------- focal ----------------
        # BCEWithLogits (stable): max(x,0) - x*t + log1p(exp(-|x|))  (>= 0)
        bce = jnp.maximum(x3, 0.0) - x3 * t3 + softplus
        bce = jnp.minimum(bce, 10.0)            # reference clip(-10,10); bce >= 0
        # pt = exp(-bce) == p^t (1-p)^(1-t) for binary targets -> no second exp
        pt = jnp.clip((1.0 - p_raw) + t3 * (2.0 * p_raw - 1.0), 1e-7, 1.0)
        one_m_pt = 1.0 - pt
        alpha_w = 0.75 - 0.5 * t3               # t*0.25 + (1-t)*0.75
        focal_sum = jnp.sum(one_m_pt * one_m_pt * alpha_w * bce)

        # ---------------- dice (per image) ----------------
        p3 = jnp.clip(p_raw, SMOOTH, 1.0 - SMOOTH)

        def img_sum(z):                         # (tb,H,W) -> (tb,1,1)
            return jnp.sum(jnp.sum(z, axis=2, keepdims=True),
                           axis=1, keepdims=True)

        tp = img_sum(p3 * t3)
        sum_p = img_sum(p3)
        sum_t = img_sum(t3)
        tp_s = tp + SMOOTH
        fp_s = (sum_p - tp) + SMOOTH            # == sum(p*(1-t)) + smooth
        fn_s = (sum_t - tp) + SMOOTH            # == sum((1-p)*t) + smooth
        dice_sum = jnp.sum(((1.0 + beta2) * tp_s)
                           / ((1.0 + beta2) * tp_s + beta2 * fn_s + fp_s))

        # ---------------- edge (2-D rolls on the (tb*H, W) view) ----------------
        p2 = p3.reshape(TBH, W)                 # free relabel (H%8==0) / squeeze (tb==1)
        t2 = t3.reshape(TBH, W)
        # lane mask (1,W) + per-image row mask (TBH,1); the row mask also kills
        # the rows that would mix adjacent images under the combined-row roll.
        col = lax.broadcasted_iota(jnp.int32, (1, W), 1)
        rim = lax.broadcasted_iota(jnp.int32, (tb, H, 1), 1).reshape(TBH, 1)
        not_last_col = col < (W - 1)
        not_first_col = col > 0
        not_last_row = rim < (H - 1)
        not_first_row = rim > 0

        def edge_sq(z):
            # conv2d [-1,0,1], pad (0,1): z[w+1]-z[w-1];  [-1;0;1], pad (1,0): z[h+1]-z[h-1]
            ex = (jnp.where(not_last_col, pltpu.roll(z, W - 1, 1), 0.0)
                  - jnp.where(not_first_col, pltpu.roll(z, 1, 1), 0.0))
            ey = (jnp.where(not_last_row, pltpu.roll(z, TBH - 1, 0), 0.0)
                  - jnp.where(not_first_row, pltpu.roll(z, 1, 0), 0.0))
            return ex * ex + ey * ey + SMOOTH

        a = edge_sq(p2)
        b = edge_sq(t2)
        # (sqrt(a) - sqrt(b))^2 = a + b - 2*sqrt(a*b)  -> one sqrt per element
        edge_sum = jnp.sum(a + b - 2.0 * jnp.sqrt(a * b))

        # lane-dense partial-sum tile: [focal, dice, edge] live in lanes 0..2
        lane = lax.broadcasted_iota(jnp.int32, (1, 8, 128), 2)
        out_ref[...] = (jnp.where(lane == 0, focal_sum, 0.0)
                        + jnp.where(lane == 1, dice_sum, 0.0)
                        + jnp.where(lane == 2, edge_sum, 0.0))

    return kernel


# ---------------------------------------------------------------------------
# wrapper
# ---------------------------------------------------------------------------
def _pick_tb(n_imgs, h, w, itemsize, target_bytes=1 << 20):
    """Largest divisor of n_imgs whose (tb,H,W) block is <= ~1 MiB per input."""
    if h % 8 != 0:
        return 1   # keep the in-kernel (tb,H,W)->(tb*H,W) reshape a pure squeeze
    cap = max(1, target_bytes // (h * w * itemsize))
    tb = 1
    for d in range(1, n_imgs + 1):
        if n_imgs % d == 0 and d <= cap:
            tb = d
    return tb


def deforestation_loss(pred, target):
    B, C, H, W = pred.shape
    assert C == 1, "edge conv in the reference module requires a single channel"
    N = B * C

    # pred keeps the model's dtype on the HBM wire; bf16 target is exact for
    # {0,1} masks and halves its HBM + pipeline-buffer bytes.
    p3 = pred.reshape(N, H, W)
    t3 = target.reshape(N, H, W).astype(jnp.bfloat16)

    tb = _pick_tb(N, H, W, jnp.dtype(p3.dtype).itemsize)
    num_blocks = N // tb

    try:   # size the scoped VMEM against the chip (v5e/v6e: 128 MiB, v7x: 64 MiB)
        vmem_cap = int(pltpu.get_tpu_info().vmem_capacity_bytes)
    except Exception:
        vmem_cap = 64 << 20
    vmem_limit = int(min(vmem_cap * 3 // 4, 100 << 20))

    partials = pl.pallas_call(
        _make_kernel(tb, H, W),
        out_shape=jax.ShapeDtypeStruct((num_blocks, 8, 128), jnp.float32),
        grid=(num_blocks,),
        in_specs=[
            pl.BlockSpec((tb, H, W), lambda b: (b, 0, 0)),
            pl.BlockSpec((tb, H, W), lambda b: (b, 0, 0)),
        ],
        out_specs=pl.BlockSpec((1, 8, 128), lambda b: (b, 0, 0)),
        compiler_params=pltpu.CompilerParams(
            # each grid step owns its own output tile and there is no shared
            # scratch -> steps are independent, megacore-shardable on v7x.
            dimension_semantics=("parallel",),
            vmem_limit_bytes=vmem_limit),
    )(p3, t3)

    inv_elems = 1.0 / float(N * H * W)
    inv_imgs = 1.0 / float(N)
    focal = jnp.sum(partials[:, 0, 0]) * inv_elems
    dice = 1.0 - jnp.sum(partials[:, 0, 1]) * inv_imgs
    edge = jnp.sum(partials[:, 0, 2]) * inv_elems
    return jnp.clip(0.5 * focal + 0.4 * dice + 0.1 * edge, 0.0, 10.0)


# ---------------------------------------------------------------------------
# pure-JAX reference (faithful to the PyTorch module, for correctness check)
# ---------------------------------------------------------------------------
def reference_loss(pred, target):
    x = jnp.clip(pred.astype(jnp.float32), -10.0, 10.0)
    t = target.astype(jnp.float32)
    bce = jnp.maximum(x, 0.0) - x * t + jnp.log1p(jnp.exp(-jnp.abs(x)))
    bce = jnp.clip(bce, -10.0, 10.0)
    pt = jnp.clip(jnp.exp(-bce), 1e-7, 1.0)
    focal = jnp.mean(((1.0 - pt) ** FOCAL_GAMMA)
                     * (t * FOCAL_ALPHA + (1.0 - t) * (1.0 - FOCAL_ALPHA)) * bce)

    p = jnp.clip(jax.nn.sigmoid(x), SMOOTH, 1.0 - SMOOTH)
    tp = jnp.sum(p * t, axis=(2, 3)) + SMOOTH
    fp = jnp.sum(p * (1.0 - t), axis=(2, 3)) + SMOOTH
    fn = jnp.sum((1.0 - p) * t, axis=(2, 3)) + SMOOTH
    beta2 = DICE_BETA * DICE_BETA
    dice = 1.0 - jnp.mean(((1.0 + beta2) * tp)
                          / ((1.0 + beta2) * tp + beta2 * fn + fp))

    def edges(z):
        zp = jnp.pad(z, ((0, 0), (0, 0), (1, 1), (1, 1)))
        ex = zp[:, :, 1:-1, 2:] - zp[:, :, 1:-1, :-2]
        ey = zp[:, :, 2:, 1:-1] - zp[:, :, :-2, 1:-1]
        return jnp.sqrt(ex * ex + ey * ey + SMOOTH)

    edge = jnp.mean((edges(p) - edges(t)) ** 2)
    return jnp.clip(0.5 * focal + 0.4 * dice + 0.1 * edge, 0.0, 10.0)


if __name__ == "__main__":
    key = jax.random.PRNGKey(0)
    k1, k2 = jax.random.split(key)
    # C must be 1 (single-channel edge conv); W a multiple of 128 and H of 8
    # keeps the lane/sublane axes dense.
    B, C, H, W = 4, 1, 64, 128
    pred = 3.0 * jax.random.normal(k1, (B, C, H, W), dtype=jnp.float32)
    target = jax.random.bernoulli(k2, 0.3, (B, C, H, W)).astype(jnp.float32)

    loss = jax.block_until_ready(deforestation_loss(pred, target))
    ref = jax.block_until_ready(reference_loss(pred, target))
    assert jnp.isfinite(loss), "kernel produced non-finite loss"
    # tolerance covers the approx-reciprocal sigmoid (~2^-12 relative on p)
    assert abs(float(loss) - float(ref)) < 2e-3, (float(loss), float(ref))
    print("KERNEL_OK")
</pallas_src>

<mosaic_0001>
module attributes {stable_mosaic.version = 11 : i64} {
  func.func @kernel(%arg0: i32, %arg1: memref<4x64x128xf32, #tpu.memory_space<vmem>>, %arg2: memref<4x64x128xbf16, #tpu.memory_space<vmem>>, %arg3: memref<1x8x128xf32, #tpu.memory_space<vmem>>) attributes {dimension_semantics = [#tpu.dimension_semantics<parallel>], iteration_bounds = array<i64: 1>, scalar_prefetch = 0 : i64, scratch_operands = 0 : i64, tpu.core_type = #tpu.core_type<tc>, window_params = [{transform_indices = @transform_0, window_bounds = array<i64: 4, 64, 128>}, {transform_indices = @transform_1, window_bounds = array<i64: 4, 64, 128>}, {transform_indices = @transform_2, window_bounds = array<i64: 1, 8, 128>}]} {
    %c0 = arith.constant 0 : index
    %c0_0 = arith.constant 0 : index
    %c0_1 = arith.constant 0 : index
    %0 = vector.load %arg1[%c0, %c0_0, %c0_1] : memref<4x64x128xf32, #tpu.memory_space<vmem>>, vector<4x64x128xf32>
    %cst = arith.constant -1.000000e+01 : f32
    %cst_2 = arith.constant 1.000000e+01 : f32
    %1 = vector.broadcast %cst : f32 to vector<4x64x128xf32>
    %2 = arith.maximumf %1, %0 : vector<4x64x128xf32>
    %3 = vector.broadcast %cst_2 : f32 to vector<4x64x128xf32>
    %4 = arith.minimumf %3, %2 : vector<4x64x128xf32>
    %c0_3 = arith.constant 0 : index
    %c0_4 = arith.constant 0 : index
    %c0_5 = arith.constant 0 : index
    %5 = vector.load %arg2[%c0_3, %c0_4, %c0_5] : memref<4x64x128xbf16, #tpu.memory_space<vmem>>, vector<4x64x128xbf16>
    %6 = arith.extf %5 : vector<4x64x128xbf16> to vector<4x64x128xf32>
    %7 = math.absf %4 : vector<4x64x128xf32>
    %cst_6 = arith.constant 0.000000e+00 : f32
    %8 = vector.broadcast %cst_6 : f32 to vector<4x64x128xf32>
    %9 = arith.subf %8, %7 : vector<4x64x128xf32>
    %10 = math.exp %9 : vector<4x64x128xf32>
    %11 = math.log1p %10 : vector<4x64x128xf32>
    %cst_7 = arith.constant 1.000000e+00 : f32
    %12 = vector.broadcast %cst_7 : f32 to vector<4x64x128xf32>
    %13 = arith.addf %12, %10 : vector<4x64x128xf32>
    %14 = tpu.reciprocal %13 {approx = true} : vector<4x64x128xf32> -> vector<4x64x128xf32>
    %cst_8 = arith.constant 0.000000e+00 : f32
    %15 = vector.broadcast %cst_8 : f32 to vector<4x64x128xf32>
    %16 = arith.cmpf oge, %4, %15 : vector<4x64x128xf32>
    %17 = arith.mulf %10, %14 : vector<4x64x128xf32>
    %18 = arith.select %16, %14, %17 : vector<4x64x128xi1>, vector<4x64x128xf32>
    %cst_9 = arith.constant 0.000000e+00 : f32
    %19 = vector.broadcast %cst_9 : f32 to vector<4x64x128xf32>
    %20 = arith.maximumf %4, %19 : vector<4x64x128xf32>
    %21 = arith.mulf %4, %6 : vector<4x64x128xf32>
    %22 = arith.subf %20, %21 : vector<4x64x128xf32>
    %23 = arith.addf %22, %11 : vector<4x64x128xf32>
    %cst_10 = arith.constant 1.000000e+01 : f32
    %24 = vector.broadcast %cst_10 : f32 to vector<4x64x128xf32>
    %25 = arith.minimumf %23, %24 : vector<4x64x128xf32>
    %cst_11 = arith.constant 1.000000e+00 : f32
    %26 = vector.broadcast %cst_11 : f32 to vector<4x64x128xf32>
    %27 = arith.subf %26, %18 : vector<4x64x128xf32>
    %cst_12 = arith.constant 2.000000e+00 : f32
    %28 = vector.broadcast %cst_12 : f32 to vector<4x64x128xf32>
    %29 = arith.mulf %28, %18 : vector<4x64x128xf32>
    %cst_13 = arith.constant 1.000000e+00 : f32
    %30 = vector.broadcast %cst_13 : f32 to vector<4x64x128xf32>
    %31 = arith.subf %29, %30 : vector<4x64x128xf32>
    %32 = arith.mulf %6, %31 : vector<4x64x128xf32>
    %33 = arith.addf %27, %32 : vector<4x64x128xf32>
    %cst_14 = arith.constant 1.000000e-07 : f32
    %cst_15 = arith.constant 1.000000e+00 : f32
    %34 = vector.broadcast %cst_14 : f32 to vector<4x64x128xf32>
    %35 = arith.maximumf %34, %33 : vector<4x64x128xf32>
    %36 = vector.broadcast %cst_15 : f32 to vector<4x64x128xf32>
    %37 = arith.minimumf %36, %35 : vector<4x64x128xf32>
    %cst_16 = arith.constant 1.000000e+00 : f32
    %38 = vector.broadcast %cst_16 : f32 to vector<4x64x128xf32>
    %39 = arith.subf %38, %37 : vector<4x64x128xf32>
    %cst_17 = arith.constant 5.000000e-01 : f32
    %40 = vector.broadcast %cst_17 : f32 to vector<4x64x128xf32>
    %41 = arith.mulf %40, %6 : vector<4x64x128xf32>
    %cst_18 = arith.constant 7.500000e-01 : f32
    %42 = vector.broadcast %cst_18 : f32 to vector<4x64x128xf32>
    %43 = arith.subf %42, %41 : vector<4x64x128xf32>
    %44 = arith.mulf %39, %39 : vector<4x64x128xf32>
    %45 = arith.mulf %44, %43 : vector<4x64x128xf32>
    %46 = arith.mulf %45, %25 : vector<4x64x128xf32>
    %47 = vector.shape_cast %46 : vector<4x64x128xf32> to vector<1x4x64x128xf32>
    %cst_19 = arith.constant dense<0.000000e+00> : vector<1xf32>
    %48 = vector.multi_reduction <add>, %47, %cst_19 [1, 2, 3] : vector<1x4x64x128xf32> to vector<1xf32>
    %49 = vector.shape_cast %48 : vector<1xf32> to vector<1x1x1x1xf32>
    %50 = vector.extract %49[0, 0, 0, 0] : f32 from vector<1x1x1x1xf32>
    %cst_20 = arith.constant 9.99999997E-7 : f32
    %cst_21 = arith.constant 0.999998986 : f32
    %51 = vector.broadcast %cst_20 : f32 to vector<4x64x128xf32>
    %52 = arith.maximumf %51, %18 : vector<4x64x128xf32>
    %53 = vector.broadcast %cst_21 : f32 to vector<4x64x128xf32>
    %54 = arith.minimumf %53, %52 : vector<4x64x128xf32>
    %55 = arith.mulf %54, %6 : vector<4x64x128xf32>
    %cst_22 = arith.constant dense<0.000000e+00> : vector<4x64xf32>
    %56 = vector.multi_reduction <add>, %55, %cst_22 [2] : vector<4x64x128xf32> to vector<4x64xf32>
    %57 = vector.shape_cast %56 : vector<4x64xf32> to vector<4x64x1xf32>
    %cst_23 = arith.constant dense<0.000000e+00> : vector<4x1xf32>
    %58 = vector.multi_reduction <add>, %57, %cst_23 [1] : vector<4x64x1xf32> to vector<4x1xf32>
    %59 = vector.shape_cast %58 : vector<4x1xf32> to vector<4x1x1xf32>
    %cst_24 = arith.constant dense<0.000000e+00> : vector<4x64xf32>
    %60 = vector.multi_reduction <add>, %54, %cst_24 [2] : vector<4x64x128xf32> to vector<4x64xf32>
    %61 = vector.shape_cast %60 : vector<4x64xf32> to vector<4x64x1xf32>
    %cst_25 = arith.constant dense<0.000000e+00> : vector<4x1xf32>
    %62 = vector.multi_reduction <add>, %61, %cst_25 [1] : vector<4x64x1xf32> to vector<4x1xf32>
    %63 = vector.shape_cast %62 : vector<4x1xf32> to vector<4x1x1xf32>
    %cst_26 = arith.constant dense<0.000000e+00> : vector<4x64xf32>
    %64 = vector.multi_reduction <add>, %6, %cst_26 [2] : vector<4x64x128xf32> to vector<4x64xf32>
    %65 = vector.shape_cast %64 : vector<4x64xf32> to vector<4x64x1xf32>
    %cst_27 = arith.constant dense<0.000000e+00> : vector<4x1xf32>
    %66 = vector.multi_reduction <add>, %65, %cst_27 [1] : vector<4x64x1xf32> to vector<4x1xf32>
    %67 = vector.shape_cast %66 : vector<4x1xf32> to vector<4x1x1xf32>
    %cst_28 = arith.constant 9.99999997E-7 : f32
    %68 = vector.broadcast %cst_28 : f32 to vector<4x1x1xf32>
    %69 = arith.addf %59, %68 : vector<4x1x1xf32>
    %70 = arith.subf %63, %59 : vector<4x1x1xf32>
    %cst_29 = arith.constant 9.99999997E-7 : f32
    %71 = vector.broadcast %cst_29 : f32 to vector<4x1x1xf32>
    %72 = arith.addf %70, %71 : vector<4x1x1xf32>
    %73 = arith.subf %67, %59 : vector<4x1x1xf32>
    %cst_30 = arith.constant 9.99999997E-7 : f32
    %74 = vector.broadcast %cst_30 : f32 to vector<4x1x1xf32>
    %75 = arith.addf %73, %74 : vector<4x1x1xf32>
    %cst_31 = arith.constant 1.490000e+00 : f32
    %76 = vector.broadcast %cst_31 : f32 to vector<4x1x1xf32>
    %77 = arith.mulf %76, %69 : vector<4x1x1xf32>
    %cst_32 = arith.constant 1.490000e+00 : f32
    %78 = vector.broadcast %cst_32 : f32 to vector<4x1x1xf32>
    %79 = arith.mulf %78, %69 : vector<4x1x1xf32>
    %cst_33 = arith.constant 4.900000e-01 : f32
    %80 = vector.broadcast %cst_33 : f32 to vector<4x1x1xf32>
    %81 = arith.mulf %80, %75 : vector<4x1x1xf32>
    %82 = arith.addf %79, %81 : vector<4x1x1xf32>
    %83 = arith.addf %82, %72 : vector<4x1x1xf32>
    %84 = arith.divf %77, %83 : vector<4x1x1xf32>
    %85 = vector.shape_cast %84 : vector<4x1x1xf32> to vector<1x4x1x1xf32>
    %cst_34 = arith.constant dense<0.000000e+00> : vector<1xf32>
    %86 = vector.multi_reduction <add>, %85, %cst_34 [1, 2, 3] : vector<1x4x1x1xf32> to vector<1xf32>
    %87 = vector.shape_cast %86 : vector<1xf32> to vector<1x1x1x1xf32>
    %88 = vector.extract %87[0, 0, 0, 0] : f32 from vector<1x1x1x1xf32>
    %89 = vector.shape_cast %54 : vector<4x64x128xf32> to vector<256x128xf32>
    %90 = vector.shape_cast %6 : vector<4x64x128xf32> to vector<256x128xf32>
    %91 = tpu.iota {dimensions = array<i32: 1>} : vector<1x128xi32>
    %92 = tpu.iota {dimensions = array<i32: 1>} : vector<4x64x1xi32>
    %93 = vector.shape_cast %92 : vector<4x64x1xi32> to vector<256x1xi32>
    %c127_i32 = arith.constant 127 : i32
    %94 = vector.broadcast %c127_i32 : i32 to vector<1x128xi32>
    %95 = arith.cmpi slt, %91, %94 : vector<1x128xi32>
    %c0_i32 = arith.constant 0 : i32
    %96 = vector.broadcast %c0_i32 : i32 to vector<1x128xi32>
    %97 = arith.cmpi sgt, %91, %96 : vector<1x128xi32>
    %c63_i32 = arith.constant 63 : i32
    %98 = vector.broadcast %c63_i32 : i32 to vector<256x1xi32>
    %99 = arith.cmpi slt, %93, %98 : vector<256x1xi32>
    %c0_i32_35 = arith.constant 0 : i32
    %100 = vector.broadcast %c0_i32_35 : i32 to vector<256x1xi32>
    %101 = arith.cmpi sgt, %93, %100 : vector<256x1xi32>
    %c127_i32_36 = arith.constant 127 : i32
    %102 = tpu.dynamic_rotate %89 by %c127_i32_36 dim 1 : vector<256x128xf32>, i32 -> vector<256x128xf32>
    %cst_37 = arith.constant 0.000000e+00 : f32
    %103 = vector.shape_cast %95 : vector<1x128xi1> to vector<1x128xi1>
    %104 = vector.broadcast %103 : vector<1x128xi1> to vector<256x128xi1>
    %105 = vector.broadcast %cst_37 : f32 to vector<256x128xf32>
    %106 = arith.select %104, %102, %105 : vector<256x128xi1>, vector<256x128xf32>
    %c1_i32 = arith.constant 1 : i32
    %107 = tpu.dynamic_rotate %89 by %c1_i32 dim 1 : vector<256x128xf32>, i32 -> vector<256x128xf32>
    %cst_38 = arith.constant 0.000000e+00 : f32
    %108 = vector.shape_cast %97 : vector<1x128xi1> to vector<1x128xi1>
    %109 = vector.broadcast %108 : vector<1x128xi1> to vector<256x128xi1>
    %110 = vector.broadcast %cst_38 : f32 to vector<256x128xf32>
    %111 = arith.select %109, %107, %110 : vector<256x128xi1>, vector<256x128xf32>
    %112 = arith.subf %106, %111 : vector<256x128xf32>
    %c255_i32 = arith.constant 255 : i32
    %113 = tpu.dynamic_rotate %89 by %c255_i32 dim 0 : vector<256x128xf32>, i32 -> vector<256x128xf32>
    %cst_39 = arith.constant 0.000000e+00 : f32
    %114 = vector.shape_cast %99 : vector<256x1xi1> to vector<256x1xi1>
    %115 = vector.broadcast %114 : vector<256x1xi1> to vector<256x128xi1>
    %116 = vector.broadcast %cst_39 : f32 to vector<256x128xf32>
    %117 = arith.select %115, %113, %116 : vector<256x128xi1>, vector<256x128xf32>
    %c1_i32_40 = arith.constant 1 : i32
    %118 = tpu.dynamic_rotate %89 by %c1_i32_40 dim 0 : vector<256x128xf32>, i32 -> vector<256x128xf32>
    %cst_41 = arith.constant 0.000000e+00 : f32
    %119 = vector.shape_cast %101 : vector<256x1xi1> to vector<256x1xi1>
    %120 = vector.broadcast %119 : vector<256x1xi1> to vector<256x128xi1>
    %121 = vector.broadcast %cst_41 : f32 to vector<256x128xf32>
    %122 = arith.select %120, %118, %121 : vector<256x128xi1>, vector<256x128xf32>
    %123 = arith.subf %117, %122 : vector<256x128xf32>
    %124 = arith.mulf %112, %112 : vector<256x128xf32>
    %125 = arith.mulf %123, %123 : vector<256x128xf32>
    %126 = arith.addf %124, %125 : vector<256x128xf32>
    %cst_42 = arith.constant 9.99999997E-7 : f32
    %127 = vector.broadcast %cst_42 : f32 to vector<256x128xf32>
    %128 = arith.addf %126, %127 : vector<256x128xf32>
    %c127_i32_43 = arith.constant 127 : i32
    %129 = tpu.dynamic_rotate %90 by %c127_i32_43 dim 1 : vector<256x128xf32>, i32 -> vector<256x128xf32>
    %cst_44 = arith.constant 0.000000e+00 : f32
    %130 = vector.shape_cast %95 : vector<1x128xi1> to vector<1x128xi1>
    %131 = vector.broadcast %130 : vector<1x128xi1> to vector<256x128xi1>
    %132 = vector.broadcast %cst_44 : f32 to vector<256x128xf32>
    %133 = arith.select %131, %129, %132 : vector<256x128xi1>, vector<256x128xf32>
    %c1_i32_45 = arith.constant 1 : i32
    %134 = tpu.dynamic_rotate %90 by %c1_i32_45 dim 1 : vector<256x128xf32>, i32 -> vector<256x128xf32>
    %cst_46 = arith.constant 0.000000e+00 : f32
    %135 = vector.shape_cast %97 : vector<1x128xi1> to vector<1x128xi1>
    %136 = vector.broadcast %135 : vector<1x128xi1> to vector<256x128xi1>
    %137 = vector.broadcast %cst_46 : f32 to vector<256x128xf32>
    %138 = arith.select %136, %134, %137 : vector<256x128xi1>, vector<256x128xf32>
    %139 = arith.subf %133, %138 : vector<256x128xf32>
    %c255_i32_47 = arith.constant 255 : i32
    %140 = tpu.dynamic_rotate %90 by %c255_i32_47 dim 0 : vector<256x128xf32>, i32 -> vector<256x128xf32>
    %cst_48 = arith.constant 0.000000e+00 : f32
    %141 = vector.shape_cast %99 : vector<256x1xi1> to vector<256x1xi1>
    %142 = vector.broadcast %141 : vector<256x1xi1> to vector<256x128xi1>
    %143 = vector.broadcast %cst_48 : f32 to vector<256x128xf32>
    %144 = arith.select %142, %140, %143 : vector<256x128xi1>, vector<256x128xf32>
    %c1_i32_49 = arith.constant 1 : i32
    %145 = tpu.dynamic_rotate %90 by %c1_i32_49 dim 0 : vector<256x128xf32>, i32 -> vector<256x128xf32>
    %cst_50 = arith.constant 0.000000e+00 : f32
    %146 = vector.shape_cast %101 : vector<256x1xi1> to vector<256x1xi1>
    %147 = vector.broadcast %146 : vector<256x1xi1> to vector<256x128xi1>
    %148 = vector.broadcast %cst_50 : f32 to vector<256x128xf32>
    %149 = arith.select %147, %145, %148 : vector<256x128xi1>, vector<256x128xf32>
    %150 = arith.subf %144, %149 : vector<256x128xf32>
    %151 = arith.mulf %139, %139 : vector<256x128xf32>
    %152 = arith.mulf %150, %150 : vector<256x128xf32>
    %153 = arith.addf %151, %152 : vector<256x128xf32>
    %cst_51 = arith.constant 9.99999997E-7 : f32
    %154 = vector.broadcast %cst_51 : f32 to vector<256x128xf32>
    %155 = arith.addf %153, %154 : vector<256x128xf32>
    %156 = arith.addf %128, %155 : vector<256x128xf32>
    %157 = arith.mulf %128, %155 : vector<256x128xf32>
    %158 = math.sqrt %157 : vector<256x128xf32>
    %cst_52 = arith.constant 2.000000e+00 : f32
    %159 = vector.broadcast %cst_52 : f32 to vector<256x128xf32>
    %160 = arith.mulf %159, %158 : vector<256x128xf32>
    %161 = arith.subf %156, %160 : vector<256x128xf32>
    %162 = vector.shape_cast %161 : vector<256x128xf32> to vector<1x256x128xf32>
    %cst_53 = arith.constant dense<0.000000e+00> : vector<1xf32>
    %163 = vector.multi_reduction <add>, %162, %cst_53 [1, 2] : vector<1x256x128xf32> to vector<1xf32>
    %164 = vector.shape_cast %163 : vector<1xf32> to vector<1x1x1xf32>
    %165 = vector.extract %164[0, 0, 0] : f32 from vector<1x1x1xf32>
    %166 = tpu.iota {dimensions = array<i32: 2>} : vector<1x8x128xi32>
    %c0_i32_54 = arith.constant 0 : i32
    %167 = vector.broadcast %c0_i32_54 : i32 to vector<1x8x128xi32>
    %168 = arith.cmpi eq, %166, %167 : vector<1x8x128xi32>
    %cst_55 = arith.constant 0.000000e+00 : f32
    %169 = vector.broadcast %50 : f32 to vector<1x8x128xf32>
    %170 = vector.broadcast %cst_55 : f32 to vector<1x8x128xf32>
    %171 = arith.select %168, %169, %170 : vector<1x8x128xi1>, vector<1x8x128xf32>
    %c1_i32_56 = arith.constant 1 : i32
    %172 = vector.broadcast %c1_i32_56 : i32 to vector<1x8x128xi32>
    %173 = arith.cmpi eq, %166, %172 : vector<1x8x128xi32>
    %cst_57 = arith.constant 0.000000e+00 : f32
    %174 = vector.broadcast %88 : f32 to vector<1x8x128xf32>
    %175 = vector.broadcast %cst_57 : f32 to vector<1x8x128xf32>
    %176 = arith.select %173, %174, %175 : vector<1x8x128xi1>, vector<1x8x128xf32>
    %177 = arith.addf %171, %176 : vector<1x8x128xf32>
    %c2_i32 = arith.constant 2 : i32
    %178 = vector.broadcast %c2_i32 : i32 to vector<1x8x128xi32>
    %179 = arith.cmpi eq, %166, %178 : vector<1x8x128xi32>
    %cst_58 = arith.constant 0.000000e+00 : f32
    %180 = vector.broadcast %165 : f32 to vector<1x8x128xf32>
    %181 = vector.broadcast %cst_58 : f32 to vector<1x8x128xf32>
    %182 = arith.select %179, %180, %181 : vector<1x8x128xi1>, vector<1x8x128xf32>
    %183 = arith.addf %177, %182 : vector<1x8x128xf32>
    %c0_59 = arith.constant 0 : index
    %c0_60 = arith.constant 0 : index
    %c0_61 = arith.constant 0 : index
    %184 = vector.load %arg3[%c0_59, %c0_60, %c0_61] : memref<1x8x128xf32, #tpu.memory_space<vmem>>, vector<1x8x128xf32>
    tpu.vector_store %arg3[%c0_59, %c0_60, %c0_61], %183 {strides = array<i32>} : memref<1x8x128xf32, #tpu.memory_space<vmem>>, vector<1x8x128xf32>,
    return
  }
  func.func @transform_0(%arg0: i32) -> (i32, i32, i32) {
    %c0_i32 = arith.constant 0 : i32
    %c0_i32_0 = arith.constant 0 : i32
    %c0_i32_1 = arith.constant 0 : i32
    return %arg0, %c0_i32, %c0_i32_0 : i32, i32, i32
  }
  func.func @transform_1(%arg0: i32) -> (i32, i32, i32) {
    %c0_i32 = arith.constant 0 : i32
    %c0_i32_0 = arith.constant 0 : i32
    %c0_i32_1 = arith.constant 0 : i32
    return %arg0, %c0_i32, %c0_i32_0 : i32, i32, i32
  }
  func.func @transform_2(%arg0: i32) -> (i32, i32, i32) {
    %c0_i32 = arith.constant 0 : i32
    %c0_i32_0 = arith.constant 0 : i32
    %c0_i32_1 = arith.constant 0 : i32
    return %arg0, %c0_i32, %c0_i32_0 : i32, i32, i32
  }
}

</mosaic_0001>

<bundles_post_ra>
// kernel: tpu_custom_call.1
= control target key start
LH: loop header
LB: loop body
LE: loop exit
PB: predicated region body
PF: predicated region fallthrough
CT: control target
= control target key end

     0   :  { %7 = vsyncpa [#allocation3], 0  ;;  %s7981_s0 = inlined_call_operand.hbm [shape: f32[4,64,128], index: 0, kind: input, shape index: {}]   ;;  %s7982_s1 = inlined_call_operand.hbm [shape: bf16[4,64,128], index: 1, kind: input, shape index: {}]   ;;  %s7983_s2 = inlined_call_operand.hbm [shape: f32[1,8,128], index: 2, kind: output, shape index: {}]  }
   0x1   :  { %8 = vsyncpa [#allocation6], 0 }
   0x2   :  { %9 = vsyncpa [#allocation4], 0  ;;  %s4179_s9 = smov [#allocation2]  }
   0x3   :  { %s15_s10 = sshll.u32 %s4179_s9, 4  ;;  %s16_s10 = int_to_ptr.vmem [resolvable:$true] %s15_s10 }
   0x4   :  { %s4121_s11 = scalar_lea.vmem %s16_s10, 4096  ;;  %p4126_p1 = scmp.lt.s32.totalorder %s16_s10, %s16_s10 }
   0x5   :  { %p4122_p0 = scmp.ne.s32.totalorder %s16_s10, %s4121_s11  ;;  %p4127_p2 = scmp.lt.s32.totalorder %s4121_s11, %s4121_s11 }
   0x7   :  { %p4128_p3 = por %p4127_p2, %p4126_p1 }
   0x9   :  { %p4129_p4 = pnand %p4128_p3, %p4122_p0 }
   0xb   :  { %4132 = shalt.err (!%p4129_p4)
}
   0xc   :  { %s4180_s12 = smov 128   ;;  %s4181_s13 = smov 8  }
   0xd   :  { %21 = dma.hbm_to_vmem [thread:$0]  %s7981_s0, 4096, %s16_s10, [#allocation3], %s4180_s12, %s4180_s12, %s4181_s13  }
   0xe   :  { %s4182_s16 = smov [#allocation5]  }
   0xf   :  { %s27_s17 = sshll.u32 %s4182_s16, 4  ;;  %s28_s17 = int_to_ptr.vmem [resolvable:$true] %s27_s17 }
  0x10   :  { %s4141_s18 = scalar_lea.vmem %s28_s17, 2048  ;;  %p4146_p6 = scmp.lt.s32.totalorder %s28_s17, %s28_s17 }
  0x11   :  { %p4142_p5 = scmp.ne.s32.totalorder %s28_s17, %s4141_s18  ;;  %p4147_p7 = scmp.lt.s32.totalorder %s4141_s18, %s4141_s18 }
  0x13   :  { %p4148_p8 = por %p4147_p7, %p4146_p6 }
  0x15   :  { %p4149_p9 = pnand %p4148_p8, %p4142_p5 }
  0x17   :  { %4152 = shalt.err (!%p4149_p9)
}
  0x18   :  { %s4183_s19 = smov 64   ;;  %s4184_s20 = smov 4  }
  0x19   :  { %33 = dma.hbm_to_vmem [thread:$0]  %s7982_s1, 2048, %s28_s17, [#allocation6], %s4183_s19, %s4183_s19, %s4184_s20  }
  0x1a   :  { %4173 = dma.done.wait [#allocation3], 4096  }
  0x1b   :  { %4174 = vsyncadd [#allocation3], 4294963200 }
  0x1c   :  { %4175 = dma.done.wait [#allocation6], 2048  }
  0x1d   :  { %4176 = vsyncadd [#allocation6], 4294965248  ;;  %v41_v0 = vld [vmem:[#allocation2 + $0x8] sm:$0xff]  ;;  %v40_v1 = vld [vmem:[#allocation2] sm:$0xff]  ;;  %s4185_s0 = smov 127   ;;  %s4186_s1 = smov 1  }
  0x1e   :  { %v4209_v2 = vclamps-f32 %v41_v0, 10.0  ;;  %v4211_v3 = vclamps-f32 %v40_v1, 10.0  ;;  %v42_v4 = vld [vmem:[#allocation2 + $0x10] sm:$0xff]  ;;  %v43_v6 = vld [vmem:[#allocation2 + $0x18] sm:$0xff]  ;;  %v3601_v14 = vld [vmem:[#allocation5] sm:$0xff]   ;;  %s4187_s26 = smov [#allocation7]  }
  0x1f   :  { %v4213_v5 = vclamps-f32 %v42_v4, 10.0  ;;  %v4217_v10 = vclamps-f32 %v43_v6, 10.0  ;;  %v44_v17 = vld [vmem:[#allocation2 + $0x20] sm:$0xff]  ;;  %v45_v19 = vld [vmem:[#allocation2 + $0x28] sm:$0xff]  ;;  %v4221_v21 = vunpack.c.h.bf16 %v3601_v14  ;;  %v4235_v33 = vunpack.c.l.bf16 %v3601_v14  ;;  %v46_v36 = vld [vmem:[#allocation2 + $0x30] sm:$0xff]  ;;  %s3526_s27 = sshll.u32 %s4187_s26, 4  ;;  %s3527_s27 = int_to_ptr.vmem [resolvable:$true] %s3526_s27 }
  0x20   :  { %v201_v7 = vand.u32 2147483647, %v4209_v2  ;;  %v200_v8 = vand.u32 2147483647, %v4211_v3  ;;  %v4223_v23 = vclamps-f32 %v44_v17, 10.0  ;;  %v4225_v24 = vclamps-f32 %v45_v19, 10.0  ;;  %p4158_p11 = scmp.lt.s32.totalorder %s3527_s27, %s3527_s27 }
  0x21   :  { %v202_v12 = vand.u32 2147483647, %v4213_v5  ;;  %v203_v18 = vand.u32 2147483647, %v4217_v10  ;;  %8202 = vst [vmem:[#allocation11_spill] sm:$0xff] %v4221_v21  ;;  %v777_v25 = vmax.f32 %v4209_v2, 0.0  ;;  %v809_v26 = vmul.f32 %v4221_v21, %v4209_v2 }
  0x22   :  { %v233_v9 = vsub.f32 0.0, %v201_v7  ;;  %v232_v11 = vsub.f32 0.0, %v200_v8  ;;  %v3664_v27 = vld [vmem:[#allocation5 + $0x8] sm:$0xff]   ;;  %v204_v29 = vand.u32 2147483647, %v4223_v23  ;;  %v4232_v30 = vmul.f32 0.5, %v4221_v21 }
  0x23   :  { %v234_v16 = vsub.f32 0.0, %v202_v12  ;;  %v235_v22 = vsub.f32 0.0, %v203_v18  ;;  %v205_v32 = vand.u32 2147483647, %v4225_v24  ;;  %8203 = vst [vmem:[#allocation12_spill] sm:$0xff] %v4235_v33  ;;  %v4237_v34 = vunpack.c.l.bf16 %v3664_v27  ;;  %v3665_v39 = vld [vmem:[#allocation5 + $0x10] sm:$0xff]  }
  0x24   :  { %v266_v13 = vmul.f32 1.442695, %v233_v9  ;;  %v264_v15 = vmul.f32 1.442695, %v232_v11  ;;  %v236_v31 = vsub.f32 0.0, %v204_v29  ;;  %v4239_v35 = vunpack.c.h.bf16 %v3664_v27  ;;  %v47_v46 = vld [vmem:[#allocation2 + $0x38] sm:$0xff] }
  0x25   :  { %v268_v20 = vmul.f32 1.442695, %v234_v16  ;;  %v270_v28 = vmul.f32 1.442695, %v235_v22  ;;  %8204 = vst [vmem:[#allocation13_spill] sm:$0xff] %v4237_v34  ;;  %v4241_v37 = vsub.f32 %v777_v25, %v809_v26  ;;  %v776_v38 = vmax.f32 %v4211_v3, 0.0 }
  0x26   :  { %3849 = vpow2.f32 %v266_v13  ;;  %8205 = vst [vmem:[#allocation14_spill] sm:$0xff] %v4239_v35  ;;  %v272_v40 = vmul.f32 1.442695, %v236_v31  ;;  %v237_v41 = vsub.f32 0.0, %v205_v32  ;;  %v808_v43 = vmul.f32 %v4235_v33, %v4211_v3  ;;  %v3666_v14 = vld [vmem:[#allocation5 + $0x18] sm:$0xff]   ;;  %v48_v29 = vld [vmem:[#allocation2 + $0x40] sm:$0xff] }
  0x27   :  { %3851 = vpow2.f32 %v264_v15  ;;  %v4248_v44 = vmul.f32 0.5, %v4235_v33  ;;  %v778_v45 = vmax.f32 %v4213_v5, 0.0  ;;  %v810_v47 = vmul.f32 %v4237_v34, %v4213_v5  ;;  %s4153_s28 = scalar_lea.vmem %s3527_s27, 128 }
  0x28   :  { %3853 = vpow2.f32 %v268_v20  ;;  %v274_v48 = vmul.f32 1.442695, %v237_v41  ;;  %v4253_v49 = vclamps-f32 %v46_v36, 10.0  ;;  %v4256_v50 = vmul.f32 0.5, %v4237_v34  ;;  %p4154_p10 = scmp.ne.s32.totalorder %s3527_s27, %s4153_s28  ;;  %p4159_p12 = scmp.lt.s32.totalorder %s4153_s28, %s4153_s28 }
  0x29   :  { %3855 = vpow2.f32 %v270_v28  ;;  %v779_v51 = vmax.f32 %v4217_v10, 0.0  ;;  %v811_v52 = vmul.f32 %v4239_v35, %v4217_v10  ;;  %v4261_v53 = vunpack.c.l.bf16 %v3665_v39 }
  0x2a   :  { %3857 = vpow2.f32 %v272_v40  ;;  %v4264_v54 = vmul.f32 0.5, %v4239_v35  ;;  %v4266_v55 = vunpack.c.h.bf16 %v3665_v39  ;;  %v4268_v56 = vclamps-f32 %v47_v46, 10.0  ;;  %p4160_p13 = por %p4159_p12, %p4158_p11 }
  0x2b   :  { %8206 = vst [vmem:[#allocation15_spill] sm:$0xff] %v4261_v53  ;;  %3859 = vpow2.f32 %v274_v48  ;;  %v4272_v58 = vsub.f32 %v776_v38, %v808_v43  ;;  %v780_v59 = vmax.f32 %v4223_v23, 0.0  ;;  %v812_v60 = vmul.f32 %v4261_v53, %v4223_v23 }
  0x2c   :  { %8207 = vst [vmem:[#allocation16_spill] sm:$0xff] %v4266_v55  ;;  %v4278_v61 = vmul.f32 0.5, %v4261_v53  ;;  %v781_v0 = vmax.f32 %v4225_v24, 0.0  ;;  %v813_v1 = vmul.f32 %v4266_v55, %v4225_v24  ;;  %v206_v4 = vand.u32 2147483647, %v4253_v49  ;;  %p4161_p0 = pnand %p4160_p13, %p4154_p10 }
  0x2d   :  { %v4289_v8 = vsub.f32 %v778_v45, %v810_v47  ;;  %v4294_v12 = vsub.f32 %v779_v51, %v811_v52  ;;  %v207_v15 = vand.u32 2147483647, %v4268_v56  ;;  %v4299_v17 = vsub.f32 %v780_v59, %v812_v60 }
  0x2e   :  { %v4302_v18 = vmul.f32 0.5, %v4266_v55  ;;  %v4305_v20 = vsub.f32 %v781_v0, %v813_v1  ;;  %v238_v22 = vsub.f32 0.0, %v206_v4  ;;  %v4311_v28 = vunpack.c.l.bf16 %v3666_v14 }
  0x2f   :  { %v4314_v32 = vunpack.c.h.bf16 %v3666_v14  ;;  %v239_v36 = vsub.f32 0.0, %v207_v15  ;;  %vm681_vm0 = vcmp.ge.f32.partialorder %v4209_v2, 0.0  ;;  %v4321_v45 = vclamps-f32 %v48_v29, 10.0 }
  0x30   :  { %8208 = vst [vmem:[#allocation17_spill] sm:$0xff] %v4311_v28  ;;  %v276_v43 = vmul.f32 1.442695, %v238_v22  ;;  %vm680_vm1 = vcmp.ge.f32.partialorder %v4211_v3, 0.0  ;;  %v4341_v22 = vmul.f32 %v4311_v28, %v4253_v49  ;;  %vm682_vm5 = vcmp.ge.f32.partialorder %v4213_v5, 0.0 }
  0x31   :  { %8209 = vst [vmem:[#allocation18_spill] sm:$0xff] %v4314_v32  ;;  %8210 = vst [vmem:[#allocation19_spill] sm:$0xff] %v4321_v45  ;;  %v208_v14 = vand.u32 2147483647, %v4321_v45  ;;  %vm683_vm7 = vcmp.ge.f32.partialorder %v4217_v10, 0.0  ;;  %vm684_vm9 = vcmp.ge.f32.partialorder %v4223_v23, 0.0 }
  0x32   :  { %vm685_vm11 = vcmp.ge.f32.partialorder %v4225_v24, 0.0  ;;  %vm686_vm12 = vcmp.ge.f32.partialorder %v4253_v49, 0.0  ;;  %vm687_vm14 = vcmp.ge.f32.partialorder %v4268_v56, 0.0 }
  0x33   :  { %v4270_v57 = vpop.eup %3849 }
  0x34   :  { %v4280_v62 = vpop.eup %3851  ;;  %v337_v63 = vadd.f32 1.0, %v4270_v57  ;;  %v340_v26 = vmul.f32 -0.5, %v4270_v57  ;;  %v343_v38 = vand.u32 2147483647, %v4270_v57 }
  0x35   :  { %v328_v6 = vadd.f32 1.0, %v4280_v62  ;;  %v4292_v11 = vpop.eup %3853  ;;  %v331_v27 = vmul.f32 -0.5, %v4280_v62  ;;  %v334_v51 = vand.u32 2147483647, %v4280_v62 }
  0x36   :  { %3861 = vrcp.f32 %v337_v63  ;;  %v346_v16 = vadd.f32 1.0, %v4292_v11  ;;  %v4307_v25 = vpop.eup %3855  ;;  %v349_v39 = vmul.f32 -0.5, %v4292_v11  ;;  %v341_v47 = vadd.f32 1.0, %v340_v26 }
  0x37   :  { %3863 = vlog2.f32 %v337_v63  ;;  %v355_v31 = vadd.f32 1.0, %v4307_v25  ;;  %v358_v41 = vmul.f32 -0.5, %v4307_v25  ;;  %v4323_v46 = vpop.eup %3857  ;;  %v332_v48 = vadd.f32 1.0, %v331_v27 }
  0x38   :  { %3865 = vrcp.f32 %v328_v6  ;;  %v352_v52 = vand.u32 2147483647, %v4292_v11  ;;  %v364_v59 = vadd.f32 1.0, %v4323_v46  ;;  %v367_v60 = vmul.f32 -0.5, %v4323_v46  ;;  %v4330_v0 = vpop.eup %3859 }
  0x39   :  { %3867 = vlog2.f32 %v328_v6  ;;  %v278_v63 = vmul.f32 1.442695, %v239_v36  ;;  %v350_v1 = vadd.f32 1.0, %v349_v39  ;;  %v361_v4 = vand.u32 2147483647, %v4307_v25 }
  0x3a   :  { %3869 = vlog2.f32 %v346_v16  ;;  %vm4335_vm2 = vcmp.lt.f32.partialorder %v343_v38, 0.0004427343  ;;  %v342_v26 = vmul.f32 %v4270_v57, %v341_v47  ;;  %v333_v27 = vmul.f32 %v4280_v62, %v332_v48 }
  0x3b   :  { %3871 = vrcp.f32 %v346_v16  ;;  %v359_v16 = vadd.f32 1.0, %v358_v41  ;;  %vm4345_vm3 = vcmp.lt.f32.partialorder %v334_v51, 0.0004427343  ;;  %vm4349_vm4 = vcmp.lt.f32.partialorder %v352_v52, 0.0004427343 }
  0x3c   :  { %3873 = vlog2.f32 %v355_v31  ;;  %v373_v38 = vadd.f32 1.0, %v4330_v0  ;;  %v376_v39 = vmul.f32 -0.5, %v4330_v0  ;;  %v351_v40 = vmul.f32 %v4292_v11, %v350_v1 }
  0x3d   :  { %3875 = vrcp.f32 %v355_v31  ;;  %v368_v31 = vadd.f32 1.0, %v367_v60  ;;  %vm4357_vm6 = vcmp.lt.f32.partialorder %v361_v4, 0.0004427343  ;;  %v240_v48 = vsub.f32 0.0, %v208_v14 }
  0x3e   :  { %3877 = vlog2.f32 %v364_v59  ;;  %v4363_v60 = vmul.f32 %v4307_v25, %v359_v16  ;;  %v370_v19 = vand.u32 2147483647, %v4323_v46  ;;  %v377_v16 = vadd.f32 1.0, %v376_v39 }
  0x3f   :  { %3879 = vpow2.f32 %v276_v43  ;;  %v4368_v1 = vmul.f32 %v4323_v46, %v368_v31  ;;  %v280_v7 = vmul.f32 1.442695, %v240_v48 }
  0x40   :  { %3881 = vpow2.f32 %v278_v63  ;;  %v379_v63 = vand.u32 2147483647, %v4330_v0  ;;  %vm4381_vm8 = vcmp.lt.f32.partialorder %v370_v19, 0.0004427343 }
  0x41   :  { %3883 = vrcp.f32 %v364_v59 }
  0x42   :  { %3885 = vlog2.f32 %v373_v38  ;;  %vm4416_vm10 = vcmp.lt.f32.partialorder %v379_v63, 0.0004427343 }
  0x43   :  { %v3862_v41 = vpop.eup %3861  ;;  %3887 = vrcp.f32 %v373_v38 }
  0x44   :  { %v3864_v51 = vpop.eup %3863  ;;  %v713_v52 = vmul.f32 %v3862_v41, %v4270_v57  ;;  %3889 = vpow2.f32 %v280_v7 }
  0x45   :  { %v3866_v43 = vpop.eup %3865  ;;  %v339_v6 = vmul.f32 0.6931472, %v3864_v51 }
  0x46   :  { %v3868_v4 = vpop.eup %3867  ;;  %v745_v57 = vsel %vm681_vm0, %v3862_v41, %v713_v52  ;;  %v712_v14 = vmul.f32 %v3866_v43, %v4280_v62 }
  0x47   :  { %v3870_v13 = vpop.eup %3869  ;;  %v1393_v59 = vmax.f32 %v745_v57, 1e-06  ;;  %v345_v51 = vsel %vm4335_vm2, %v342_v26, %v339_v6  ;;  %v969_v9 = vmul.f32 2.0, %v745_v57  ;;  %v330_v2 = vmul.f32 0.6931472, %v3868_v4 }
  0x48   :  { %v3872_v31 = vpop.eup %3871  ;;  %v4377_v42 = vadd.f32 %v4241_v37, %v345_v51  ;;  %v744_v45 = vsel %vm680_vm1, %v3866_v43, %v712_v14  ;;  %v348_v41 = vmul.f32 0.6931472, %v3870_v13  ;;  %v937_v15 = vsub.f32 1.0, %v745_v57 }
  0x49   :  { %v3874_v38 = vpop.eup %3873  ;;  %v4385_v39 = vmin.f32 %v1393_v59, 0.999999  ;;  %v3569_v6 = vadd.f32 -1.0, %v969_v9  ;;  %v1392_v26 = vmax.f32 %v744_v45, 1e-06  ;;  %v336_v37 = vsel %vm4345_vm3, %v333_v27, %v330_v2 }
  0x4a   :  { %v3876_v48 = vpop.eup %3875  ;;  %v936_v52 = vsub.f32 1.0, %v744_v45  ;;  %v968_v51 = vmul.f32 2.0, %v744_v45  ;;  %v354_v3 = vsel %vm4349_vm4, %v351_v40, %v348_v41  ;;  %v4397_v4 = vadd.f32 %v4272_v58, %v336_v37 }
  0x4b   :  { %8221 = vst [vmem:[#allocation20_spill] sm:$0xff] %v4385_v39  ;;  %v1457_v13 = vmul.f32 %v4221_v21, %v4385_v39  ;;  %v1033_v19 = vmul.f32 %v4221_v21, %v3569_v6  ;;  %v4394_v43 = vmin.f32 %v1392_v26, 0.999999  ;;  %v714_v27 = vmul.f32 %v3872_v31, %v4292_v11  ;;  %v3878_v40 = vpop.eup %3877 }
  0x4c   :  { %v3568_v9 = vadd.f32 -1.0, %v968_v51  ;;  %v4402_v45 = vadd.f32 %v4289_v8, %v354_v3  ;;  %v357_v29 = vmul.f32 0.6931472, %v3874_v38  ;;  %v715_v14 = vmul.f32 %v3876_v48, %v4307_v25  ;;  %v4420_v41 = vpop.eup %3879 }
  0x4d   :  { %8222 = vst [vmem:[#allocation21_spill] sm:$0xff] %v4394_v43  ;;  %1490 = vadd.xlane.f32.xlu1 %v1457_v13  ;;  %v1065_v36 = vadd.f32 %v1033_v19, %v937_v15  ;;  %v1456_v57 = vmul.f32 %v4235_v33, %v4394_v43  ;;  %v4408_v58 = vmul.f32 %v4330_v0, %v377_v16  ;;  %v905_v25 = vmin.f32 %v4377_v42, 10.0  ;;  %v4423_v6 = vpop.eup %3881 }
  0x4e   :  { %v1032_v59 = vmul.f32 %v4235_v33, %v3568_v9  ;;  %v746_v11 = vsel %vm682_vm5, %v3872_v31, %v714_v27  ;;  %v363_v8 = vsel %vm4357_vm6, %v4363_v60, %v357_v29  ;;  %v747_v47 = vsel %vm683_vm7, %v3876_v48, %v715_v14  ;;  %v3884_v7 = vpop.eup %3883  ;;  %v67_v33 = vld [vmem:[#allocation2 + $0xd8] sm:$0xff] }
  0x4f   :  { %v1097_v16 = vmax.f32 %v1065_v36, 1e-07  ;;  %1488 = vadd.xlane.f32.xlu0 %v1456_v57  ;;  %v970_v38 = vmul.f32 2.0, %v746_v11  ;;  %v1394_v15 = vmax.f32 %v746_v11, 1e-06  ;;  %v4428_v60 = vadd.f32 %v4294_v12, %v363_v8  ;;  %v3886_v51 = vpop.eup %3885 }
  0x50   :  { %v1064_v5 = vadd.f32 %v1032_v59, %v936_v52  ;;  %v366_v63 = vmul.f32 0.6931472, %v3878_v40  ;;  %v938_v26 = vsub.f32 1.0, %v746_v11  ;;  %v939_v13 = vsub.f32 1.0, %v747_v47  ;;  %v3888_v9 = vpop.eup %3887 }
  0x51   :  { %v1129_v31 = vmin.f32 %v1097_v16, 1.0  ;;  %v3570_v42 = vadd.f32 -1.0, %v970_v38  ;;  %v4431_v37 = vmin.f32 %v1394_v15, 0.999999  ;;  %v971_v19 = vmul.f32 2.0, %v747_v47 }
  0x52   :  { %v1096_v3 = vmax.f32 %v1064_v5, 1e-07  ;;  %v1395_v52 = vmax.f32 %v747_v47, 1e-06  ;;  %v372_v27 = vsel %vm4381_vm8, %v4368_v1, %v366_v63  ;;  %v716_v57 = vmul.f32 %v3884_v7, %v4323_v46 }
  0x53   :  { %8225 = vst [vmem:[#allocation22_spill] sm:$0xff] %v4431_v37  ;;  %v1161_v10 = vsub.f32 1.0, %v1129_v31  ;;  %v1034_v48 = vmul.f32 %v4237_v34, %v3570_v42  ;;  %v1458_v12 = vmul.f32 %v4237_v34, %v4431_v37  ;;  %v3571_v40 = vadd.f32 -1.0, %v971_v19 }
  0x54   :  { %v1128_v29 = vmin.f32 %v1096_v3, 1.0  ;;  %v4439_v36 = vmin.f32 %v1395_v52, 0.999999  ;;  %v4443_v11 = vadd.f32 %v4299_v17, %v372_v27  ;;  %v375_v8 = vmul.f32 0.6931472, %v3886_v51  ;;  %v49_v51 = vld [vmem:[#allocation2 + $0x48] sm:$0xff] }
  0x55   :  { %v1257_v14 = vmul.f32 %v1161_v10, %v1161_v10  ;;  %v1066_v59 = vadd.f32 %v1034_v48, %v938_v26  ;;  %1492 = vadd.xlane.f32.xlu1 %v1458_v12  ;;  %v1035_v38 = vmul.f32 %v4239_v35, %v3571_v40  ;;  %v748_v1 = vsel %vm684_vm9, %v3884_v7, %v716_v57 }
  0x56   :  { %8226 = vst [vmem:[#allocation23_spill] sm:$0xff] %v4439_v36  ;;  %v1160_v16 = vsub.f32 1.0, %v1128_v29  ;;  %v1459_v62 = vmul.f32 %v4239_v35, %v4439_v36  ;;  %v8227_v15 = vsub.f32 0.75, %v4232_v30  ;;  %v904_v46 = vmin.f32 %v4397_v4, 10.0 }
  0x57   :  { %v1098_v47 = vmax.f32 %v1066_v59, 1e-07  ;;  %v940_v63 = vsub.f32 1.0, %v748_v1  ;;  %v1067_v17 = vadd.f32 %v1035_v38, %v939_v13  ;;  %v972_v26 = vmul.f32 2.0, %v748_v1  ;;  %v4461_v13 = vpop.eup %3889 }
  0x58   :  { %v1289_v5 = vmul.f32 %v1257_v14, %v8227_v15  ;;  %v1256_v31 = vmul.f32 %v1160_v16, %v1160_v16  ;;  %1494 = vadd.xlane.f32.xlu0 %v1459_v62  ;;  %v1396_v42 = vmax.f32 %v748_v1, 1e-06  ;;  %v381_v23 = vsel %vm4416_vm10, %v4408_v58, %v375_v8 }
  0x59   :  { %v1130_v19 = vmin.f32 %v1098_v47, 1.0  ;;  %v717_v7 = vmul.f32 %v3888_v9, %v4330_v0  ;;  %v8228_v30 = vsub.f32 0.75, %v4248_v44  ;;  %v1099_v4 = vmax.f32 %v1067_v17, 1e-07 }
  0x5a   :  { %v1321_v3 = vmul.f32 %v1289_v5, %v905_v25  ;;  %v3572_v10 = vadd.f32 -1.0, %v972_v26  ;;  %v4459_v48 = vmin.f32 %v1396_v42, 0.999999  ;;  %v4466_v27 = vadd.f32 %v4305_v20, %v381_v23 }
  0x5b   :  { %v1288_v52 = vmul.f32 %v1256_v31, %v8228_v30  ;;  %v1162_v12 = vsub.f32 1.0, %v1130_v19  ;;  %v749_v25 = vsel %vm685_vm11, %v3888_v9, %v717_v7  ;;  %v4468_v2 = vclamps-f32 %v49_v51, 10.0 }
  0x5c   :  { %8229 = vst [vmem:[#allocation24_spill] sm:$0xff] %v4459_v48  ;;  %v1131_v0 = vmin.f32 %v1099_v4, 1.0  ;;  %v1036_v44 = vmul.f32 %v4261_v53, %v3572_v10  ;;  %v1460_v29 = vmul.f32 %v4261_v53, %v4459_v48  ;;  %v906_v40 = vmin.f32 %v4402_v45, 10.0 }
  0x5d   :  { %v1320_v58 = vmul.f32 %v1288_v52, %v904_v46  ;;  %v1258_v57 = vmul.f32 %v1162_v12, %v1162_v12  ;;  %v973_v14 = vmul.f32 2.0, %v749_v25  ;;  %v382_v59 = vadd.f32 1.0, %v4420_v41 }
  0x5e   :  { %v1163_v9 = vsub.f32 1.0, %v1131_v0  ;;  %v1068_v8 = vadd.f32 %v1036_v44, %v940_v63  ;;  %1496 = vadd.xlane.f32.xlu1 %v1460_v29  ;;  %v1397_v20 = vmax.f32 %v749_v25, 1e-06  ;;  %v8230_v16 = vsub.f32 0.75, %v4256_v50 }
  0x5f   :  { %v1352_v24 = vadd.f32 %v1321_v3, %v1320_v58  ;;  %v941_v62 = vsub.f32 1.0, %v749_v25  ;;  %v3573_v1 = vadd.f32 -1.0, %v973_v14  ;;  %3891 = vlog2.f32 %v382_v59  ;;  %v4502_v14 = vld [vmem:[#allocation5 + $0x20] sm:$0xff]  }
  0x60   :  { %v1290_v38 = vmul.f32 %v1258_v57, %v8230_v16  ;;  %v907_v15 = vmin.f32 %v4428_v60, 10.0  ;;  %v1259_v5 = vmul.f32 %v1163_v9, %v1163_v9  ;;  %v1100_v46 = vmax.f32 %v1068_v8, 1e-07 }
  0x61   :  { %v4478_v45 = vmin.f32 %v1397_v20, 0.999999  ;;  %v1037_v31 = vmul.f32 %v4266_v55, %v3573_v1  ;;  %3893 = vrcp.f32 %v382_v59  ;;  %v4482_v63 = vmul.f32 0.5, %v4311_v28 }
  0x62   :  { %v1322_v47 = vmul.f32 %v1290_v38, %v906_v40  ;;  %v8232_v17 = vsub.f32 0.75, %v4264_v54  ;;  %v1132_v26 = vmin.f32 %v1100_v46, 1.0  ;;  %v8233_v60 = vmax.f32 %v4253_v49, 0.0 }
  0x63   :  { %8231 = vst [vmem:[#allocation25_spill] sm:$0xff] %v4478_v45  ;;  %v1461_v42 = vmul.f32 %v4266_v55, %v4478_v45  ;;  %v1069_v19 = vadd.f32 %v1037_v31, %v941_v62  ;;  %v385_v23 = vmul.f32 -0.5, %v4420_v41  ;;  %v391_v7 = vadd.f32 1.0, %v4423_v6 }
  0x64   :  { %v1291_v50 = vmul.f32 %v1259_v5, %v8232_v17  ;;  %v846_v51 = vsub.f32 %v8233_v60, %v4341_v22  ;;  %v1353_v3 = vadd.f32 %v1352_v24, %v1322_v47  ;;  %v1164_v52 = vsub.f32 1.0, %v1132_v26 }
  0x65   :  { %1498 = vadd.xlane.f32.xlu0 %v1461_v42  ;;  %v783_v54 = vmax.f32 %v4268_v56, 0.0  ;;  %v209_v4 = vand.u32 2147483647, %v4468_v2  ;;  %v1101_v10 = vmax.f32 %v1069_v19, 1e-07  ;;  %3895 = vlog2.f32 %v391_v7 }
  0x66   :  { %v1323_v30 = vmul.f32 %v1291_v50, %v907_v15  ;;  %v815_v12 = vmul.f32 %v4314_v32, %v4268_v56  ;;  %v400_v22 = vadd.f32 1.0, %v4461_v13  ;;  %v908_v58 = vmin.f32 %v4443_v11, 10.0  ;;  %v50_v11 = vld [vmem:[#allocation2 + $0x50] sm:$0xff] }
  0x67   :  { %v1260_v0 = vmul.f32 %v1164_v52, %v1164_v52  ;;  %v1230_v44 = vsub.f32 0.75, %v4482_v63  ;;  %v1133_v29 = vmin.f32 %v1101_v10, 1.0  ;;  %v386_v40 = vadd.f32 1.0, %v385_v23 }
  0x68   :  { %v1354_v25 = vadd.f32 %v1353_v3, %v1323_v30  ;;  %v388_v57 = vand.u32 2147483647, %v4420_v41  ;;  %3897 = vrcp.f32 %v391_v7  ;;  %v8234_v59 = vsub.f32 0.75, %v4278_v61  ;;  %v51_v61 = vld [vmem:[#allocation2 + $0x58] sm:$0xff] }
  0x69   :  { %v394_v9 = vmul.f32 -0.5, %v4423_v6  ;;  %3899 = vlog2.f32 %v400_v22  ;;  %v241_v8 = vsub.f32 0.0, %v209_v4  ;;  %v1165_v20 = vsub.f32 1.0, %v1133_v29 }
  0x6a   :  { %v1292_v24 = vmul.f32 %v1260_v0, %v8234_v59  ;;  %v847_v16 = vsub.f32 %v783_v54, %v815_v12  ;;  %v4508_v38 = vmul.f32 0.5, %v4314_v32  ;;  %3901 = vrcp.f32 %v400_v22  ;;  %v8239_v54 = vld [vmem:[#allocation19_spill] sm:$0xff] }
  0x6b   :  { %v909_v1 = vmin.f32 %v4466_v27, 10.0  ;;  %v4512_v15 = vunpack.c.l.bf16 %v4502_v14  ;;  %v282_v5 = vmul.f32 1.442695, %v241_v8  ;;  %v1261_v46 = vmul.f32 %v1165_v20, %v1165_v20 }
  0x6c   :  { %v1324_v62 = vmul.f32 %v1292_v24, %v908_v58  ;;  %v387_v47 = vmul.f32 %v4420_v41, %v386_v40  ;;  %vm4515_vm13 = vcmp.lt.f32.partialorder %v388_v57, 0.0004427343  ;;  %v4519_v17 = vclamps-f32 %v50_v11, 10.0  ;;  %v3892_v50 = vpop.eup %3891 }
  0x6d   :  { %8235 = vst [vmem:[#allocation26_spill] sm:$0xff] %v4512_v15  ;;  %v395_v42 = vadd.f32 1.0, %v394_v9  ;;  %v403_v27 = vmul.f32 -0.5, %v4461_v13  ;;  %3903 = vpow2.f32 %v282_v5  ;;  %v8238_v60 = vsub.f32 0.75, %v4302_v18 }
  0x6e   :  { %v1355_v26 = vadd.f32 %v1354_v25, %v1324_v62  ;;  %v384_v19 = vmul.f32 0.6931472, %v3892_v50  ;;  %v210_v23 = vand.u32 2147483647, %v4519_v17  ;;  %v4526_v7 = vclamps-f32 %v51_v61, 10.0  ;;  %v3894_v30 = vpop.eup %3893 }
  0x6f   :  { %v1293_v3 = vmul.f32 %v1261_v46, %v8238_v60  ;;  %v397_v52 = vand.u32 2147483647, %v4423_v6  ;;  %vm688_vm15 = vcmp.ge.f32.partialorder %v8239_v54, 0.0  ;;  %v784_v4 = vmax.f32 %v8239_v54, 0.0 }
  0x70   :  { %v816_v10 = vmul.f32 %v4512_v15, %v8239_v54  ;;  %v390_v18 = vsel %vm4515_vm13, %v387_v47, %v384_v19  ;;  %v718_v22 = vmul.f32 %v3894_v30, %v4420_v41  ;;  %v242_v25 = vsub.f32 0.0, %v210_v23 }
  0x71   :  { %v1325_v12 = vmul.f32 %v1293_v3, %v909_v1  ;;  %v4536_v58 = vadd.f32 %v846_v51, %v390_v18  ;;  %v396_v0 = vmul.f32 %v4423_v6, %v395_v42  ;;  %v404_v29 = vadd.f32 1.0, %v403_v27 }
  0x72   :  { %v406_v40 = vand.u32 2147483647, %v4461_v13  ;;  %v750_v59 = vsel %vm686_vm12, %v3894_v30, %v718_v22  ;;  %v284_v24 = vmul.f32 1.442695, %v242_v25  ;;  %v211_v9 = vand.u32 2147483647, %v4526_v7  ;;  %v3896_v8 = vpop.eup %3895 }
  0x73   :  { %v4540_v57 = vadd.f32 %v1355_v26, %v1325_v12  ;;  %v974_v11 = vmul.f32 2.0, %v750_v59  ;;  %v1398_v20 = vmax.f32 %v750_v59, 1e-06  ;;  %vm4545_vm0 = vcmp.lt.f32.partialorder %v397_v52, 0.0004427343 }
  0x74   :  { %v848_v51 = vsub.f32 %v784_v4, %v816_v10  ;;  %v393_v62 = vmul.f32 0.6931472, %v3896_v8  ;;  %v4550_v1 = vmul.f32 0.5, %v4512_v15  ;;  %3905 = vpow2.f32 %v284_v24  ;;  %v3668_v8 = vld [vmem:[#allocation5 + $0x28] sm:$0xff]  }
  0x75   :  { %v243_v5 = vsub.f32 0.0, %v211_v9  ;;  %v3898_v61 = vpop.eup %3897  ;;  %v942_v49 = vsub.f32 1.0, %v750_v59  ;;  %v3574_v46 = vadd.f32 -1.0, %v974_v11  ;;  %v4552_v47 = vmin.f32 %v1398_v20, 0.999999 }
  0x76   :  { %v405_v31 = vmul.f32 %v4461_v13, %v404_v29  ;;  %v3900_v50 = vpop.eup %3899  ;;  %v399_v26 = vsel %vm4545_vm0, %v396_v0, %v393_v62  ;;  %v719_v42 = vmul.f32 %v3898_v61, %v4423_v6  ;;  %vm4558_vm1 = vcmp.lt.f32.partialorder %v406_v40, 0.0004427343 }
  0x77   :  { %8242 = vst [vmem:[#allocation19_spill] sm:$0xff] %v4552_v47  ;;  %v286_v60 = vmul.f32 1.442695, %v243_v5  ;;  %v3902_v3 = vpop.eup %3901  ;;  %v1038_v19 = vmul.f32 %v4311_v28, %v3574_v46  ;;  %v1462_v23 = vmul.f32 %v4311_v28, %v4552_v47  ;;  %v4565_v30 = vadd.f32 %v847_v16, %v399_v26 }
  0x78   :  { %v402_v52 = vmul.f32 0.6931472, %v3900_v50  ;;  %v751_v4 = vsel %vm687_vm14, %v3898_v61, %v719_v42  ;;  %v1231_v10 = vsub.f32 0.75, %v4508_v38  ;;  %v720_v6 = vmul.f32 %v3902_v3, %v4461_v13 }
  0x79   :  { %3907 = vpow2.f32 %v286_v60  ;;  %v1070_v12 = vadd.f32 %v1038_v19, %v942_v49  ;;  %1500 = vadd.xlane.f32.xlu1 %v1462_v23  ;;  %v975_v18 = vmul.f32 2.0, %v751_v4  ;;  %v1232_v22 = vsub.f32 0.75, %v4550_v1  ;;  %v52_v49 = vld [vmem:[#allocation2 + $0x60] sm:$0xff] }
  0x7a   :  { %v4573_v25 = vunpack.c.h.bf16 %v4502_v14  ;;  %v4575_v0 = vpop.eup %3903  ;;  %v1399_v16 = vmax.f32 %v751_v4, 1e-06  ;;  %v408_v56 = vsel %vm4558_vm1, %v405_v31, %v402_v52  ;;  %v752_v29 = vsel %vm688_vm15, %v3902_v3, %v720_v6 }
  0x7b   :  { %v785_v13 = vmax.f32 %v4468_v2, 0.0  ;;  %v1102_v40 = vmax.f32 %v1070_v12, 1e-07  ;;  %v943_v59 = vsub.f32 1.0, %v751_v4  ;;  %v3575_v24 = vadd.f32 -1.0, %v975_v18 }
  0x7c   :  { %8245 = vst [vmem:[#allocation27_spill] sm:$0xff] %v4573_v25  ;;  %v4582_v9 = vadd.f32 %v848_v51, %v408_v56  ;;  %v4584_v11 = vmin.f32 %v1399_v16, 0.999999  ;;  %v976_v14 = vmul.f32 2.0, %v752_v29  ;;  %v1400_v20 = vmax.f32 %v752_v29, 1e-06 }
  0x7d   :  { %v409_v41 = vadd.f32 1.0, %v4575_v0  ;;  %v1134_v62 = vmin.f32 %v1102_v40, 1.0  ;;  %v1039_v5 = vmul.f32 %v4314_v32, %v3575_v24  ;;  %v944_v61 = vsub.f32 1.0, %v752_v29 }
  0x7e   :  { %8246 = vst [vmem:[#allocation28_spill] sm:$0xff] %v4584_v11  ;;  %v817_v54 = vmul.f32 %v4573_v25, %v4468_v2  ;;  %v1463_v46 = vmul.f32 %v4314_v32, %v4584_v11  ;;  %v3576_v51 = vadd.f32 -1.0, %v976_v14  ;;  %v4592_v31 = vmin.f32 %v1400_v20, 0.999999 }
  0x7f   :  { %3909 = vlog2.f32 %v409_v41  ;;  %v1166_v50 = vsub.f32 1.0, %v1134_v62  ;;  %v1071_v26 = vadd.f32 %v1039_v5, %v943_v59  ;;  %v4595_v42 = vmul.f32 0.5, %v4573_v25 }
  0x80   :  { %8247 = vst [vmem:[#allocation29_spill] sm:$0xff] %v4592_v31  ;;  %v4597_v27 = vunpack.c.l.bf16 %v3668_v8  ;;  %1502 = vadd.xlane.f32.xlu0 %v1463_v46  ;;  %v1040_v60 = vmul.f32 %v4512_v15, %v3576_v51  ;;  %v1464_v3 = vmul.f32 %v4512_v15, %v4592_v31  ;;  %3911 = vrcp.f32 %v409_v41 }
  0x81   :  { %v4602_v19 = vclamps-f32 %v52_v49, 10.0  ;;  %v4604_v23 = vpop.eup %3905  ;;  %v910_v52 = vmin.f32 %v4536_v58, 10.0  ;;  %v1262_v4 = vmul.f32 %v1166_v50, %v1166_v50  ;;  %v1103_v6 = vmax.f32 %v1071_v26, 1e-07 }
  0x82   :  { %8248 = vst [vmem:[#allocation30_spill] sm:$0xff] %v4597_v27  ;;  %v849_v12 = vsub.f32 %v785_v13, %v817_v54  ;;  %v1072_v18 = vadd.f32 %v1040_v60, %v944_v61  ;;  %1504 = vadd.xlane.f32.xlu1 %v1464_v3  ;;  %v412_v16 = vmul.f32 -0.5, %v4575_v0  ;;  %v418_v56 = vadd.f32 1.0, %v4604_v23 }
  0x83   :  { %v786_v29 = vmax.f32 %v4519_v17, 0.0  ;;  %v1294_v40 = vmul.f32 %v1262_v4, %v1230_v44  ;;  %v1135_v59 = vmin.f32 %v1103_v6, 1.0  ;;  %v818_v24 = vmul.f32 %v4597_v27, %v4519_v17 }
  0x84   :  { %v212_v58 = vand.u32 2147483647, %v4602_v19  ;;  %v911_v14 = vmin.f32 %v4565_v30, 10.0  ;;  %v1104_v13 = vmax.f32 %v1072_v18, 1e-07  ;;  %3913 = vlog2.f32 %v418_v56 }
  0x85   :  { %v4617_v20 = vmul.f32 0.5, %v4597_v27  ;;  %v1326_v62 = vmul.f32 %v1294_v40, %v910_v52  ;;  %v1167_v5 = vsub.f32 1.0, %v1135_v59  ;;  %vm689_vm2 = vcmp.ge.f32.partialorder %v4468_v2, 0.0  ;;  %v53_v52 = vld [vmem:[#allocation2 + $0x68] sm:$0xff] }
  0x86   :  { %v4619_v41 = vpop.eup %3907  ;;  %3915 = vrcp.f32 %v418_v56  ;;  %v244_v63 = vsub.f32 0.0, %v212_v58  ;;  %v1136_v44 = vmin.f32 %v1104_v13, 1.0  ;;  %v413_v61 = vadd.f32 1.0, %v412_v16 }
  0x87   :  { %v415_v54 = vand.u32 2147483647, %v4575_v0  ;;  %v427_v49 = vadd.f32 1.0, %v4619_v41  ;;  %v1357_v30 = vadd.f32 %v4540_v57, %v1326_v62  ;;  %v1263_v46 = vmul.f32 %v1167_v5, %v1167_v5 }
  0x88   :  { %v421_v51 = vmul.f32 -0.5, %v4604_v23  ;;  %v288_v50 = vmul.f32 1.442695, %v244_v63  ;;  %v1168_v26 = vsub.f32 1.0, %v1136_v44  ;;  %v1233_v60 = vsub.f32 0.75, %v4595_v42  ;;  %v3670_v42 = vld [vmem:[#allocation5 + $0x38] sm:$0xff]  }
  0x89   :  { %v4627_v3 = vsub.f32 %v786_v29, %v818_v24  ;;  %3917 = vlog2.f32 %v427_v49  ;;  %v1295_v4 = vmul.f32 %v1263_v46, %v1231_v10  ;;  %v1234_v6 = vsub.f32 0.75, %v4617_v20 }
  0x8a   :  { %v4632_v18 = vunpack.c.h.bf16 %v3668_v8  ;;  %3919 = vrcp.f32 %v427_v49  ;;  %v912_v57 = vmin.f32 %v4582_v9, 10.0  ;;  %v1264_v16 = vmul.f32 %v1168_v26, %v1168_v26  ;;  %v54_v8 = vld [vmem:[#allocation2 + $0x70] sm:$0xff] }
  0x8b   :  { %v414_v56 = vmul.f32 %v4575_v0, %v413_v61  ;;  %vm690_vm3 = vcmp.ge.f32.partialorder %v4519_v17, 0.0  ;;  %3921 = vpow2.f32 %v288_v50  ;;  %v1327_v40 = vmul.f32 %v1295_v4, %v911_v14 }
  0x8c   :  { %8249 = vst [vmem:[#allocation31_spill] sm:$0xff] %v4632_v18  ;;  %v3910_v29 = vpop.eup %3909  ;;  %vm4637_vm4 = vcmp.lt.f32.partialorder %v415_v54, 0.0004427343  ;;  %v422_v38 = vadd.f32 1.0, %v421_v51  ;;  %v4641_v10 = vclamps-f32 %v53_v52, 10.0  ;;  %v1296_v24 = vmul.f32 %v1264_v16, %v1232_v22 }
  0x8d   :  { %v411_v9 = vmul.f32 0.6931472, %v3910_v29  ;;  %v430_v58 = vmul.f32 -0.5, %v4619_v41  ;;  %v787_v13 = vmax.f32 %v4526_v7, 0.0  ;;  %v3912_v62 = vpop.eup %3911  ;;  %v1358_v5 = vadd.f32 %v1357_v30, %v1327_v40 }
  0x8e   :  { %v424_v14 = vand.u32 2147483647, %v4604_v23  ;;  %v819_v63 = vmul.f32 %v4632_v18, %v4526_v7  ;;  %v213_v44 = vand.u32 2147483647, %v4641_v10  ;;  %v1328_v61 = vmul.f32 %v1296_v24, %v912_v57 }
  0x8f   :  { %v417_v54 = vsel %vm4637_vm4, %v414_v56, %v411_v9  ;;  %v721_v1 = vmul.f32 %v3912_v62, %v4575_v0  ;;  %v4654_v22 = vclamps-f32 %v54_v8, 10.0  ;;  %v423_v46 = vmul.f32 %v4604_v23, %v422_v38 }
  0x90   :  { %v4656_v49 = vadd.f32 %v849_v12, %v417_v54  ;;  %vm691_vm5 = vcmp.ge.f32.partialorder %v4526_v7, 0.0  ;;  %v245_v30 = vsub.f32 0.0, %v213_v44  ;;  %v4660_v51 = vadd.f32 %v1358_v5, %v1328_v61 }
  0x91   :  { %v753_v50 = vsel %vm689_vm2, %v3912_v62, %v721_v1  ;;  %v431_v26 = vadd.f32 1.0, %v430_v58  ;;  %v433_v52 = vand.u32 2147483647, %v4619_v41  ;;  %v3914_v4 = vpop.eup %3913  ;;  %vm4665_vm6 = vcmp.lt.f32.partialorder %v424_v14, 0.0004427343  ;;  %v3669_v14 = vld [vmem:[#allocation5 + $0x30] sm:$0xff]  }
  0x92   :  { %v977_v57 = vmul.f32 2.0, %v753_v50  ;;  %v1401_v0 = vmax.f32 %v753_v50, 1e-06  ;;  %v4670_v12 = vmul.f32 0.5, %v4632_v18  ;;  %v420_v29 = vmul.f32 0.6931472, %v3914_v4 }
  0x93   :  { %v3916_v56 = vpop.eup %3915  ;;  %v851_v40 = vsub.f32 %v787_v13, %v819_v63  ;;  %v290_v59 = vmul.f32 1.442695, %v245_v30  ;;  %v214_v2 = vand.u32 2147483647, %v4654_v22  ;;  %v945_v38 = vsub.f32 1.0, %v753_v50 }
  0x94   :  { %v3577_v8 = vadd.f32 -1.0, %v977_v57  ;;  %v4673_v24 = vmin.f32 %v1401_v0, 0.999999  ;;  %v722_v9 = vmul.f32 %v3916_v56, %v4604_v23  ;;  %v426_v58 = vsel %vm4665_vm6, %v423_v46, %v420_v29 }
  0x95   :  { %v432_v62 = vmul.f32 %v4619_v41, %v431_v26  ;;  %vm4679_vm7 = vcmp.lt.f32.partialorder %v433_v52, 0.0004427343  ;;  %3923 = vpow2.f32 %v290_v59  ;;  %v4689_v61 = vadd.f32 %v4627_v3, %v426_v58 }
  0x96   :  { %8254 = vst [vmem:[#allocation32_spill] sm:$0xff] %v4673_v24  ;;  %v3918_v13 = vpop.eup %3917  ;;  %v1041_v63 = vmul.f32 %v4573_v25, %v3577_v8  ;;  %v1465_v44 = vmul.f32 %v4573_v25, %v4673_v24  ;;  %v754_v23 = vsel %vm690_vm3, %v3916_v56, %v722_v9  ;;  %v1235_v50 = vsub.f32 0.75, %v4670_v12 }
  0x97   :  { %v3920_v54 = vpop.eup %3919  ;;  %v978_v1 = vmul.f32 2.0, %v754_v23  ;;  %v1402_v46 = vmax.f32 %v754_v23, 1e-06  ;;  %v429_v30 = vmul.f32 0.6931472, %v3918_v13  ;;  %v4695_v57 = vunpack.c.l.bf16 %v3669_v14 }
  0x98   :  { %v4692_v26 = vpop.eup %3921  ;;  %v1073_v52 = vadd.f32 %v1041_v63, %v945_v38  ;;  %1506 = vadd.xlane.f32.xlu0 %v1465_v44  ;;  %v723_v4 = vmul.f32 %v3920_v54, %v4619_v41  ;;  %v246_v0 = vsub.f32 0.0, %v214_v2  ;;  %v946_v17 = vsub.f32 1.0, %v754_v23 }
  0x99   :  { %8257 = vst [vmem:[#allocation33_spill] sm:$0xff] %v4695_v57  ;;  %v3578_v16 = vadd.f32 -1.0, %v978_v1  ;;  %v4697_v56 = vmin.f32 %v1402_v46, 0.999999  ;;  %v435_v3 = vsel %vm4679_vm7, %v432_v62, %v429_v30  ;;  %v436_v38 = vadd.f32 1.0, %v4692_v26  ;;  %v55_v46 = vld [vmem:[#allocation2 + $0x78] sm:$0xff] }
  0x9a   :  { %v1105_v29 = vmax.f32 %v1073_v52, 1e-07  ;;  %v755_v59 = vsel %vm691_vm5, %v3920_v54, %v723_v4  ;;  %v4703_v8 = vadd.f32 %v851_v40, %v435_v3  ;;  %v788_v58 = vmax.f32 %v4602_v19, 0.0 }
  0x9b   :  { %8258 = vst [vmem:[#allocation34_spill] sm:$0xff] %v4697_v56  ;;  %v1042_v41 = vmul.f32 %v4597_v27, %v3578_v16  ;;  %v1466_v2 = vmul.f32 %v4597_v27, %v4697_v56  ;;  %v979_v9 = vmul.f32 2.0, %v755_v59  ;;  %v1403_v63 = vmax.f32 %v755_v59, 1e-06 }
  0x9c   :  { %v1137_v13 = vmin.f32 %v1105_v29, 1.0  ;;  %3925 = vlog2.f32 %v436_v38  ;;  %v292_v62 = vmul.f32 1.442695, %v246_v0  ;;  %v947_v7 = vsub.f32 1.0, %v755_v59 }
  0x9d   :  { %v1074_v5 = vadd.f32 %v1042_v41, %v946_v17  ;;  %1508 = vadd.xlane.f32.xlu1 %v1466_v2  ;;  %v3579_v44 = vadd.f32 -1.0, %v979_v9  ;;  %v820_v40 = vmul.f32 %v4695_v57, %v4602_v19  ;;  %v4712_v54 = vmin.f32 %v1403_v63, 0.999999  ;;  %v56_v63 = vld [vmem:[#allocation2 + $0x80] sm:$0xff] }
  0x9e   :  { %v1169_v23 = vsub.f32 1.0, %v1137_v13  ;;  %3927 = vrcp.f32 %v436_v38  ;;  %v4715_v1 = vmul.f32 0.5, %v4695_v57  ;;  %v913_v30 = vmin.f32 %v4656_v49, 10.0 }
  0x9f   :  { %8259 = vst [vmem:[#allocation35_spill] sm:$0xff] %v4712_v54  ;;  %v1106_v52 = vmax.f32 %v1074_v5, 1e-07  ;;  %v1043_v4 = vmul.f32 %v4632_v18, %v3579_v44  ;;  %v4719_v0 = vunpack.c.h.bf16 %v3669_v14  ;;  %v1467_v16 = vmul.f32 %v4632_v18, %v4712_v54 }
  0xa0   :  { %v1265_v17 = vmul.f32 %v1169_v23, %v1169_v23  ;;  %v439_v3 = vmul.f32 -0.5, %v4692_v26  ;;  %3929 = vpow2.f32 %v292_v62  ;;  %v852_v38 = vsub.f32 %v788_v58, %v820_v40 }
  0xa1   :  { %8260 = vst [vmem:[#allocation36_spill] sm:$0xff] %v4719_v0  ;;  %v1138_v29 = vmin.f32 %v1106_v52, 1.0  ;;  %v1075_v59 = vadd.f32 %v1043_v4, %v947_v7  ;;  %v4724_v41 = vclamps-f32 %v55_v46, 10.0  ;;  %1510 = vadd.xlane.f32.xlu0 %v1467_v16  ;;  %v789_v14 = vmax.f32 %v4641_v10, 0.0 }
  0xa2   :  { %v4726_v2 = vpop.eup %3923  ;;  %v1297_v49 = vmul.f32 %v1265_v17, %v1233_v60  ;;  %v821_v9 = vmul.f32 %v4719_v0, %v4641_v10  ;;  %v4734_v13 = vmul.f32 0.5, %v4719_v0  ;;  %v914_v62 = vmin.f32 %v4689_v61, 10.0 }
  0xa3   :  { %v1170_v58 = vsub.f32 1.0, %v1138_v29  ;;  %v1107_v5 = vmax.f32 %v1075_v59, 1e-07  ;;  %vm692_vm8 = vcmp.ge.f32.partialorder %v4602_v19, 0.0  ;;  %v445_v7 = vadd.f32 1.0, %v4726_v2 }
  0xa4   :  { %v1329_v60 = vmul.f32 %v1297_v49, %v913_v30  ;;  %v440_v44 = vadd.f32 1.0, %v439_v3  ;;  %v442_v40 = vand.u32 2147483647, %v4692_v26  ;;  %v215_v23 = vand.u32 2147483647, %v4724_v41 }
  0xa5   :  { %v1266_v46 = vmul.f32 %v1170_v58, %v1170_v58  ;;  %v1139_v52 = vmin.f32 %v1107_v5, 1.0  ;;  %3931 = vlog2.f32 %v445_v7  ;;  %v4741_v4 = vclamps-f32 %v56_v63, 10.0 }
  0xa6   :  { %v1360_v61 = vadd.f32 %v4660_v51, %v1329_v60  ;;  %3933 = vrcp.f32 %v445_v7  ;;  %v4744_v17 = vunpack.c.l.bf16 %v3670_v42  ;;  %v247_v16 = vsub.f32 0.0, %v215_v23 }
  0xa7   :  { %v1298_v29 = vmul.f32 %v1266_v46, %v1234_v6  ;;  %v915_v30 = vmin.f32 %v4703_v8, 10.0  ;;  %v1171_v3 = vsub.f32 1.0, %v1139_v52  ;;  %v790_v59 = vmax.f32 %v4654_v22, 0.0 }
  0xa8   :  { %8261 = vst [vmem:[#allocation37_spill] sm:$0xff] %v4744_v17  ;;  %v441_v49 = vmul.f32 %v4692_v26, %v440_v44  ;;  %v448_v58 = vmul.f32 -0.5, %v4726_v2  ;;  %v822_v63 = vmul.f32 %v4744_v17, %v4654_v22  ;;  %v294_v51 = vmul.f32 1.442695, %v247_v16 }
  0xa9   :  { %v3926_v5 = vpop.eup %3925  ;;  %v1330_v7 = vmul.f32 %v1298_v29, %v914_v62  ;;  %v1267_v60 = vmul.f32 %v1171_v3, %v1171_v3  ;;  %vm4754_vm9 = vcmp.lt.f32.partialorder %v442_v40, 0.0004427343  ;;  %v216_v20 = vand.u32 2147483647, %v4741_v4 }
  0xaa   :  { %v438_v6 = vmul.f32 0.6931472, %v3926_v5  ;;  %v853_v46 = vsub.f32 %v789_v14, %v821_v9  ;;  %3935 = vpow2.f32 %v294_v51  ;;  %vm693_vm10 = vcmp.ge.f32.partialorder %v4641_v10, 0.0  ;;  %v4769_v14 = vld [vmem:[#allocation5 + $0x40] sm:$0xff]   ;;  %v57_v9 = vld [vmem:[#allocation2 + $0x88] sm:$0xff] }
  0xab   :  { %v3928_v44 = vpop.eup %3927  ;;  %v1361_v52 = vadd.f32 %v1360_v61, %v1330_v7  ;;  %v1299_v18 = vmul.f32 %v1267_v60, %v1235_v50  ;;  %v248_v40 = vsub.f32 0.0, %v216_v20  ;;  %v449_v3 = vadd.f32 1.0, %v448_v58 }
  0xac   :  { %v444_v16 = vsel %vm4754_vm9, %v441_v49, %v438_v6  ;;  %v724_v29 = vmul.f32 %v3928_v44, %v4692_v26  ;;  %v4767_v5 = vsub.f32 %v790_v59, %v822_v63  ;;  %v4776_v51 = vmul.f32 0.5, %v4744_v17 }
  0xad   :  { %v4771_v61 = vpop.eup %3929  ;;  %v1331_v12 = vmul.f32 %v1299_v18, %v915_v30  ;;  %v4773_v50 = vadd.f32 %v852_v38, %v444_v16  ;;  %v4778_v7 = vunpack.c.h.bf16 %v3670_v42  ;;  %v451_v26 = vand.u32 2147483647, %v4726_v2 }
  0xae   :  { %v756_v49 = vsel %vm692_vm8, %v3928_v44, %v724_v29  ;;  %v454_v59 = vadd.f32 1.0, %v4771_v61  ;;  %v296_v58 = vmul.f32 1.442695, %v248_v40  ;;  %v4787_v18 = vunpack.c.l.bf16 %v4769_v14  ;;  %v58_v44 = vld [vmem:[#allocation2 + $0x90] sm:$0xff] }
  0xaf   :  { %8264 = vst [vmem:[#allocation38_spill] sm:$0xff] %v4778_v7  ;;  %v4784_v63 = vadd.f32 %v1361_v52, %v1331_v12  ;;  %v980_v60 = vmul.f32 2.0, %v756_v49  ;;  %v4789_v38 = vclamps-f32 %v57_v9, 10.0  ;;  %v1404_v30 = vmax.f32 %v756_v49, 1e-06 }
  0xb0   :  { %8265 = vst [vmem:[#allocation39_spill] sm:$0xff] %v4787_v18  ;;  %v450_v42 = vmul.f32 %v4726_v2, %v449_v3  ;;  %3937 = vlog2.f32 %v454_v59  ;;  %v791_v19 = vmax.f32 %v4724_v41, 0.0  ;;  %v948_v23 = vsub.f32 1.0, %v756_v49 }
  0xb1   :  { %v3580_v20 = vadd.f32 -1.0, %v980_v60  ;;  %3939 = vrcp.f32 %v454_v59  ;;  %v823_v6 = vmul.f32 %v4778_v7, %v4724_v41  ;;  %v4795_v40 = vmin.f32 %v1404_v30, 0.999999 }
  0xb2   :  { %v3932_v52 = vpop.eup %3931  ;;  %vm4797_vm11 = vcmp.lt.f32.partialorder %v451_v26, 0.0004427343  ;;  %v4802_v29 = vmul.f32 0.5, %v4778_v7  ;;  %3941 = vpow2.f32 %v296_v58  ;;  %v217_v59 = vand.u32 2147483647, %v4789_v38 }
  0xb3   :  { %8266 = vst [vmem:[#allocation40_spill] sm:$0xff] %v4795_v40  ;;  %v3934_v3 = vpop.eup %3933  ;;  %v1044_v9 = vmul.f32 %v4695_v57, %v3580_v20  ;;  %v447_v12 = vmul.f32 0.6931472, %v3932_v52  ;;  %v1468_v60 = vmul.f32 %v4695_v57, %v4795_v40  ;;  %v457_v30 = vmul.f32 -0.5, %v4771_v61 }
  0xb4   :  { %v725_v26 = vmul.f32 %v3934_v3, %v4726_v2  ;;  %v4811_v62 = vclamps-f32 %v58_v44, 10.0  ;;  %v4815_v25 = vsub.f32 %v791_v19, %v823_v6  ;;  %v249_v20 = vsub.f32 0.0, %v217_v59 }
  0xb5   :  { %v1076_v8 = vadd.f32 %v1044_v9, %v948_v23  ;;  %v453_v58 = vsel %vm4797_vm11, %v450_v42, %v447_v12  ;;  %1512 = vadd.xlane.f32.xlu1 %v1468_v60  ;;  %vm694_vm12 = vcmp.ge.f32.partialorder %v4654_v22, 0.0  ;;  %v792_v19 = vmax.f32 %v4741_v4, 0.0  ;;  %v61_v22 = vld [vmem:[#allocation2 + $0xa8] sm:$0xff] }
  0xb6   :  { %v757_v52 = vsel %vm693_vm10, %v3934_v3, %v725_v26  ;;  %v4819_v49 = vadd.f32 %v853_v46, %v453_v58  ;;  %v218_v44 = vand.u32 2147483647, %v4811_v62  ;;  %v458_v9 = vadd.f32 1.0, %v457_v30 }
  0xb7   :  { %v4824_v32 = vpop.eup %3935  ;;  %v1108_v23 = vmax.f32 %v1076_v8, 1e-07  ;;  %v981_v16 = vmul.f32 2.0, %v757_v52  ;;  %v1405_v42 = vmax.f32 %v757_v52, 1e-06  ;;  %v949_v6 = vsub.f32 1.0, %v757_v52 }
  0xb8   :  { %v460_v10 = vand.u32 2147483647, %v4771_v61  ;;  %v463_v46 = vadd.f32 1.0, %v4824_v32  ;;  %v298_v60 = vmul.f32 1.442695, %v249_v20  ;;  %v824_v26 = vmul.f32 %v4787_v18, %v4741_v4 }
  0xb9   :  { %v1140_v3 = vmin.f32 %v1108_v23, 1.0  ;;  %v3581_v12 = vadd.f32 -1.0, %v981_v16  ;;  %v4829_v59 = vmin.f32 %v1405_v42, 0.999999  ;;  %v4834_v8 = vmul.f32 0.5, %v4787_v18 }
  0xba   :  { %3943 = vlog2.f32 %v463_v46  ;;  %v250_v58 = vsub.f32 0.0, %v218_v44  ;;  %v459_v23 = vmul.f32 %v4771_v61, %v458_v9  ;;  %v466_v16 = vmul.f32 -0.5, %v4824_v32 }
  0xbb   :  { %8269 = vst [vmem:[#allocation41_spill] sm:$0xff] %v4829_v59  ;;  %v1172_v2 = vsub.f32 1.0, %v1140_v3  ;;  %v1045_v30 = vmul.f32 %v4719_v0, %v3581_v12  ;;  %v1469_v52 = vmul.f32 %v4719_v0, %v4829_v59  ;;  %3945 = vrcp.f32 %v463_v46  ;;  %v59_v3 = vld [vmem:[#allocation2 + $0x98] sm:$0xff] }
  0xbc   :  { %3947 = vpow2.f32 %v298_v60  ;;  %v300_v20 = vmul.f32 1.442695, %v250_v58  ;;  %v916_v55 = vmin.f32 %v4773_v50, 10.0  ;;  %vm4842_vm13 = vcmp.lt.f32.partialorder %v460_v10, 0.0004427343 }
  0xbd   :  { %v3938_v42 = vpop.eup %3937  ;;  %v1268_v35 = vmul.f32 %v1172_v2, %v1172_v2  ;;  %v1077_v57 = vadd.f32 %v1045_v30, %v949_v6  ;;  %1514 = vadd.xlane.f32.xlu0 %v1469_v52  ;;  %v4846_v46 = vsub.f32 %v792_v19, %v824_v26  ;;  %v4849_v9 = vunpack.c.h.bf16 %v4769_v14  ;;  %v60_v30 = vld [vmem:[#allocation2 + $0xa0] sm:$0xff] }
  0xbe   :  { %v3940_v12 = vpop.eup %3939  ;;  %v456_v0 = vmul.f32 0.6931472, %v3938_v42  ;;  %3949 = vpow2.f32 %v300_v20  ;;  %v8273_v50 = vsub.f32 0.75, %v4715_v1  ;;  %v469_v58 = vand.u32 2147483647, %v4824_v32 }
  0xbf   :  { %8272 = vst [vmem:[#allocation42_spill] sm:$0xff] %v4849_v9  ;;  %v4851_v60 = vpop.eup %3941  ;;  %v1109_v6 = vmax.f32 %v1077_v57, 1e-07  ;;  %v726_v10 = vmul.f32 %v3940_v12, %v4771_v61  ;;  %v467_v19 = vadd.f32 1.0, %v466_v16  ;;  %vm695_vm14 = vcmp.ge.f32.partialorder %v4724_v41, 0.0 }
  0xc0   :  { %v1300_v2 = vmul.f32 %v1268_v35, %v8273_v50  ;;  %v462_v52 = vsel %vm4842_vm13, %v459_v23, %v456_v0  ;;  %v472_v14 = vadd.f32 1.0, %v4851_v60  ;;  %v4861_v26 = vclamps-f32 %v59_v3, 10.0 }
  0xc1   :  { %v1141_v42 = vmin.f32 %v1109_v6, 1.0  ;;  %v758_v35 = vsel %vm694_vm12, %v3940_v12, %v726_v10  ;;  %v4866_v57 = vadd.f32 %v4767_v5, %v462_v52  ;;  %v4868_v44 = vclamps-f32 %v60_v30, 10.0 }
  0xc2   :  { %v1332_v20 = vmul.f32 %v1300_v2, %v916_v55  ;;  %v982_v1 = vmul.f32 2.0, %v758_v35  ;;  %v1406_v61 = vmax.f32 %v758_v35, 1e-06  ;;  %3951 = vlog2.f32 %v472_v14 }
  0xc3   :  { %v917_v23 = vmin.f32 %v4819_v49, 10.0  ;;  %v1173_v16 = vsub.f32 1.0, %v1141_v42  ;;  %v475_v3 = vmul.f32 -0.5, %v4851_v60  ;;  %v950_v55 = vsub.f32 1.0, %v758_v35 }
  0xc4   :  { %v1363_v0 = vadd.f32 %v4784_v63, %v1332_v20  ;;  %v3582_v50 = vadd.f32 -1.0, %v982_v1  ;;  %v4873_v2 = vmin.f32 %v1406_v61, 0.999999  ;;  %3953 = vrcp.f32 %v472_v14 }
  0xc5   :  { %v1269_v5 = vmul.f32 %v1173_v16, %v1173_v16  ;;  %v468_v12 = vmul.f32 %v4824_v32, %v467_v19  ;;  %vm4876_vm15 = vcmp.lt.f32.partialorder %v469_v58, 0.0004427343  ;;  %v219_v63 = vand.u32 2147483647, %v4861_v26 }
  0xc6   :  { %8274 = vst [vmem:[#allocation43_spill] sm:$0xff] %v4873_v2  ;;  %v1046_v49 = vmul.f32 %v4744_v17, %v3582_v50  ;;  %v1470_v10 = vmul.f32 %v4744_v17, %v4873_v2  ;;  %v478_v30 = vand.u32 2147483647, %v4851_v60  ;;  %v220_v52 = vand.u32 2147483647, %v4868_v44 }
  0xc7   :  { %v3944_v14 = vpop.eup %3943  ;;  %v8277_v20 = vsub.f32 0.75, %v4734_v13  ;;  %v918_v58 = vmin.f32 %v4866_v57, 10.0  ;;  %v251_v19 = vsub.f32 0.0, %v219_v63  ;;  %v4889_v35 = vclamps-f32 %v61_v22, 10.0 }
  0xc8   :  { %v3946_v1 = vpop.eup %3945  ;;  %v1078_v61 = vadd.f32 %v1046_v49, %v950_v55  ;;  %1516 = vadd.xlane.f32.xlu1 %v1470_v10  ;;  %v465_v16 = vmul.f32 0.6931472, %v3944_v14  ;;  %v476_v50 = vadd.f32 1.0, %v475_v3  ;;  %v252_v21 = vsub.f32 0.0, %v220_v52 }
  0xc9   :  { %v1301_v42 = vmul.f32 %v1269_v5, %v8277_v20  ;;  %v4891_v17 = vpop.eup %3947  ;;  %v727_v15 = vmul.f32 %v3946_v1, %v4824_v32  ;;  %vm696_vm0 = vcmp.ge.f32.partialorder %v4741_v4, 0.0  ;;  %v302_v13 = vmul.f32 1.442695, %v251_v19  ;;  %v65_v4 = vld [vmem:[#allocation2 + $0xc8] sm:$0xff] }
  0xca   :  { %v221_v5 = vand.u32 2147483647, %v4889_v35  ;;  %v1110_v20 = vmax.f32 %v1078_v61, 1e-07  ;;  %v471_v22 = vsel %vm4876_vm15, %v468_v12, %v465_v16  ;;  %v4899_v55 = vadd.f32 1.0, %v4891_v17  ;;  %v62_v12 = vld [vmem:[#allocation2 + $0xb0] sm:$0xff] }
  0xcb   :  { %v1333_v27 = vmul.f32 %v1301_v42, %v917_v23  ;;  %v304_v63 = vmul.f32 1.442695, %v252_v21  ;;  %v4901_v3 = vpop.eup %3949  ;;  %v759_v23 = vsel %vm695_vm14, %v3946_v1, %v727_v15  ;;  %v4906_v32 = vadd.f32 %v4815_v25, %v471_v22 }
  0xcc   :  { %3955 = vpow2.f32 %v302_v13  ;;  %v1142_v10 = vmin.f32 %v1110_v20, 1.0  ;;  %v983_v52 = vmul.f32 2.0, %v759_v23  ;;  %v1407_v14 = vmax.f32 %v759_v23, 1e-06  ;;  %v63_v20 = vld [vmem:[#allocation2 + $0xb8] sm:$0xff] }
  0xcd   :  { %v1364_v49 = vadd.f32 %v1363_v0, %v1333_v27  ;;  %v477_v6 = vmul.f32 %v4851_v60, %v476_v50  ;;  %v951_v42 = vsub.f32 1.0, %v759_v23  ;;  %3957 = vrcp.f32 %v4899_v55 }
  0xce   :  { %v4911_v21 = vadd.f32 1.0, %v4901_v3  ;;  %v253_v27 = vsub.f32 0.0, %v221_v5  ;;  %v1174_v0 = vsub.f32 1.0, %v1142_v10  ;;  %v3583_v41 = vadd.f32 -1.0, %v983_v52  ;;  %v64_v10 = vld [vmem:[#allocation2 + $0xc0] sm:$0xff] }
  0xcf   :  { %v4913_v15 = vmin.f32 %v1407_v14, 0.999999  ;;  %3959 = vpow2.f32 %v304_v63  ;;  %v3952_v25 = vpop.eup %3951  ;;  %vm4915_vm1 = vcmp.lt.f32.partialorder %v478_v30, 0.0004427343  ;;  %v4920_v61 = vclamps-f32 %v62_v12, 10.0 }
  0xd0   :  { %3961 = vrcp.f32 %v4911_v21  ;;  %v306_v1 = vmul.f32 1.442695, %v253_v27  ;;  %v1270_v16 = vmul.f32 %v1174_v0, %v1174_v0  ;;  %v1047_v50 = vmul.f32 %v4778_v7, %v3583_v41  ;;  %v4935_v41 = vld [vmem:[#allocation5 + $0x48] sm:$0xff]  }
  0xd1   :  { %8278 = vst [vmem:[#allocation44_spill] sm:$0xff] %v4913_v15  ;;  %v1471_v13 = vmul.f32 %v4778_v7, %v4913_v15  ;;  %v474_v5 = vmul.f32 0.6931472, %v3952_v25  ;;  %v3954_v22 = vpop.eup %3953  ;;  %v4927_v30 = vmul.f32 0.5, %v4849_v9  ;;  %v222_v23 = vand.u32 2147483647, %v4920_v61 }
  0xd2   :  { %3963 = vpow2.f32 %v306_v1  ;;  %v8281_v52 = vsub.f32 0.75, %v4776_v51  ;;  %v1079_v12 = vadd.f32 %v1047_v50, %v951_v42  ;;  %v728_v0 = vmul.f32 %v3954_v22, %v4851_v60 }
  0xd3   :  { %1518 = vadd.xlane.f32.xlu0 %v1471_v13  ;;  %v480_v27 = vsel %vm4915_vm1, %v477_v6, %v474_v5  ;;  %vm697_vm2 = vcmp.ge.f32.partialorder %v4789_v38, 0.0  ;;  %v254_v1 = vsub.f32 0.0, %v222_v23  ;;  %v4941_v63 = vclamps-f32 %v63_v20, 10.0 }
  0xd4   :  { %v1302_v14 = vmul.f32 %v1270_v16, %v8281_v52  ;;  %v4938_v25 = vadd.f32 %v4846_v46, %v480_v27  ;;  %v1111_v42 = vmax.f32 %v1079_v12, 1e-07  ;;  %v760_v19 = vsel %vm696_vm0, %v3954_v22, %v728_v0 }
  0xd5   :  { %8282 = vst [vmem:[#allocation45_spill] sm:$0xff] %v4941_v63  ;;  %v4947_v6 = vclamps-f32 %v64_v10, 10.0  ;;  %v984_v60 = vmul.f32 2.0, %v760_v19  ;;  %v1408_v16 = vmax.f32 %v760_v19, 1e-06  ;;  %v4951_v46 = vunpack.c.l.bf16 %v4935_v41 }
  0xd6   :  { %v1334_v51 = vmul.f32 %v1302_v14, %v918_v58  ;;  %v1143_v5 = vmin.f32 %v1111_v42, 1.0  ;;  %v308_v20 = vmul.f32 1.442695, %v254_v1  ;;  %v223_v57 = vand.u32 2147483647, %v4941_v63 }
  0xd7   :  { %8283 = vst [vmem:[#allocation46_spill] sm:$0xff] %v4951_v46  ;;  %v952_v58 = vsub.f32 1.0, %v760_v19  ;;  %v3584_v23 = vadd.f32 -1.0, %v984_v60  ;;  %v4956_v52 = vmin.f32 %v1408_v16, 0.999999  ;;  %vm698_vm3 = vcmp.ge.f32.partialorder %v4811_v62, 0.0 }
  0xd8   :  { %v4953_v13 = vadd.f32 %v1364_v49, %v1334_v51  ;;  %v1175_v10 = vsub.f32 1.0, %v1143_v5  ;;  %3965 = vpow2.f32 %v308_v20  ;;  %v255_v14 = vsub.f32 0.0, %v223_v57 }
  0xd9   :  { %8285 = vst [vmem:[#allocation48_spill] sm:$0xff] %v4956_v52  ;;  %v4959_v22 = vpop.eup %3955  ;;  %v224_v12 = vand.u32 2147483647, %v4947_v6  ;;  %v919_v49 = vmin.f32 %v4906_v32, 10.0  ;;  %v1048_v27 = vmul.f32 %v4787_v18, %v3584_v23  ;;  %v1472_v0 = vmul.f32 %v4787_v18, %v4956_v52 }
  0xda   :  { %8284 = vst [vmem:[#allocation47_spill] sm:$0xff] %v4953_v13  ;;  %v4967_v1 = vadd.f32 1.0, %v4959_v22  ;;  %v3958_v51 = vpop.eup %3957  ;;  %v1271_v42 = vmul.f32 %v1175_v10, %v1175_v10  ;;  %v310_v19 = vmul.f32 1.442695, %v255_v14  ;;  %v4969_v16 = vclamps-f32 %v65_v4, 10.0 }
  0xdb   :  { %v256_v60 = vsub.f32 0.0, %v224_v12  ;;  %v1080_v20 = vadd.f32 %v1048_v27, %v952_v58  ;;  %1520 = vadd.xlane.f32.xlu1 %v1472_v0  ;;  %v729_v32 = vmul.f32 %v3958_v51, %v4891_v17  ;;  %v4975_v57 = vmul.f32 0.5, %v4951_v46 }
  0xdc   :  { %v4971_v5 = vpop.eup %3959  ;;  %3967 = vrcp.f32 %v4967_v1  ;;  %v8286_v50 = vsub.f32 0.75, %v4802_v29  ;;  %v225_v27 = vand.u32 2147483647, %v4969_v16  ;;  %vm699_vm4 = vcmp.ge.f32.partialorder %v4861_v26, 0.0 }
  0xdd   :  { %v3962_v23 = vpop.eup %3961  ;;  %v4981_v10 = vadd.f32 1.0, %v4971_v5  ;;  %3969 = vpow2.f32 %v310_v19  ;;  %v312_v4 = vmul.f32 1.442695, %v256_v60  ;;  %v1112_v14 = vmax.f32 %v1080_v20, 1e-07 }
  0xde   :  { %v1303_v7 = vmul.f32 %v1271_v42, %v8286_v50  ;;  %v761_v58 = vsel %vm697_vm2, %v3958_v51, %v729_v32  ;;  %v730_v12 = vmul.f32 %v3962_v23, %v4901_v3  ;;  %vm700_vm5 = vcmp.ge.f32.partialorder %v4868_v44, 0.0 }
  0xdf   :  { %v4987_v0 = vpop.eup %3963  ;;  %v953_v28 = vsub.f32 1.0, %v761_v58  ;;  %v985_v29 = vmul.f32 2.0, %v761_v58  ;;  %v1409_v50 = vmax.f32 %v761_v58, 1e-06  ;;  %v1144_v42 = vmin.f32 %v1112_v14, 1.0  ;;  %v66_v58 = vld [vmem:[#allocation2 + $0xd0] sm:$0xff] }
  0xe0   :  { %v4989_v18 = vmul.f32 %v1303_v7, %v919_v49  ;;  %v762_v19 = vsel %vm698_vm3, %v3962_v23, %v730_v12  ;;  %3971 = vrcp.f32 %v4981_v10  ;;  %v4995_v60 = vadd.f32 1.0, %v4987_v0 }
  0xe1   :  { %v3585_v51 = vadd.f32 -1.0, %v985_v29  ;;  %v4997_v20 = vmin.f32 %v1409_v50, 0.999999  ;;  %v954_v32 = vsub.f32 1.0, %v762_v19  ;;  %v986_v53 = vmul.f32 2.0, %v762_v19 }
  0xe2   :  { %8287 = vst [vmem:[#allocation49_spill] sm:$0xff] %v4989_v18  ;;  %v1176_v34 = vsub.f32 1.0, %v1144_v42  ;;  %v1410_v7 = vmax.f32 %v762_v19, 1e-06  ;;  %3973 = vrcp.f32 %v4995_v60  ;;  %v257_v49 = vsub.f32 0.0, %v225_v27 }
  0xe3   :  { %8288 = vst [vmem:[#allocation50_spill] sm:$0xff] %v4997_v20  ;;  %v1049_v14 = vmul.f32 %v4849_v9, %v3585_v51  ;;  %v1473_v23 = vmul.f32 %v4849_v9, %v4997_v20  ;;  %v3586_v12 = vadd.f32 -1.0, %v986_v53  ;;  %3975 = vpow2.f32 %v312_v4 }
  0xe4   :  { %v920_v29 = vmin.f32 %v4938_v25, 10.0  ;;  %v1272_v50 = vmul.f32 %v1176_v34, %v1176_v34  ;;  %v5004_v13 = vmin.f32 %v1410_v7, 0.999999  ;;  %v314_v18 = vmul.f32 1.442695, %v257_v49  ;;  %v3673_v25 = vld [vmem:[#allocation5 + $0x50] sm:$0xff]  }
  0xe5   :  { %v1081_v42 = vadd.f32 %v1049_v14, %v953_v28  ;;  %1522 = vadd.xlane.f32.xlu0 %v1473_v23  ;;  %v1050_v19 = vmul.f32 %v4951_v46, %v3586_v12  ;;  %v5008_v27 = vunpack.c.h.bf16 %v4935_v41  ;;  %v5010_v51 = vclamps-f32 %v66_v58, 10.0  ;;  %v5012_v52 = vpop.eup %3965  ;;  %v68_v58 = vld [vmem:[#allocation2 + $0xe0] sm:$0xff] }
  0xe6   :  { %8289 = vst [vmem:[#allocation51_spill] sm:$0xff] %v5004_v13  ;;  %v8291_v53 = vsub.f32 0.75, %v4834_v8  ;;  %v1474_v34 = vmul.f32 %v4951_v46, %v5004_v13  ;;  %3977 = vpow2.f32 %v314_v18  ;;  %v5018_v7 = vclamps-f32 %v67_v33, 10.0 }
  0xe7   :  { %8290 = vst [vmem:[#allocation52_spill] sm:$0xff] %v5008_v27  ;;  %v1113_v28 = vmax.f32 %v1081_v42, 1e-07  ;;  %v1082_v49 = vadd.f32 %v1050_v19, %v954_v32  ;;  %v5021_v14 = vadd.f32 1.0, %v5012_v52  ;;  %v226_v41 = vand.u32 2147483647, %v5010_v51 }
  0xe8   :  { %v1304_v4 = vmul.f32 %v1272_v50, %v8291_v53  ;;  %1524 = vadd.xlane.f32.xlu1 %v1474_v34  ;;  %v227_v12 = vand.u32 2147483647, %v5018_v7  ;;  %v5029_v50 = vunpack.c.l.bf16 %v3673_v25  ;;  %v3674_v32 = vld [vmem:[#allocation5 + $0x58] sm:$0xff]   ;;  %v5038_v8 = vunpack.c.h.bf16 %v3673_v25 }
  0xe9   :  { %v3968_v18 = vpop.eup %3967  ;;  %v1145_v33 = vmin.f32 %v1113_v28, 1.0  ;;  %3979 = vrcp.f32 %v5021_v14  ;;  %v258_v42 = vsub.f32 0.0, %v226_v41  ;;  %v1114_v34 = vmax.f32 %v1082_v49, 1e-07 }
  0xea   :  { %v5024_v23 = vmul.f32 %v1304_v4, %v920_v29  ;;  %8293 = vst [vmem:[#allocation54_spill] sm:$0xff] %v5029_v50  ;;  %v5032_v19 = vpop.eup %3969  ;;  %v731_v29 = vmul.f32 %v3968_v18, %v4959_v22  ;;  %v259_v53 = vsub.f32 0.0, %v227_v12  ;;  %v5036_v4 = vclamps-f32 %v68_v58, 10.0  ;;  %8294 = vst [vmem:[#allocation55_spill] sm:$0xff] %v5038_v8 }
  0xeb   :  { %v5041_v28 = vadd.f32 1.0, %v5032_v19  ;;  %v316_v13 = vmul.f32 1.442695, %v258_v42  ;;  %vm701_vm6 = vcmp.ge.f32.partialorder %v4889_v35, 0.0  ;;  %v5046_v20 = vunpack.c.l.bf16 %v3674_v32 }
  0xec   :  { %8292 = vst [vmem:[#allocation53_spill] sm:$0xff] %v5024_v23  ;;  %v3675_v23 = vld [vmem:[#allocation5 + $0x60] sm:$0xff]   ;;  %v763_v41 = vsel %vm699_vm4, %v3968_v18, %v731_v29  ;;  %v318_v15 = vmul.f32 1.442695, %v259_v53  ;;  %v1177_v12 = vsub.f32 1.0, %v1145_v33  ;;  %v5048_v59 = vunpack.c.h.bf16 %v3674_v32 }
  0xed   :  { %8295 = vst [vmem:[#allocation56_spill] sm:$0xff] %v5046_v20  ;;  %v3972_v2 = vpop.eup %3971  ;;  %v987_v58 = vmul.f32 2.0, %v763_v41  ;;  %v228_v25 = vand.u32 2147483647, %v5036_v4  ;;  %v1411_v49 = vmax.f32 %v763_v41, 1e-06  ;;  %3981 = vrcp.f32 %v5041_v28 }
  0xee   :  { %8296 = vst [vmem:[#allocation57_spill] sm:$0xff] %v5048_v59  ;;  %v732_v40 = vmul.f32 %v3972_v2, %v4971_v5  ;;  %vm702_vm7 = vcmp.ge.f32.partialorder %v4920_v61, 0.0  ;;  %v5054_v18 = vunpack.c.l.bf16 %v3675_v23  ;;  %v1146_v29 = vmin.f32 %v1114_v34, 1.0 }
  0xef   :  { %v3974_v42 = vpop.eup %3973  ;;  %v955_v54 = vsub.f32 1.0, %v763_v41  ;;  %v3587_v53 = vadd.f32 -1.0, %v987_v58  ;;  %3983 = vpow2.f32 %v316_v13  ;;  %v5058_v32 = vmin.f32 %v1411_v49, 0.999999 }
  0xf0   :  { %8297 = vst [vmem:[#allocation58_spill] sm:$0xff] %v5054_v18  ;;  %v5056_v33 = vpop.eup %3975  ;;  %v764_v56 = vsel %vm700_vm5, %v3972_v2, %v732_v40  ;;  %v733_v24 = vmul.f32 %v3974_v42, %v4987_v0  ;;  %3985 = vpow2.f32 %v318_v15  ;;  %v1273_v31 = vmul.f32 %v1177_v12, %v1177_v12 }
  0xf1   :  { %8298 = vst [vmem:[#allocation59_spill] sm:$0xff] %v5058_v32  ;;  %v1051_v11 = vmul.f32 %v5008_v27, %v3587_v53  ;;  %v988_v47 = vmul.f32 2.0, %v764_v56  ;;  %v260_v45 = vsub.f32 0.0, %v228_v25  ;;  %v1475_v34 = vmul.f32 %v5008_v27, %v5058_v32 }
  0xf2   :  { %v1412_v41 = vmax.f32 %v764_v56, 1e-06  ;;  %v765_v13 = vsel %vm701_vm6, %v3974_v42, %v733_v24  ;;  %v5069_v58 = vadd.f32 1.0, %v5056_v33  ;;  %v956_v2 = vsub.f32 1.0, %v764_v56 }
  0xf3   :  { %v5071_v49 = vpop.eup %3977  ;;  %v1083_v40 = vadd.f32 %v1051_v11, %v955_v54  ;;  %v3588_v15 = vadd.f32 -1.0, %v988_v47  ;;  %v989_v12 = vmul.f32 2.0, %v765_v13  ;;  %vm703_vm8 = vcmp.ge.f32.partialorder %v4941_v63, 0.0  ;;  %1526 = vadd.xlane.f32.xlu0 %v1475_v34  ;;  %v69_v11 = vld [vmem:[#allocation2 + $0xe8] sm:$0xff] }
  0xf4   :  { %v5074_v25 = vmin.f32 %v1412_v41, 0.999999  ;;  %v1413_v53 = vmax.f32 %v765_v13, 1e-06  ;;  %3987 = vrcp.f32 %v5069_v58  ;;  %v5078_v32 = vadd.f32 1.0, %v5071_v49  ;;  %v3676_v41 = vld [vmem:[#allocation5 + $0x68] sm:$0xff]  }
  0xf5   :  { %v1178_v24 = vsub.f32 1.0, %v1146_v29  ;;  %v1052_v42 = vmul.f32 %v5029_v50, %v3588_v15  ;;  %v3589_v48 = vadd.f32 -1.0, %v989_v12  ;;  %v320_v36 = vmul.f32 1.442695, %v260_v45 }
  0xf6   :  { %8299 = vst [vmem:[#allocation60_spill] sm:$0xff] %v5074_v25  ;;  %v3980_v56 = vpop.eup %3979  ;;  %v1115_v47 = vmax.f32 %v1083_v40, 1e-07  ;;  %v1476_v54 = vmul.f32 %v5029_v50, %v5074_v25  ;;  %v5083_v34 = vmin.f32 %v1413_v53, 0.999999  ;;  %3989 = vrcp.f32 %v5078_v32  ;;  %v3677_v40 = vld [vmem:[#allocation5 + $0x70] sm:$0xff]  }
  0xf7   :  { %v1084_v37 = vadd.f32 %v1052_v42, %v956_v2  ;;  %v957_v39 = vsub.f32 1.0, %v765_v13  ;;  %v1053_v43 = vmul.f32 %v5038_v8, %v3589_v48  ;;  %v734_v29 = vmul.f32 %v3980_v56, %v5012_v52  ;;  %v70_v13 = vld [vmem:[#allocation2 + $0xf0] sm:$0xff] }
  0xf8   :  { %8300 = vst [vmem:[#allocation61_spill] sm:$0xff] %v5083_v34  ;;  %1528 = vadd.xlane.f32.xlu1 %v1476_v54  ;;  %v1477_v45 = vmul.f32 %v5038_v8, %v5083_v34  ;;  %v5090_v15 = vunpack.c.h.bf16 %v3675_v23  ;;  %3991 = vpow2.f32 %v320_v36  ;;  %v5092_v12 = vclamps-f32 %v69_v11, 10.0 }
  0xf9   :  { %v1274_v53 = vmul.f32 %v1178_v24, %v1178_v24  ;;  %v1116_v25 = vmax.f32 %v1084_v37, 1e-07  ;;  %v766_v2 = vsel %vm702_vm7, %v3980_v56, %v734_v29  ;;  %vm704_vm9 = vcmp.ge.f32.partialorder %v4947_v6, 0.0 }
  0xfa   :  { %8301 = vst [vmem:[#allocation62_spill] sm:$0xff] %v5090_v15  ;;  %v5097_v48 = vunpack.c.l.bf16 %v3676_v41  ;;  %v1147_v42 = vmin.f32 %v1115_v47, 1.0  ;;  %1530 = vadd.xlane.f32.xlu0 %v1477_v45  ;;  %v990_v54 = vmul.f32 2.0, %v766_v2  ;;  %v1414_v34 = vmax.f32 %v766_v2, 1e-06  ;;  %v3982_v8 = vpop.eup %3981 }
  0xfb   :  { %v229_v23 = vand.u32 2147483647, %v5092_v12  ;;  %v8303_v36 = vsub.f32 0.75, %v4927_v30  ;;  %v1085_v37 = vadd.f32 %v1053_v43, %v957_v39  ;;  %vm705_vm10 = vcmp.ge.f32.partialorder %v4969_v16, 0.0 }
  0xfc   :  { %8302 = vst [vmem:[#allocation63_spill] sm:$0xff] %v5097_v48  ;;  %v5105_v24 = vunpack.c.h.bf16 %v3676_v41  ;;  %v5107_v56 = vunpack.c.l.bf16 %v3677_v40  ;;  %v5109_v29 = vpop.eup %3983  ;;  %v1148_v47 = vmin.f32 %v1116_v25, 1.0  ;;  %v5111_v45 = vmin.f32 %v1414_v34, 0.999999 }
  0xfd   :  { %v5102_v11 = vmul.f32 %v1273_v31, %v8303_v36  ;;  %v735_v50 = vmul.f32 %v3982_v8, %v5032_v19  ;;  %v261_v27 = vsub.f32 0.0, %v229_v23  ;;  %v5114_v46 = vpop.eup %3985  ;;  %v8308_v31 = vsub.f32 0.75, %v4975_v57 }
  0xfe   :  { %8305 = vst [vmem:[#allocation65_spill] sm:$0xff] %v5105_v24  ;;  %8306 = vst [vmem:[#allocation66_spill] sm:$0xff] %v5107_v56  ;;  %v3590_v39 = vadd.f32 -1.0, %v990_v54  ;;  %v5121_v43 = vadd.f32 1.0, %v5109_v29  ;;  %v5123_v41 = vclamps-f32 %v70_v13, 10.0  ;;  %v1179_v36 = vsub.f32 1.0, %v1147_v42 }
  0xff   :  { %8304 = vst [vmem:[#allocation64_spill] sm:$0xff] %v5102_v11  ;;  %8307 = vst [vmem:[#allocation67_spill] sm:$0xff] %v5111_v45  ;;  %v5118_v30 = vmul.f32 %v1274_v53, %v8308_v31  ;;  %v1478_v25 = vmul.f32 %v5046_v20, %v5111_v45  ;;  %v5129_v34 = vsel %vm703_vm8, %v3982_v8, %v735_v50  ;;  %v5132_v23 = vadd.f32 1.0, %v5114_v46  ;;  %v71_v13 = vld [vmem:[#allocation2 + $0xf8] sm:$0xff] }
 0x100   :  { %8310 = vst [vmem:[#allocation69_spill] sm:$0xff] %v5129_v34  ;;  %v1117_v57 = vmax.f32 %v1085_v37, 1e-07  ;;  %v991_v53 = vmul.f32 2.0, %v5129_v34  ;;  %v1415_v54 = vmax.f32 %v5129_v34, 1e-06  ;;  %v5136_v31 = vunpack.c.h.bf16 %v3677_v40 }
 0x101   :  { %8309 = vst [vmem:[#allocation68_spill] sm:$0xff] %v5118_v30  ;;  %v1180_v30 = vsub.f32 1.0, %v1148_v47  ;;  %v958_v42 = vsub.f32 1.0, %v766_v2  ;;  %1532 = vadd.xlane.f32.xlu1 %v1478_v25  ;;  %3993 = vrcp.f32 %v5121_v43  ;;  %v322_v45 = vmul.f32 1.442695, %v261_v27  ;;  %v3988_v11 = vpop.eup %3987 }
 0x102   :  { %8311 = vst [vmem:[#allocation70_spill] sm:$0xff] %v5136_v31  ;;  %v1054_v8 = vmul.f32 %v5046_v20, %v3590_v39  ;;  %v5140_v50 = vmin.f32 %v1415_v54, 0.999999  ;;  %3995 = vrcp.f32 %v5132_v23  ;;  %v230_v37 = vand.u32 2147483647, %v5123_v41 }
 0x103   :  { %v5144_v9 = vmul.f32 %v1179_v36, %v1179_v36  ;;  %v736_v40 = vmul.f32 %v3988_v11, %v5056_v33  ;;  %3997 = vpow2.f32 %v322_v45  ;;  %v5147_v47 = vclamps-f32 %v71_v13, 10.0  ;;  %v3990_v2 = vpop.eup %3989 }
 0x104   :  { %8312 = vst [vmem:[#allocation71_spill] sm:$0xff] %v5140_v50  ;;  %v5149_v25 = vmin.f32 %v1117_v57, 1.0  ;;  %v3591_v27 = vadd.f32 -1.0, %v991_v53  ;;  %v1479_v39 = vmul.f32 %v5048_v59, %v5140_v50  ;;  %v262_v54 = vsub.f32 0.0, %v230_v37 }
 0x105   :  { %8313 = vst [vmem:[#allocation72_spill] sm:$0xff] %v5144_v9  ;;  %v5153_v20 = vmul.f32 %v1180_v30, %v1180_v30  ;;  %v5157_v63 = vsel %vm704_vm9, %v3988_v11, %v736_v40  ;;  %v737_v36 = vmul.f32 %v3990_v2, %v5071_v49  ;;  %v3678_v9 = vld [vmem:[#allocation5 + $0x78] sm:$0xff]   ;;  %v231_v45 = vand.u32 2147483647, %v5147_v47  ;;  %v5161_v13 = vpop.eup %3991 }
 0x106   :  { %8314 = vst [vmem:[#allocation73_spill] sm:$0xff] %v5149_v25  ;;  %8316 = vst [vmem:[#allocation75_spill] sm:$0xff] %v5157_v63  ;;  %v5163_v57 = vadd.f32 %v1054_v8, %v958_v42  ;;  %1534 = vadd.xlane.f32.xlu0 %v1479_v39  ;;  %v1416_v37 = vmax.f32 %v5157_v63, 1e-06  ;;  %vm706_vm11 = vcmp.ge.f32.partialorder %v5010_v51, 0.0  ;;  %vm707_vm12 = vcmp.ge.f32.partialorder %v5018_v7, 0.0 }
 0x107   :  { %8315 = vst [vmem:[#allocation74_spill] sm:$0xff] %v5153_v20  ;;  %v324_v30 = vmul.f32 1.442695, %v262_v54  ;;  %v5170_v11 = vsel %vm705_vm10, %v3990_v2, %v737_v36  ;;  %v5174_v40 = vadd.f32 1.0, %v5161_v13  ;;  %v263_v50 = vsub.f32 0.0, %v231_v45 }
 0x108   :  { %8317 = vst [vmem:[#allocation76_spill] sm:$0xff] %v5163_v57  ;;  %8318 = vst [vmem:[#allocation77_spill] sm:$0xff] %v5170_v11  ;;  %3999 = vlog2.f32 %v4899_v55  ;;  %v5178_v42 = vmul.f32 %v5048_v59, %v3591_v27  ;;  %v5180_v8 = vmin.f32 %v1416_v37, 0.999999  ;;  %v1417_v39 = vmax.f32 %v5170_v11, 1e-06 }
 0x109   :  { %v5183_v54 = vunpack.c.l.bf16 %v3678_v9  ;;  %v992_v2 = vmul.f32 2.0, %v5157_v63  ;;  %4001 = vrcp.f32 %v5174_v40  ;;  %v326_v36 = vmul.f32 1.442695, %v263_v50 }
 0x10a   :  { %8319 = vst [vmem:[#allocation78_spill] sm:$0xff] %v5178_v42  ;;  %8320 = vst [vmem:[#allocation79_spill] sm:$0xff] %v5180_v8  ;;  %v484_v53 = vmul.f32 -0.5, %v4891_v17  ;;  %v1480_v45 = vmul.f32 %v5054_v18, %v5180_v8  ;;  %v993_v55 = vmul.f32 2.0, %v5170_v11  ;;  %v5191_v27 = vmin.f32 %v1417_v39, 0.999999 }
 0x10b   :  { %8321 = vst [vmem:[#allocation80_spill] sm:$0xff] %v5183_v54  ;;  %4003 = vpow2.f32 %v324_v30  ;;  %v487_v20 = vand.u32 2147483647, %v4891_v17  ;;  %v493_v25 = vmul.f32 -0.5, %v4901_v3  ;;  %v5197_v57 = vunpack.c.h.bf16 %v3678_v9 }
 0x10c   :  { %8322 = vst [vmem:[#allocation81_spill] sm:$0xff] %v5191_v27  ;;  %4005 = vpow2.f32 %v326_v36  ;;  %v485_v37 = vadd.f32 1.0, %v484_v53  ;;  %1536 = vadd.xlane.f32.xlu1 %v1480_v45  ;;  %v1481_v50 = vmul.f32 %v5090_v15, %v5191_v27  ;;  %v502_v8 = vmul.f32 -0.5, %v4959_v22 }
 0x10d   :  { %8323 = vst [vmem:[#allocation82_spill] sm:$0xff] %v5197_v57  ;;  %4007 = vlog2.f32 %v4911_v21  ;;  %v494_v42 = vadd.f32 1.0, %v493_v25  ;;  %v496_v30 = vand.u32 2147483647, %v4901_v3  ;;  %v5204_v36 = vadd.f32 -1.0, %v992_v2 }
 0x10e   :  { %4009 = vlog2.f32 %v4967_v1  ;;  %v3994_v53 = vpop.eup %3993  ;;  %1538 = vadd.xlane.f32.xlu0 %v1481_v50  ;;  %vm708_vm13 = vcmp.ge.f32.partialorder %v5036_v4, 0.0  ;;  %v505_v9 = vand.u32 2147483647, %v4959_v22  ;;  %v511_v21 = vmul.f32 -0.5, %v4971_v5 }
 0x10f   :  { %8324 = vst [vmem:[#allocation83_spill] sm:$0xff] %v5204_v36  ;;  %4011 = vlog2.f32 %v4981_v10  ;;  %v3996_v45 = vpop.eup %3995  ;;  %v5210_v27 = vadd.f32 -1.0, %v993_v55  ;;  %v738_v25 = vmul.f32 %v3994_v53, %v5109_v29  ;;  %v5214_v39 = vmul.f32 %v4891_v17, %v485_v37 }
 0x110   :  { %vm5216_vm14 = vcmp.lt.f32.partialorder %v487_v20, 0.0004427343  ;;  %v5220_v2 = vpop.eup %3997  ;;  %v739_v50 = vmul.f32 %v3996_v45, %v5114_v46  ;;  %v503_v63 = vadd.f32 1.0, %v502_v8  ;;  %v514_v10 = vand.u32 2147483647, %v4971_v5 }
 0x111   :  { %8325 = vst [vmem:[#allocation84_spill] sm:$0xff] %v5210_v27  ;;  %8326 = vst [vmem:[#allocation85_spill] sm:$0xff] %v5214_v39  ;;  %4013 = vlog2.f32 %v4995_v60  ;;  %v5227_v55 = vsel %vm706_vm11, %v3994_v53, %v738_v25  ;;  %v5230_v17 = vadd.f32 1.0, %v5220_v2  ;;  %v5233_v20 = vmul.f32 %v4901_v3, %v494_v42 }
 0x112   :  { %8329 = vst [vmem:[#allocation86_spill] sm:$0xff] %v5227_v55  ;;  %vm5235_vm15 = vcmp.lt.f32.partialorder %v496_v30, 0.0004427343  ;;  %v8330_v37 = vmov 0  ;;  %v520_v8 = vmul.f32 -0.5, %v4987_v0  ;;  %v5243_v60 = vsel %vm707_vm12, %v3996_v45, %v739_v50 }
 0x113   :  { %v8331_v37 = vsel %vm5235_vm15, 4294967295, %v8330_v37  ;;  %v1418_v34 = vmax.f32 %v5227_v55, 1e-06  ;;  %8333 = vst [vmem:[#allocation88_spill] sm:$0xff] %v5243_v60  ;;  %vm5245_vm0 = vcmp.lt.f32.partialorder %v505_v9, 0.0004427343  ;;  %4015 = vrcp.f32 %v5230_v17 }
 0x114   :  { %8332 = vst [vmem:[#allocation87_spill] sm:$0xff] %v8331_v37  ;;  %v512_v25 = vadd.f32 1.0, %v511_v21  ;;  %v1419_v3 = vmax.f32 %v5243_v60, 1e-06  ;;  %v523_v42 = vand.u32 2147483647, %v4987_v0  ;;  %4017 = vlog2.f32 %v5021_v14 }
 0x115   :  { %v529_v30 = vmul.f32 -0.5, %v5012_v52  ;;  %v4000_v27 = vpop.eup %3999  ;;  %v5253_v36 = vmin.f32 %v1418_v34, 0.999999  ;;  %vm5255_vm1 = vcmp.lt.f32.partialorder %v514_v10, 0.0004427343  ;;  %v8337_v55 = vmov 0 }
 0x116   :  { %v8338_v55 = vsel %vm5255_vm1, 4294967295, %v8337_v55  ;;  %v521_v9 = vadd.f32 1.0, %v520_v8  ;;  %v5260_v45 = vmin.f32 %v1419_v3, 0.999999  ;;  %v5262_v21 = vmul.f32 0.6931472, %v4000_v27  ;;  %v4002_v11 = vpop.eup %4001 }
 0x117   :  { %8336 = vst [vmem:[#allocation89_spill] sm:$0xff] %v5253_v36  ;;  %8339 = vst [vmem:[#allocation90_spill] sm:$0xff] %v8338_v55  ;;  %v5265_v50 = vmul.f32 %v4959_v22, %v503_v63  ;;  %v532_v60 = vand.u32 2147483647, %v5012_v52  ;;  %v1482_v34 = vmul.f32 %v5097_v48, %v5253_v36  ;;  %v530_v10 = vadd.f32 1.0, %v529_v30  ;;  %v8405_v55 = vld [vmem:[#allocation55_spill] sm:$0xff] }
 0x118   :  { %8340 = vst [vmem:[#allocation91_spill] sm:$0xff] %v5260_v45  ;;  %8341 = vst [vmem:[#allocation92_spill] sm:$0xff] %v5262_v21  ;;  %4019 = vlog2.f32 %v5041_v28  ;;  %v538_v8 = vmul.f32 -0.5, %v5032_v19  ;;  %v5272_v15 = vpop.eup %4003  ;;  %v1483_v14 = vmul.f32 %v5105_v24, %v5260_v45  ;;  %v740_v27 = vmul.f32 %v4002_v11, %v5161_v13 }
 0x119   :  { %v5278_v63 = vmul.f32 %v4971_v5, %v512_v25  ;;  %vm5280_vm2 = vcmp.lt.f32.partialorder %v523_v42, 0.0004427343  ;;  %v8343_v22 = vmov 0  ;;  %v5284_v3 = vpop.eup %4005  ;;  %1540 = vadd.xlane.f32.xlu1 %v1482_v34  ;;  %vm709_vm3 = vcmp.ge.f32.partialorder %v5092_v12, 0.0 }
 0x11a   :  { %v8344_v22 = vsel %vm5280_vm2, 4294967295, %v8343_v22  ;;  %v5288_v28 = vadd.f32 1.0, %v5272_v15  ;;  %v5291_v30 = vmul.f32 %v4987_v0, %v521_v9  ;;  %v539_v45 = vadd.f32 1.0, %v538_v8  ;;  %v4008_v5 = vpop.eup %4007  ;;  %1542 = vadd.xlane.f32.xlu0 %v1483_v14 }
 0x11b   :  { %8342 = vst [vmem:[#allocation93_spill] sm:$0xff] %v5278_v63  ;;  %8345 = vst [vmem:[#allocation94_spill] sm:$0xff] %v8344_v22  ;;  %4021 = vlog2.f32 %v5069_v58  ;;  %v5296_v25 = vsel %vm708_vm13, %v4002_v11, %v740_v27  ;;  %v5299_v42 = vadd.f32 1.0, %v5284_v3  ;;  %vm5305_vm4 = vcmp.lt.f32.partialorder %v532_v60, 0.0004427343  ;;  %v4010_v9 = vpop.eup %4009 }
 0x11c   :  { %8346 = vst [vmem:[#allocation95_spill] sm:$0xff] %v5291_v30  ;;  %8347 = vst [vmem:[#allocation96_spill] sm:$0xff] %v5296_v25  ;;  %v8348_v0 = vmov 0  ;;  %v547_v58 = vmul.f32 -0.5, %v5056_v33  ;;  %v1420_v8 = vmax.f32 %v5296_v25, 1e-06  ;;  %4023 = vrcp.f32 %v5288_v28  ;;  %v4012_v27 = vpop.eup %4011 }
 0x11d   :  { %v8349_v0 = vsel %vm5305_vm4, 4294967295, %v8348_v0  ;;  %v5312_v11 = vmul.f32 0.6931472, %v4008_v5  ;;  %v5315_v14 = vmul.f32 %v5012_v52, %v530_v10  ;;  %4025 = vrcp.f32 %v5299_v42 }
 0x11e   :  { %8350 = vst [vmem:[#allocation97_spill] sm:$0xff] %v8349_v0  ;;  %v5318_v34 = vmul.f32 0.6931472, %v4010_v9  ;;  %v541_v60 = vand.u32 2147483647, %v5032_v19  ;;  %v5331_v52 = vmul.f32 %v5032_v19, %v539_v45  ;;  %v4014_v10 = vpop.eup %4013  ;;  %v548_v39 = vadd.f32 1.0, %v547_v58 }
 0x11f   :  { %8351 = vst [vmem:[#allocation98_spill] sm:$0xff] %v5315_v14  ;;  %v550_v36 = vand.u32 2147483647, %v5056_v33  ;;  %v5322_v21 = vmin.f32 %v1420_v8, 0.999999  ;;  %4027 = vlog2.f32 %v5078_v32  ;;  %v556_v8 = vmul.f32 -0.5, %v5071_v49 }
 0x120   :  { %8352 = vst [vmem:[#allocation99_spill] sm:$0xff] %v5318_v34  ;;  %v5328_v25 = vmul.f32 0.6931472, %v4012_v27  ;;  %8355 = vst [vmem:[#allocation102_spill] sm:$0xff] %v5331_v52  ;;  %v5345_v45 = vmul.f32 0.6931472, %v4014_v10  ;;  %4029 = vlog2.f32 %v5121_v43  ;;  %v4016_v5 = vpop.eup %4015  ;;  %v829_v34 = vmul.f32 %v8405_v55, %v4889_v35 }
 0x121   :  { %8353 = vst [vmem:[#allocation100_spill] sm:$0xff] %v5322_v21  ;;  %v1484_v37 = vmul.f32 %v5107_v56, %v5322_v21  ;;  %v559_v27 = vand.u32 2147483647, %v5071_v49  ;;  %vm710_vm5 = vcmp.ge.f32.partialorder %v5123_v41, 0.0  ;;  %vm5349_vm6 = vcmp.lt.f32.partialorder %v541_v60, 0.0004427343 }
 0x122   :  { %8354 = vst [vmem:[#allocation101_spill] sm:$0xff] %v5328_v25  ;;  %8356 = vst [vmem:[#allocation103_spill] sm:$0xff] %v5345_v45  ;;  %v8357_v58 = vmov 0  ;;  %v557_v32 = vadd.f32 1.0, %v556_v8  ;;  %v565_v9 = vmul.f32 -0.5, %v5109_v29  ;;  %vm711_vm7 = vcmp.ge.f32.partialorder %v5147_v47, 0.0  ;;  %v4018_v8 = vpop.eup %4017 }
 0x123   :  { %v8358_v58 = vsel %vm5349_vm6, 4294967295, %v8357_v58  ;;  %1544 = vadd.xlane.f32.xlu1 %v1484_v37  ;;  %v568_v19 = vand.u32 2147483647, %v5109_v29  ;;  %4031 = vlog2.f32 %v5132_v23  ;;  %v574_v60 = vmul.f32 -0.5, %v5114_v46  ;;  %v8404_v0 = vld [vmem:[#allocation54_spill] sm:$0xff] }
 0x124   :  { %8359 = vst [vmem:[#allocation104_spill] sm:$0xff] %v8358_v58  ;;  %v741_v43 = vmul.f32 %v4016_v5, %v5220_v2  ;;  %v5365_v21 = vmul.f32 %v5056_v33, %v548_v39  ;;  %vm5367_vm8 = vcmp.lt.f32.partialorder %v550_v36, 0.0004427343  ;;  %v8361_v37 = vmov 0 }
 0x125   :  { %v8362_v37 = vsel %vm5367_vm8, 4294967295, %v8361_v37  ;;  %v566_v25 = vadd.f32 1.0, %v565_v9  ;;  %v5371_v63 = vmul.f32 0.6931472, %v4018_v8  ;;  %vm5373_vm9 = vcmp.lt.f32.partialorder %v559_v27, 0.0004427343  ;;  %v4020_v30 = vpop.eup %4019 }
 0x126   :  { %8360 = vst [vmem:[#allocation105_spill] sm:$0xff] %v5365_v21  ;;  %8363 = vst [vmem:[#allocation106_spill] sm:$0xff] %v8362_v37  ;;  %v8365_v10 = vmov 0  ;;  %v575_v23 = vadd.f32 1.0, %v574_v60  ;;  %v577_v45 = vand.u32 2147483647, %v5114_v46  ;;  %4033 = vlog2.f32 %v5174_v40 }
 0x127   :  { %8364 = vst [vmem:[#allocation107_spill] sm:$0xff] %v5371_v63  ;;  %v8366_v10 = vsel %vm5373_vm9, 4294967295, %v8365_v10  ;;  %v5381_v33 = vsel %vm709_vm3, %v4016_v5, %v741_v43  ;;  %v5384_v39 = vmul.f32 %v5071_v49, %v557_v32  ;;  %v583_v36 = vmul.f32 -0.5, %v5161_v13  ;;  %v8403_v37 = vld [vmem:[#allocation21_spill] sm:$0xff] }
 0x128   :  { %8367 = vst [vmem:[#allocation108_spill] sm:$0xff] %v8366_v10  ;;  %8368 = vst [vmem:[#allocation109_spill] sm:$0xff] %v5381_v33  ;;  %v586_v9 = vand.u32 2147483647, %v5161_v13  ;;  %v1421_v27 = vmax.f32 %v5381_v33, 1e-06  ;;  %v5396_v8 = vmul.f32 %v5109_v29, %v566_v25  ;;  %v4022_v49 = vpop.eup %4021  ;;  %v5403_v32 = vmul.f32 %v5114_v46, %v575_v23 }
 0x129   :  { %8369 = vst [vmem:[#allocation110_spill] sm:$0xff] %v5384_v39  ;;  %v5393_v40 = vmul.f32 0.6931472, %v4020_v30  ;;  %vm5398_vm10 = vcmp.lt.f32.partialorder %v568_v19, 0.0004427343  ;;  %v8372_v5 = vmov 0  ;;  %4035 = vlog2.f32 %v5230_v17  ;;  %v4024_v46 = vpop.eup %4023 }
 0x12a   :  { %8371 = vst [vmem:[#allocation112_spill] sm:$0xff] %v5396_v8  ;;  %v8373_v5 = vsel %vm5398_vm10, 4294967295, %v8372_v5  ;;  %8375 = vst [vmem:[#allocation114_spill] sm:$0xff] %v5403_v32  ;;  %vm5405_vm11 = vcmp.lt.f32.partialorder %v577_v45, 0.0004427343  ;;  %v8376_v43 = vmov 0  ;;  %4037 = vlog2.f32 %v5288_v28 }
 0x12b   :  { %8370 = vst [vmem:[#allocation111_spill] sm:$0xff] %v5393_v40  ;;  %8374 = vst [vmem:[#allocation113_spill] sm:$0xff] %v8373_v5  ;;  %v8377_v43 = vsel %vm5405_vm11, 4294967295, %v8376_v43  ;;  %v584_v33 = vadd.f32 1.0, %v583_v36  ;;  %v5410_v30 = vmin.f32 %v1421_v27, 0.999999  ;;  %v4026_v36 = vpop.eup %4025  ;;  %4039 = vlog2.f32 %v5299_v42 }
 0x12c   :  { %8378 = vst [vmem:[#allocation115_spill] sm:$0xff] %v8377_v43  ;;  %v5416_v25 = vmul.f32 0.6931472, %v4022_v49  ;;  %v592_v19 = vmul.f32 -0.5, %v5220_v2  ;;  %vm5419_vm12 = vcmp.lt.f32.partialorder %v586_v9, 0.0004427343  ;;  %v742_v49 = vmul.f32 %v4024_v46, %v5272_v15  ;;  %v4028_v58 = vpop.eup %4027 }
 0x12d   :  { %8379 = vst [vmem:[#allocation116_spill] sm:$0xff] %v5410_v30  ;;  %v8381_v45 = vmov 0  ;;  %v595_v23 = vand.u32 2147483647, %v5220_v2  ;;  %v601_v17 = vmul.f32 -0.5, %v5272_v15  ;;  %v1485_v27 = vmul.f32 %v5136_v31, %v5410_v30 }
 0x12e   :  { %8380 = vst [vmem:[#allocation117_spill] sm:$0xff] %v5416_v25  ;;  %v8382_v45 = vsel %vm5419_vm12, 4294967295, %v8381_v45  ;;  %v593_v29 = vadd.f32 1.0, %v592_v19  ;;  %v743_v60 = vmul.f32 %v4026_v36, %v5284_v3  ;;  %v5435_v40 = vmul.f32 %v5161_v13, %v584_v33  ;;  %v8400_v25 = vld [vmem:[#allocation42_spill] sm:$0xff] }
 0x12f   :  { %8383 = vst [vmem:[#allocation118_spill] sm:$0xff] %v8382_v45  ;;  %v602_v28 = vadd.f32 1.0, %v601_v17  ;;  %v604_v52 = vand.u32 2147483647, %v5272_v15  ;;  %1546 = vadd.xlane.f32.xlu0 %v1485_v27  ;;  %v5440_v30 = vsel %vm710_vm5, %v4024_v46, %v742_v49  ;;  %vm5445_vm13 = vcmp.lt.f32.partialorder %v595_v23, 0.0004427343 }
 0x130   :  { %8384 = vst [vmem:[#allocation119_spill] sm:$0xff] %v5435_v40  ;;  %8385 = vst [vmem:[#allocation120_spill] sm:$0xff] %v5440_v30  ;;  %v5443_v63 = vmul.f32 %v5220_v2, %v593_v29  ;;  %v610_v13 = vmul.f32 -0.5, %v5284_v3  ;;  %v1422_v33 = vmax.f32 %v5440_v30, 1e-06  ;;  %v5454_v19 = vsel %vm711_vm7, %v4026_v36, %v743_v60  ;;  %v4030_v2 = vpop.eup %4029  ;;  %v8402_v40 = vld [vmem:[#allocation52_spill] sm:$0xff] }
 0x131   :  { %8388 = vst [vmem:[#allocation121_spill] sm:$0xff] %v5454_v19  ;;  %v5456_v17 = vmul.f32 0.6931472, %v4028_v58  ;;  %v5459_v46 = vmul.f32 %v5272_v15, %v602_v28  ;;  %v1423_v29 = vmax.f32 %v5454_v19, 1e-06  ;;  %v793_v27 = vmax.f32 %v4789_v38, 0.0  ;;  %v4032_v49 = vpop.eup %4031 }
 0x132   :  { %vm5462_vm3 = vcmp.lt.f32.partialorder %v604_v52, 0.0004427343  ;;  %v611_v42 = vadd.f32 1.0, %v610_v13  ;;  %v5467_v30 = vmin.f32 %v1422_v33, 0.999999  ;;  %v794_v13 = vmax.f32 %v4811_v62, 0.0 }
 0x133   :  { %8389 = vst [vmem:[#allocation122_spill] sm:$0xff] %v5456_v17  ;;  %v5473_v15 = vmul.f32 0.6931472, %v4030_v2  ;;  %v613_v60 = vand.u32 2147483647, %v5284_v3  ;;  %v4034_v33 = vpop.eup %4033  ;;  %v798_v2 = vmax.f32 %v4920_v61, 0.0  ;;  %v825_v45 = vmul.f32 %v8400_v25, %v4789_v38 }
 0x134   :  { %8392 = vst [vmem:[#allocation123_spill] sm:$0xff] %v5467_v30  ;;  %v5476_v36 = vmin.f32 %v1423_v29, 0.999999  ;;  %v5478_v52 = vmul.f32 0.6931472, %v4032_v49  ;;  %v5481_v28 = vmul.f32 %v5284_v3, %v611_v42  ;;  %v1486_v19 = vmul.f32 %v5183_v54, %v5467_v30  ;;  %v8401_v42 = vld [vmem:[#allocation46_spill] sm:$0xff] }
 0x135   :  { %8393 = vst [vmem:[#allocation124_spill] sm:$0xff] %v5473_v15  ;;  %vm5490_vm5 = vcmp.lt.f32.partialorder %v613_v60, 0.0004427343  ;;  %v795_v29 = vmax.f32 %v4861_v26, 0.0  ;;  %v5501_v49 = vmul.f32 0.6931472, %v4034_v33  ;;  %v827_v21 = vmul.f32 %v8402_v40, %v4861_v26 }
 0x136   :  { %8394 = vst [vmem:[#allocation125_spill] sm:$0xff] %v5476_v36  ;;  %8395 = vst [vmem:[#allocation126_spill] sm:$0xff] %v5478_v52  ;;  %v1487_v3 = vmul.f32 %v5197_v57, %v5476_v36  ;;  %v796_v30 = vmax.f32 %v4868_v44, 0.0  ;;  %1548 = vadd.xlane.f32.xlu1 %v1486_v19  ;;  %v797_v60 = vmax.f32 %v4889_v35, 0.0  ;;  %v8399_v15 = vld [vmem:[#allocation45_spill] sm:$0xff]  ;;  %v800_v5 = vmax.f32 %v4947_v6, 0.0  ;;  %v4036_v17 = vpop.eup %4035 }
 0x137   :  { %8398 = vst [vmem:[#allocation127_spill] sm:$0xff] %v5501_v49  ;;  %v799_v8 = vmax.f32 %v8399_v15, 0.0  ;;  %v801_v33 = vmax.f32 %v4969_v16, 0.0  ;;  %v802_v36 = vmax.f32 %v5010_v51, 0.0  ;;  %v803_v19 = vmax.f32 %v5018_v7, 0.0  ;;  %v4038_v10 = vpop.eup %4037  ;;  %v8406_v38 = vld [vmem:[#allocation20_spill] sm:$0xff] }
 0x138   :  { %1550 = vadd.xlane.f32.xlu0 %v1487_v3  ;;  %v591_v52 = vmul.f32 0.6931472, %v4036_v17  ;;  %v804_v32 = vmax.f32 %v5036_v4, 0.0  ;;  %v805_v43 = vmax.f32 %v5092_v12, 0.0  ;;  %v806_v39 = vmax.f32 %v5123_v41, 0.0  ;;  %v4040_v9 = vpop.eup %4039 }
 0x139   :  { %v807_v3 = vmax.f32 %v5147_v47, 0.0  ;;  %v826_v49 = vmul.f32 %v8401_v42, %v4811_v62  ;;  %v600_v14 = vmul.f32 0.6931472, %v4038_v10  ;;  %v828_v22 = vmul.f32 %v8404_v0, %v4868_v44  ;;  %v8407_v62 = vld [vmem:[#allocation56_spill] sm:$0xff] }
 0x13a   :  { %1604 = vadd.xlane.f32.xlu1 %v8403_v37  ;;  %v597_v17 = vsel %vm5445_vm13, %v5443_v63, %v591_v52  ;;  %v830_v25 = vmul.f32 %v8407_v62, %v4920_v61  ;;  %v831_v26 = vmul.f32 %v5048_v59, %v8399_v15  ;;  %v832_v37 = vmul.f32 %v5054_v18, %v4947_v6  ;;  %v8408_v63 = vld [vmem:[#allocation62_spill] sm:$0xff] }
 0x13b   :  { %v833_v10 = vmul.f32 %v8408_v63, %v4969_v16  ;;  %v606_v44 = vsel %vm5462_vm3, %v5459_v46, %v600_v14  ;;  %v834_v35 = vmul.f32 %v5097_v48, %v5010_v51  ;;  %v835_v61 = vmul.f32 %v5105_v24, %v5018_v7  ;;  %v8409_v14 = vld [vmem:[#allocation22_spill] sm:$0xff]  ;;  %v8410_v7 = vld [vmem:[#allocation23_spill] sm:$0xff] }
 0x13c   :  { %1606 = vadd.xlane.f32.xlu0 %v8406_v38  ;;  %v836_v15 = vmul.f32 %v5107_v56, %v5036_v4  ;;  %v609_v52 = vmul.f32 0.6931472, %v4040_v9  ;;  %v837_v6 = vmul.f32 %v5136_v31, %v5092_v12  ;;  %v838_v16 = vmul.f32 %v5183_v54, %v5123_v41 }
 0x13d   :  { %v839_v23 = vmul.f32 %v5197_v57, %v5147_v47  ;;  %v857_v46 = vsub.f32 %v793_v27, %v825_v45  ;;  %v858_v51 = vsub.f32 %v794_v13, %v826_v49  ;;  %v859_v38 = vsub.f32 %v795_v29, %v827_v21  ;;  %v8411_v27 = vld [vmem:[#allocation24_spill] sm:$0xff]  ;;  %v8412_v21 = vld [vmem:[#allocation85_spill] sm:$0xff] }
 0x13e   :  { %1608 = vadd.xlane.f32.xlu1 %v8409_v14  ;;  %v860_v42 = vsub.f32 %v796_v30, %v828_v22  ;;  %v615_v4 = vsel %vm5490_vm5, %v5481_v28, %v609_v52  ;;  %v861_v9 = vsub.f32 %v797_v60, %v829_v34  ;;  %v862_v12 = vsub.f32 %v798_v2, %v830_v25  ;;  %v8413_v22 = vld [vmem:[#allocation92_spill] sm:$0xff]  ;;  %v8421_v25 = vld [vmem:[#allocation101_spill] sm:$0xff]  ;;  %v8430_v60 = vld [vmem:[#allocation107_spill] sm:$0xff] }
 0x13f   :  { %v863_v59 = vsub.f32 %v799_v8, %v831_v26  ;;  %v864_v62 = vsub.f32 %v800_v5, %v832_v37  ;;  %v865_v41 = vsub.f32 %v801_v33, %v833_v10  ;;  %v866_v55 = vsub.f32 %v802_v36, %v834_v35  ;;  %v8423_v13 = vld [vmem:[#allocation25_spill] sm:$0xff]  ;;  %v8465_v34 = vld [vmem:[#allocation32_spill] sm:$0xff] }
 0x140   :  { %1610 = vadd.xlane.f32.xlu0 %v8410_v7  ;;  %v867_v0 = vsub.f32 %v803_v19, %v835_v61  ;;  %v868_v47 = vsub.f32 %v804_v32, %v836_v15  ;;  %v869_v40 = vsub.f32 %v805_v43, %v837_v6  ;;  %v870_v14 = vsub.f32 %v806_v39, %v838_v16  ;;  %v8417_v39 = vld [vmem:[#allocation99_spill] sm:$0xff]  ;;  %v8420_v43 = vld [vmem:[#allocation93_spill] sm:$0xff]  ;;  %v8461_v16 = vld [vmem:[#allocation88_spill] sm:$0xff] }
 0x141   :  { %v871_v45 = vsub.f32 %v807_v3, %v839_v23  ;;  %v8414_v30 = vsel %vm5216_vm14, %v8412_v21, %v8413_v22  ;;  %v8416_v37 = vsel %vm5235_vm15, %v5233_v20, %v5312_v11  ;;  %v8418_v5 = vsel %vm5245_vm0, %v5265_v50, %v8417_v39  ;;  %v8425_v20 = vld [vmem:[#allocation95_spill] sm:$0xff]  ;;  %v8429_v50 = vld [vmem:[#allocation98_spill] sm:$0xff]  ;;  %v8437_v61 = vld [vmem:[#allocation105_spill] sm:$0xff] }
 0x142   :  { %1612 = vadd.xlane.f32.xlu1 %v8411_v27  ;;  %v5568_v58 = vadd.f32 %v857_v46, %v8414_v30  ;;  %v5575_v8 = vadd.f32 %v858_v51, %v8416_v37  ;;  %v5582_v32 = vadd.f32 %v859_v38, %v8418_v5  ;;  %v8422_v36 = vsel %vm5255_vm1, %v8420_v43, %v8421_v25  ;;  %v8426_v11 = vld [vmem:[#allocation103_spill] sm:$0xff]  ;;  %v8438_v15 = vld [vmem:[#allocation117_spill] sm:$0xff]  ;;  %v8441_v23 = vld [vmem:[#allocation110_spill] sm:$0xff] }
 0x143   :  { %v5589_v28 = vadd.f32 %v860_v42, %v8422_v36  ;;  %v8427_v29 = vsel %vm5280_vm2, %v8425_v20, %v8426_v11  ;;  %v8431_v33 = vsel %vm5305_vm4, %v8429_v50, %v8430_v60  ;;  %v8433_v42 = vld [vmem:[#allocation102_spill] sm:$0xff]  ;;  %v8434_v38 = vld [vmem:[#allocation111_spill] sm:$0xff]  ;;  %v8439_v52 = vsel %vm5367_vm8, %v8437_v61, %v8438_v15  ;;  %v8445_v21 = vld [vmem:[#allocation112_spill] sm:$0xff] }
 0x144   :  { %1614 = vadd.xlane.f32.xlu0 %v8423_v13  ;;  %v5597_v53 = vadd.f32 %v861_v9, %v8427_v29  ;;  %v5604_v19 = vadd.f32 %v862_v12, %v8431_v33  ;;  %v8435_v26 = vsel %vm5349_vm6, %v8433_v42, %v8434_v38  ;;  %v5618_v6 = vadd.f32 %v864_v62, %v8439_v52  ;;  %v8442_v46 = vld [vmem:[#allocation122_spill] sm:$0xff]  ;;  %v8446_v22 = vld [vmem:[#allocation124_spill] sm:$0xff]  ;;  %v8453_v43 = vld [vmem:[#allocation119_spill] sm:$0xff] }
 0x145   :  { %v5611_v10 = vadd.f32 %v863_v59, %v8435_v26  ;;  %v8443_v51 = vsel %vm5373_vm9, %v8441_v23, %v8442_v46  ;;  %v8447_v59 = vsel %vm5398_vm10, %v8445_v21, %v8446_v22  ;;  %v8449_v37 = vld [vmem:[#allocation114_spill] sm:$0xff]  ;;  %v8454_v25 = vld [vmem:[#allocation127_spill] sm:$0xff]  ;;  %v5648_v2 = vadd.f32 %v869_v40, %v597_v17  ;;  %v8458_v26 = vld [vmem:[#allocation77_spill] sm:$0xff] }
 0x146   :  { %v5625_v9 = vadd.f32 %v865_v41, %v8443_v51  ;;  %v5632_v30 = vadd.f32 %v866_v55, %v8447_v59  ;;  %v8450_v39 = vld [vmem:[#allocation126_spill] sm:$0xff]  ;;  %v8455_v41 = vsel %vm5419_vm12, %v8453_v43, %v8454_v25  ;;  %v5650_v20 = vadd.f32 %v870_v14, %v606_v44  ;;  %v8456_v29 = vld [vmem:[#allocation19_spill] sm:$0xff]  ;;  %v8460_v52 = vld [vmem:[#allocation29_spill] sm:$0xff] }
 0x147   :  { %v8451_v62 = vsel %vm5405_vm11, %v8449_v37, %v8450_v39  ;;  %v5646_v36 = vadd.f32 %v868_v47, %v8455_v41  ;;  %v5652_v55 = vadd.f32 %v871_v45, %v615_v4  ;;  %1616 = vadd.xlane.f32.xlu1 %v8456_v29  ;;  %v8457_v47 = vld [vmem:[#allocation28_spill] sm:$0xff]  ;;  %v961_v35 = vsub.f32 1.0, %v8458_v26  ;;  %v8459_v61 = vld [vmem:[#allocation86_spill] sm:$0xff]  ;;  %v8463_v12 = vld [vmem:[#allocation109_spill] sm:$0xff] }
 0x148   :  { %v5639_v5 = vadd.f32 %v867_v0, %v8451_v62  ;;  %1618 = vadd.xlane.f32.xlu0 %v8457_v47  ;;  %v962_v15 = vsub.f32 1.0, %v8459_v61  ;;  %v963_v23 = vsub.f32 1.0, %v8461_v16  ;;  %v8462_v46 = vld [vmem:[#allocation96_spill] sm:$0xff]  ;;  %v965_v21 = vsub.f32 1.0, %v8463_v12  ;;  %v8466_v37 = vld [vmem:[#allocation121_spill] sm:$0xff]  ;;  %v8467_v38 = vld [vmem:[#allocation83_spill] sm:$0xff] }
 0x149   :  { %v964_v51 = vsub.f32 1.0, %v8462_v46  ;;  %v8464_v22 = vld [vmem:[#allocation120_spill] sm:$0xff]  ;;  %v967_v39 = vsub.f32 1.0, %v8466_v37  ;;  %v994_v62 = vmul.f32 2.0, %v8459_v61  ;;  %v995_v1 = vmul.f32 2.0, %v8461_v16  ;;  %v8469_v61 = vld [vmem:[#allocation34_spill] sm:$0xff] }
 0x14a   :  { %v966_v59 = vsub.f32 1.0, %v8464_v22  ;;  %v996_v43 = vmul.f32 2.0, %v8462_v46  ;;  %v997_v25 = vmul.f32 2.0, %v8463_v12  ;;  %v998_v41 = vmul.f32 2.0, %v8464_v22  ;;  %v8468_v4 = vld [vmem:[#allocation84_spill] sm:$0xff]  ;;  %v8470_v17 = vld [vmem:[#allocation69_spill] sm:$0xff] }
 0x14b   :  { %1620 = vadd.xlane.f32.xlu1 %v8460_v52  ;;  %v999_v26 = vmul.f32 2.0, %v8466_v37  ;;  %v1056_v42 = vmul.f32 %v5054_v18, %v8467_v38  ;;  %v3594_v3 = vadd.f32 -1.0, %v994_v62  ;;  %v3595_v33 = vadd.f32 -1.0, %v995_v1  ;;  %v8472_v40 = vld [vmem:[#allocation78_spill] sm:$0xff]  ;;  %v8473_v60 = vld [vmem:[#allocation35_spill] sm:$0xff]  ;;  %v8476_v49 = vld [vmem:[#allocation76_spill] sm:$0xff] }
 0x14c   :  { %1622 = vadd.xlane.f32.xlu0 %v8465_v34  ;;  %v3596_v45 = vadd.f32 -1.0, %v996_v43  ;;  %v1057_v14 = vmul.f32 %v8408_v63, %v8468_v4  ;;  %v3597_v16 = vadd.f32 -1.0, %v997_v25  ;;  %v3598_v44 = vadd.f32 -1.0, %v998_v41  ;;  %v8474_v1 = vld [vmem:[#allocation75_spill] sm:$0xff] }
 0x14d   :  { %v3599_v46 = vadd.f32 -1.0, %v999_v26  ;;  %v8471_v12 = vsub.f32 1.0, %v8470_v17  ;;  %v1058_v37 = vmul.f32 %v5097_v48, %v3594_v3  ;;  %v1059_v38 = vmul.f32 %v5105_v24, %v3595_v33  ;;  %v8477_v3 = vld [vmem:[#allocation40_spill] sm:$0xff]  ;;  %v8494_v34 = vld [vmem:[#allocation59_spill] sm:$0xff] }
 0x14e   :  { %v1060_v62 = vmul.f32 %v5107_v56, %v3596_v45  ;;  %v8475_v43 = vsub.f32 1.0, %v8474_v1  ;;  %v1061_v50 = vmul.f32 %v5136_v31, %v3597_v16  ;;  %v1062_v25 = vmul.f32 %v5183_v54, %v3598_v44  ;;  %v8478_v1 = vld [vmem:[#allocation41_spill] sm:$0xff] }
 0x14f   :  { %1624 = vadd.xlane.f32.xlu1 %v8469_v61  ;;  %v1087_v22 = vadd.f32 %v8472_v40, %v8471_v12  ;;  %v1063_v41 = vmul.f32 %v5197_v57, %v3599_v46  ;;  %v1089_v17 = vadd.f32 %v1057_v14, %v961_v35  ;;  %v1090_v26 = vadd.f32 %v1058_v37, %v962_v15  ;;  %v8480_v46 = vld [vmem:[#allocation64_spill] sm:$0xff]  ;;  %v8483_v37 = vld [vmem:[#allocation43_spill] sm:$0xff] }
 0x150   :  { %1626 = vadd.xlane.f32.xlu0 %v8473_v60  ;;  %v1088_v4 = vadd.f32 %v1056_v42, %v8475_v43  ;;  %v1091_v40 = vadd.f32 %v1059_v38, %v963_v23  ;;  %v1092_v12 = vadd.f32 %v1060_v62, %v964_v51  ;;  %v1118_v0 = vmax.f32 %v8476_v49, 1e-07  ;;  %v8482_v51 = vld [vmem:[#allocation68_spill] sm:$0xff] }
 0x151   :  { %v1093_v33 = vadd.f32 %v1061_v50, %v965_v21  ;;  %v1094_v11 = vadd.f32 %v1062_v25, %v966_v59  ;;  %v1095_v45 = vadd.f32 %v1063_v41, %v967_v39  ;;  %v1119_v60 = vmax.f32 %v1087_v22, 1e-07  ;;  %v8484_v25 = vld [vmem:[#allocation44_spill] sm:$0xff] }
 0x152   :  { %v1120_v42 = vmax.f32 %v1088_v4, 1e-07  ;;  %v1121_v16 = vmax.f32 %v1089_v17, 1e-07  ;;  %v1122_v43 = vmax.f32 %v1090_v26, 1e-07 }
 0x153   :  { %1628 = vadd.xlane.f32.xlu1 %v8477_v3  ;;  %v8479_v44 = vmin.f32 %v5568_v58, 10.0  ;;  %v1123_v35 = vmax.f32 %v1091_v40, 1e-07  ;;  %v1124_v15 = vmax.f32 %v1092_v12, 1e-07  ;;  %v8481_v49 = vmin.f32 %v5575_v8, 10.0 }
 0x154   :  { %1630 = vadd.xlane.f32.xlu0 %v8478_v1  ;;  %v1125_v23 = vmax.f32 %v1093_v33, 1e-07  ;;  %v1126_v21 = vmax.f32 %v1094_v11, 1e-07  ;;  %v1127_v59 = vmax.f32 %v1095_v45, 1e-07 }
 0x155   :  { %v5709_v14 = vmul.f32 %v8480_v46, %v8479_v44  ;;  %v5714_v50 = vmul.f32 %v8482_v51, %v8481_v49  ;;  %v1150_v39 = vmin.f32 %v1118_v0, 1.0  ;;  %v1151_v22 = vmin.f32 %v1119_v60, 1.0  ;;  %v8485_v8 = vld [vmem:[#allocation73_spill] sm:$0xff]  ;;  %v8486_v49 = vld [vmem:[#allocation48_spill] sm:$0xff] }
 0x156   :  { %v1152_v38 = vmin.f32 %v1120_v42, 1.0  ;;  %v1153_v62 = vmin.f32 %v1121_v16, 1.0  ;;  %v1154_v58 = vmin.f32 %v1122_v43, 1.0  ;;  %v1155_v4 = vmin.f32 %v1123_v35, 1.0  ;;  %v8487_v35 = vld [vmem:[#allocation52_spill] sm:$0xff] }
 0x157   :  { %1632 = vadd.xlane.f32.xlu1 %v8483_v37  ;;  %v1156_v41 = vmin.f32 %v1124_v15, 1.0  ;;  %v1157_v17 = vmin.f32 %v1125_v23, 1.0  ;;  %v1158_v26 = vmin.f32 %v1126_v21, 1.0  ;;  %v1159_v40 = vmin.f32 %v1127_v59, 1.0  ;;  %v8488_v15 = vld [vmem:[#allocation50_spill] sm:$0xff]  ;;  %v8490_v59 = vld [vmem:[#allocation55_spill] sm:$0xff] }
 0x158   :  { %1634 = vadd.xlane.f32.xlu0 %v8484_v25  ;;  %v1181_v12 = vsub.f32 1.0, %v8485_v8  ;;  %v1182_v33 = vsub.f32 1.0, %v1150_v39  ;;  %v1183_v44 = vsub.f32 1.0, %v1151_v22  ;;  %v1184_v11 = vsub.f32 1.0, %v1152_v38  ;;  %v8489_v23 = vld [vmem:[#allocation54_spill] sm:$0xff]  ;;  %v8491_v39 = vld [vmem:[#allocation56_spill] sm:$0xff] }
 0x159   :  { %v1185_v45 = vsub.f32 1.0, %v1153_v62  ;;  %v1186_v0 = vsub.f32 1.0, %v1154_v58  ;;  %v1187_v60 = vsub.f32 1.0, %v1155_v4  ;;  %v1188_v46 = vsub.f32 1.0, %v1156_v41  ;;  %v8492_v38 = vld [vmem:[#allocation57_spill] sm:$0xff]  ;;  %v8493_v25 = vld [vmem:[#allocation51_spill] sm:$0xff] }
 0x15a   :  { %v1189_v42 = vsub.f32 1.0, %v1157_v17  ;;  %v1190_v16 = vsub.f32 1.0, %v1158_v26  ;;  %v1191_v43 = vsub.f32 1.0, %v1159_v40  ;;  %v1211_v51 = vmul.f32 0.5, %v8487_v35 }
 0x15b   :  { %1636 = vadd.xlane.f32.xlu1 %v8486_v49  ;;  %v1212_v21 = vmul.f32 0.5, %v8489_v23  ;;  %v1213_v8 = vmul.f32 0.5, %v8490_v59  ;;  %v1214_v22 = vmul.f32 0.5, %v8491_v39  ;;  %v1215_v62 = vmul.f32 0.5, %v8492_v38  ;;  %v8495_v59 = vld [vmem:[#allocation60_spill] sm:$0xff] }
 0x15c   :  { %1638 = vadd.xlane.f32.xlu0 %v8488_v15  ;;  %v1216_v58 = vmul.f32 0.5, %v5054_v18  ;;  %v1217_v4 = vmul.f32 0.5, %v8408_v63  ;;  %v1218_v41 = vmul.f32 0.5, %v5097_v48  ;;  %v1219_v17 = vmul.f32 0.5, %v5105_v24 }
 0x15d   :  { %v1220_v26 = vmul.f32 0.5, %v5107_v56  ;;  %v1221_v40 = vmul.f32 0.5, %v5136_v31  ;;  %v1222_v15 = vmul.f32 0.5, %v5183_v54  ;;  %v1223_v49 = vmul.f32 0.5, %v5197_v57 }
 0x15e   :  { %v1243_v37 = vsub.f32 0.75, %v1211_v51  ;;  %v1244_v1 = vsub.f32 0.75, %v1212_v21  ;;  %v1245_v3 = vsub.f32 0.75, %v1213_v8  ;;  %v1246_v61 = vsub.f32 0.75, %v1214_v22 }
 0x15f   :  { %1640 = vadd.xlane.f32.xlu1 %v8493_v25  ;;  %v1247_v52 = vsub.f32 0.75, %v1215_v62  ;;  %v1248_v47 = vsub.f32 0.75, %v1216_v58  ;;  %v1249_v29 = vsub.f32 0.75, %v1217_v4  ;;  %v1250_v13 = vsub.f32 0.75, %v1218_v41  ;;  %v8496_v25 = vld [vmem:[#allocation61_spill] sm:$0xff] }
 0x160   :  { %1642 = vadd.xlane.f32.xlu0 %v8494_v34  ;;  %v1251_v27 = vsub.f32 0.75, %v1219_v17  ;;  %v1252_v7 = vsub.f32 0.75, %v1220_v26  ;;  %v1253_v24 = vsub.f32 0.75, %v1221_v40  ;;  %v1254_v31 = vsub.f32 0.75, %v1222_v15  ;;  %v8497_v17 = vld [vmem:[#allocation72_spill] sm:$0xff]  ;;  %v8498_v40 = vld [vmem:[#allocation74_spill] sm:$0xff] }
 0x161   :  { %v1255_v63 = vsub.f32 0.75, %v1223_v49  ;;  %v1277_v54 = vmul.f32 %v1181_v12, %v1181_v12  ;;  %v1278_v38 = vmul.f32 %v1182_v33, %v1182_v33  ;;  %v1279_v57 = vmul.f32 %v1183_v44, %v1183_v44 }
 0x162   :  { %v1280_v51 = vmul.f32 %v1184_v11, %v1184_v11  ;;  %v1281_v21 = vmul.f32 %v1185_v45, %v1185_v45  ;;  %v1282_v8 = vmul.f32 %v1186_v0, %v1186_v0  ;;  %v1283_v22 = vmul.f32 %v1187_v60, %v1187_v60  ;;  %v5740_v11 = vpop.xlane.xlu1 %1490  ;;  %v8499_v45 = vld [vmem:[#allocation67_spill] sm:$0xff] }
 0x163   :  { %1644 = vadd.xlane.f32.xlu1 %v8495_v59  ;;  %v1284_v62 = vmul.f32 %v1188_v46, %v1188_v46  ;;  %v1285_v58 = vmul.f32 %v1189_v42, %v1189_v42  ;;  %v1286_v4 = vmul.f32 %v1190_v16, %v1190_v16  ;;  %v1287_v41 = vmul.f32 %v1191_v43, %v1191_v43  ;;  %v5743_v16 = vpop.xlane.xlu0 %1488  ;;  %v8500_v43 = vld [vmem:[#allocation71_spill] sm:$0xff] }
 0x164   :  { %1646 = vadd.xlane.f32.xlu0 %v8496_v25  ;;  %v1307_v26 = vmul.f32 %v8497_v17, %v1243_v37  ;;  %v1308_v15 = vmul.f32 %v8498_v40, %v1244_v1  ;;  %v1309_v49 = vmul.f32 %v1277_v54, %v1245_v3  ;;  %v1310_v12 = vmul.f32 %v1278_v38, %v1246_v61  ;;  %v8521_v40 = vld [vmem:[#allocation100_spill] sm:$0xff] }
 0x165   :  { %v1311_v33 = vmul.f32 %v1279_v57, %v1247_v52  ;;  %v1312_v44 = vmul.f32 %v1280_v51, %v1248_v47  ;;  %v1313_v34 = vmul.f32 %v1281_v21, %v1249_v29  ;;  %v1314_v59 = vmul.f32 %v1282_v8, %v1250_v13  ;;  %v8547_v25 = vld [vmem:[#allocation20_spill] sm:$0xff] }
 0x166   :  { %v1315_v0 = vmul.f32 %v1283_v22, %v1251_v27  ;;  %v1316_v60 = vmul.f32 %v1284_v62, %v1252_v7  ;;  %v1317_v46 = vmul.f32 %v1285_v58, %v1253_v24  ;;  %v1318_v42 = vmul.f32 %v1286_v4, %v1254_v31  ;;  %v8515_v62 = vld [vmem:[#allocation49_spill] sm:$0xff] }
 0x167   :  { %1648 = vadd.xlane.f32.xlu1 %v8499_v45  ;;  %v1319_v37 = vmul.f32 %v1287_v41, %v1255_v63  ;;  %v8501_v54 = vmin.f32 %v5582_v32, 10.0  ;;  %v8502_v57 = vmin.f32 %v5589_v28, 10.0  ;;  %v8503_v13 = vmin.f32 %v5597_v53, 10.0  ;;  %v8517_v58 = vld [vmem:[#allocation81_spill] sm:$0xff]  ;;  %v5779_v41 = vpop.xlane.xlu0 %1494 }
 0x168   :  { %1650 = vadd.xlane.f32.xlu0 %v8500_v43  ;;  %v8504_v52 = vmin.f32 %v5604_v19, 10.0  ;;  %v8505_v24 = vmin.f32 %v5611_v10, 10.0  ;;  %v8506_v7 = vmin.f32 %v5618_v6, 10.0  ;;  %v8507_v63 = vmin.f32 %v5625_v9, 10.0  ;;  %v8512_v10 = vld [vmem:[#allocation79_spill] sm:$0xff]  ;;  %v8548_v45 = vld [vmem:[#allocation65_spill] sm:$0xff] }
 0x169   :  { %v1339_v61 = vmul.f32 %v1307_v26, %v8501_v54  ;;  %v1340_v29 = vmul.f32 %v1308_v15, %v8502_v57  ;;  %v1341_v47 = vmul.f32 %v1309_v49, %v8503_v13  ;;  %v8508_v32 = vmin.f32 %v5632_v30, 10.0  ;;  %v8516_v30 = vld [vmem:[#allocation47_spill] sm:$0xff]  ;;  %v8526_v13 = vld [vmem:[#allocation13_spill] sm:$0xff] }
 0x16a   :  { %v1342_v27 = vmul.f32 %v1310_v12, %v8504_v52  ;;  %v1343_v31 = vmul.f32 %v1311_v33, %v8505_v24  ;;  %v1344_v3 = vmul.f32 %v1312_v44, %v8506_v7  ;;  %v1345_v1 = vmul.f32 %v1313_v34, %v8507_v63  ;;  %v8522_v12 = vld [vmem:[#allocation116_spill] sm:$0xff]  ;;  %v8523_v44 = vld [vmem:[#allocation123_spill] sm:$0xff] }
 0x16b   :  { %v1346_v38 = vmul.f32 %v1314_v59, %v8508_v32  ;;  %v8509_v28 = vmin.f32 %v5639_v5, 10.0  ;;  %v8510_v53 = vmin.f32 %v5646_v36, 10.0  ;;  %v8511_v19 = vmin.f32 %v5648_v2, 10.0  ;;  %1652 = vadd.xlane.f32.xlu1 %v8512_v10  ;;  %v5776_v5 = vpop.xlane.xlu1 %1492  ;;  %v8518_v36 = vld [vmem:[#allocation53_spill] sm:$0xff]  ;;  %v5788_v49 = vpop.xlane.xlu0 %1498  ;;  %v8527_v24 = vld [vmem:[#allocation15_spill] sm:$0xff] }
 0x16c   :  { %v8513_v6 = vmin.f32 %v5650_v20, 10.0  ;;  %v8514_v9 = vmin.f32 %v5652_v55, 10.0  ;;  %v1366_v59 = vadd.f32 %v8516_v30, %v8515_v62  ;;  %1654 = vadd.xlane.f32.xlu0 %v8517_v58  ;;  %v8519_v2 = vld [vmem:[#allocation89_spill] sm:$0xff]  ;;  %v8520_v20 = vld [vmem:[#allocation91_spill] sm:$0xff]  ;;  %v8535_v30 = vld [vmem:[#allocation16_spill] sm:$0xff] }
 0x16d   :  { %v1347_v51 = vmul.f32 %v1315_v0, %v8509_v28  ;;  %v1348_v21 = vmul.f32 %v1316_v60, %v8510_v53  ;;  %v1349_v8 = vmul.f32 %v1317_v46, %v8511_v19  ;;  %v8524_v60 = vld [vmem:[#allocation125_spill] sm:$0xff]  ;;  %v8529_v53 = vld [vmem:[#allocation26_spill] sm:$0xff] }
 0x16e   :  { %v1350_v22 = vmul.f32 %v1318_v42, %v8513_v6  ;;  %v1351_v34 = vmul.f32 %v1319_v37, %v8514_v9  ;;  %v1367_v4 = vadd.f32 %v1366_v59, %v8518_v36  ;;  %v8528_v28 = vld [vmem:[#allocation17_spill] sm:$0xff]  ;;  %v8531_v6 = vld [vmem:[#allocation11_spill] sm:$0xff]  ;;  %v8533_v9 = vld [vmem:[#allocation14_spill] sm:$0xff] }
 0x16f   :  { %1656 = vadd.xlane.f32.xlu1 %v8519_v2  ;;  %v5785_v26 = vpop.xlane.xlu1 %1496  ;;  %v5795_v42 = vpop.xlane.xlu0 %1502  ;;  %v8534_v62 = vld [vmem:[#allocation37_spill] sm:$0xff]  ;;  %v8536_v59 = vld [vmem:[#allocation39_spill] sm:$0xff]  ;;  %v8546_v58 = vld [vmem:[#allocation62_spill] sm:$0xff] }
 0x170   :  { %v1368_v17 = vadd.f32 %v1367_v4, %v5709_v14  ;;  %1658 = vadd.xlane.f32.xlu0 %v8520_v20  ;;  %v8537_v4 = vld [vmem:[#allocation18_spill] sm:$0xff]  ;;  %v8545_v20 = vld [vmem:[#allocation57_spill] sm:$0xff] }
 0x172   :  { %v1369_v55 = vadd.f32 %v1368_v17, %v5714_v50  ;;  %v8525_v50 = vld [vmem:[#allocation12_spill] sm:$0xff] }
 0x173   :  { %1660 = vadd.xlane.f32.xlu1 %v8521_v40  ;;  %v5793_v14 = vpop.xlane.xlu1 %1500 }
 0x174   :  { %v1370_v15 = vadd.f32 %v1369_v55, %v1339_v61  ;;  %1662 = vadd.xlane.f32.xlu0 %v8522_v12  ;;  %v8538_v55 = vld [vmem:[#allocation46_spill] sm:$0xff] }
 0x176   :  { %v1371_v33 = vadd.f32 %v1370_v15, %v1340_v29  ;;  %v5801_v29 = vpop.xlane.xlu0 %1506  ;;  %v8539_v15 = vld [vmem:[#allocation27_spill] sm:$0xff] }
 0x177   :  { %1664 = vadd.xlane.f32.xlu1 %v8523_v44  ;;  %v5798_v61 = vpop.xlane.xlu1 %1504  ;;  %v8544_v44 = vld [vmem:[#allocation55_spill] sm:$0xff] }
 0x178   :  { %v1372_v0 = vadd.f32 %v1371_v33, %v1341_v47  ;;  %1666 = vadd.xlane.f32.xlu0 %v8524_v60 }
 0x17a   :  { %v1373_v46 = vadd.f32 %v1372_v0, %v1342_v27  ;;  %v5806_v63 = vpop.xlane.xlu0 %1510 }
 0x17b   :  { %1720 = vadd.xlane.f32.xlu1 %v8525_v50  ;;  %v5804_v7 = vpop.xlane.xlu1 %1508 }
 0x17c   :  { %v1374_v37 = vadd.f32 %v1373_v46, %v1343_v31  ;;  %v8540_v46 = vld [vmem:[#allocation31_spill] sm:$0xff] }
 0x17e   :  { %v1375_v54 = vadd.f32 %v1374_v37, %v1344_v3  ;;  %v5812_v19 = vpop.xlane.xlu0 %1514 }
 0x17f   :  { %1724 = vadd.xlane.f32.xlu1 %v8526_v13  ;;  %v5809_v3 = vpop.xlane.xlu1 %1512 }
 0x180   :  { %v1376_v57 = vadd.f32 %v1375_v54, %v1345_v1  ;;  %v8541_v54 = vld [vmem:[#allocation36_spill] sm:$0xff] }
 0x182   :  { %v1377_v52 = vadd.f32 %v1376_v57, %v1346_v38  ;;  %v8530_v38 = vld [vmem:[#allocation30_spill] sm:$0xff] }
 0x183   :  { %1728 = vadd.xlane.f32.xlu1 %v8527_v24 }
 0x184   :  { %v1378_v47 = vadd.f32 %v1377_v52, %v1347_v51  ;;  %v5815_v51 = vpop.xlane.xlu1 %1516  ;;  %v8542_v52 = vld [vmem:[#allocation38_spill] sm:$0xff] }
 0x186   :  { %v1379_v27 = vadd.f32 %v1378_v47, %v1348_v21  ;;  %v5818_v21 = vpop.xlane.xlu0 %1518 }
 0x187   :  { %1732 = vadd.xlane.f32.xlu1 %v8528_v28 }
 0x188   :  { %v1380_v32 = vadd.f32 %v1379_v27, %v1349_v8  ;;  %v8532_v8 = vld [vmem:[#allocation33_spill] sm:$0xff] }
 0x18a   :  { %v1381_v31 = vadd.f32 %v1380_v32, %v1350_v22  ;;  %v1521_v22 = vpop.xlane.xlu1 %1520  ;;  %v8543_v32 = vld [vmem:[#allocation42_spill] sm:$0xff] }
 0x18b   :  { %1736 = vadd.xlane.f32.xlu1 %v8529_v53 }
 0x18c   :  { %v1382_v1 = vadd.f32 %v1381_v31, %v1351_v34  ;;  %v1523_v34 = vpop.xlane.xlu0 %1522 }
 0x18e   :  { %1383 = vadd.xlane.f32.xlu0 %v1382_v1  ;;  %v1525_v36 = vpop.xlane.xlu1 %1524 }
 0x18f   :  { %1740 = vadd.xlane.f32.xlu1 %v8530_v38 }
 0x190   :  { %v5826_v17 = vpop.xlane.xlu0 %1526 }
 0x192   :  { %1722 = vadd.xlane.f32.xlu0 %v8531_v6  ;;  %v5830_v33 = vpop.xlane.xlu1 %1528 }
 0x193   :  { %1744 = vadd.xlane.f32.xlu1 %v8532_v8 }
 0x194   :  { %v5833_v0 = vpop.xlane.xlu0 %1530 }
 0x196   :  { %1726 = vadd.xlane.f32.xlu0 %v8533_v9  ;;  %v5837_v37 = vpop.xlane.xlu1 %1532 }
 0x197   :  { %1748 = vadd.xlane.f32.xlu1 %v8534_v62 }
 0x198   :  { %v5840_v57 = vpop.xlane.xlu0 %1534 }
 0x19a   :  { %1730 = vadd.xlane.f32.xlu0 %v8535_v30  ;;  %v1537_v47 = vpop.xlane.xlu1 %1536 }
 0x19b   :  { %1752 = vadd.xlane.f32.xlu1 %v8536_v59  ;;  %v8550_v59 = vld [vmem:[#allocation22_spill] sm:$0xff] }
 0x19c   :  { %v1539_v27 = vpop.xlane.xlu0 %1538 }
 0x19e   :  { %1734 = vadd.xlane.f32.xlu0 %v8537_v4 }
 0x19f   :  { %1756 = vadd.xlane.f32.xlu1 %v8538_v55 }
 0x1a2   :  { %1738 = vadd.xlane.f32.xlu0 %v8539_v15  ;;  %v1541_v31 = vpop.xlane.xlu1 %1540 }
 0x1a3   :  { %1760 = vadd.xlane.f32.xlu1 %v8489_v23  ;;  %v5848_v1 = vpop.xlane.xlu0 %1542 }
 0x1a6   :  { %1742 = vadd.xlane.f32.xlu0 %v8540_v46 }
 0x1a7   :  { %1764 = vadd.xlane.f32.xlu1 %v8491_v39  ;;  %v1552_v39 = vadd.f32 %v5740_v11, %v5743_v16 }
 0x1a9   :  { %v1553_v23 = vadd.f32 %v1552_v39, %v5776_v5  ;;  %v3709_v39 = vpack.i.bf16 %v8533_v9, %v8526_v13 }
 0x1aa   :  { %1746 = vadd.xlane.f32.xlu0 %v8541_v54 }
 0x1ab   :  { %1768 = vadd.xlane.f32.xlu1 %v5054_v18  ;;  %v1554_v11 = vadd.f32 %v1553_v23, %v5779_v41 }
 0x1ac   :  { %v5851_v12 = vpop.xlane.xlu1 %1544 }
 0x1ae   :  { %1750 = vadd.xlane.f32.xlu0 %v8542_v52 }
 0x1af   :  { %1772 = vadd.xlane.f32.xlu1 %v5097_v48  ;;  %v8549_v48 = vld [vmem:[#allocation21_spill] sm:$0xff] }
 0x1b2   :  { %1754 = vadd.xlane.f32.xlu0 %v8543_v32 }
 0x1b3   :  { %1776 = vadd.xlane.f32.xlu1 %v5107_v56 }
 0x1b6   :  { %1758 = vadd.xlane.f32.xlu0 %v8487_v35 }
 0x1b8   :  { %v5853_v40 = vpop.xlane.xlu0 %1546 }
 0x1ba   :  { %1762 = vadd.xlane.f32.xlu0 %v8544_v44 }
 0x1be   :  { %1766 = vadd.xlane.f32.xlu0 %v8545_v20 }
 0x1bf   :  { %v5856_v2 = vpop.xlane.xlu1 %1548 }
 0x1c1   :  { %v5859_v10 = vpop.xlane.xlu0 %1550 }
 0x1c2   :  { %1770 = vadd.xlane.f32.xlu0 %v8546_v58  ;;  %v1565_v58 = vadd.f32 %v5801_v29, %v5798_v61  ;;  %v1578_v29 = vadd.f32 %v1523_v34, %v1521_v22 }
 0x1c3   :  { %v1605_v43 = vpop.xlane.xlu1 %1604 }
 0x1c4   :  { %1928 = vrot.lane.b32.xlu1 %v8547_v25, %s4185_s0  ;;  %v1566_v55 = vadd.f32 %v1565_v58, %v5804_v7  ;;  %v1555_v58 = vadd.f32 %v1554_v11, %v5785_v26  ;;  %v8551_v26 = vld [vmem:[#allocation23_spill] sm:$0xff] }
 0x1c5   :  { %v1607_v56 = vpop.xlane.xlu0 %1606 }
 0x1c6   :  { %1774 = vadd.xlane.f32.xlu0 %v8548_v45  ;;  %v3699_v45 = vpack.i.bf16 %v8531_v6, %v8525_v50  ;;  %v1567_v61 = vadd.f32 %v1566_v55, %v5806_v63  ;;  %v1579_v50 = vadd.f32 %v1578_v29, %v1525_v36  ;;  %v1556_v41 = vadd.f32 %v1555_v58, %v5788_v49 }
 0x1c7   :  { %v1609_v18 = vpop.xlane.xlu1 %1608  ;;  %v1591_v55 = vadd.f32 %v1539_v27, %v1537_v47  ;;  %v3719_v47 = vpack.i.bf16 %v8535_v30, %v8527_v24 }
 0x1c8   :  { %2024 = vrot.lane.b32.xlu1 %v8549_v48, %s4186_s1  ;;  %v1568_v7 = vadd.f32 %v1567_v61, %v5809_v3  ;;  %v1580_v34 = vadd.f32 %v1579_v50, %v5826_v17  ;;  %v1557_v3 = vadd.f32 %v1556_v41, %v5793_v14  ;;  %v8552_v50 = vld [vmem:[#allocation24_spill] sm:$0xff] }
 0x1c9   :  { %v1611_v20 = vpop.xlane.xlu0 %1610  ;;  %v1592_v29 = vadd.f32 %v1591_v55, %v1541_v31 }
 0x1ca   :  { %v1569_v22 = vadd.f32 %v1568_v7, %v5812_v19  ;;  %v1581_v49 = vadd.f32 %v1580_v34, %v5830_v33  ;;  %v1668_v19 = vadd.f32 %v1607_v56, %v1605_v43  ;;  %v1558_v14 = vadd.f32 %v1557_v3, %v5795_v42 }
 0x1cb   :  { %v1613_v44 = vpop.xlane.xlu1 %1612  ;;  %v1593_v56 = vadd.f32 %v1592_v29, %v5848_v1 }
 0x1cc   :  { %2026 = vrot.lane.b32.xlu1 %v8547_v25, %s4186_s1  ;;  %v1570_v61 = vadd.f32 %v1569_v22, %v5815_v51  ;;  %v1669_v27 = vadd.f32 %v1668_v19, %v1609_v18  ;;  %v1582_v33 = vadd.f32 %v1581_v49, %v5833_v0  ;;  %v1559_v43 = vrot.slane %v1558_v14, 4 }
 0x1cd   :  { %v5875_v35 = vpop.xlane.xlu0 %1614  ;;  %v1594_v18 = vadd.f32 %v1593_v56, %v5851_v12  ;;  %v3729_v49 = vpack.i.bf16 %v8537_v4, %v8528_v28  ;;  %v8555_v56 = vld [vmem:[#allocation28_spill] sm:$0xff] }
 0x1ce   :  { %v1571_v51 = vadd.f32 %v1570_v61, %v5818_v21  ;;  %v1670_v31 = vadd.f32 %v1669_v27, %v1611_v20  ;;  %v1583_v42 = vadd.f32 %v1582_v33, %v5837_v37  ;;  %v8553_v21 = vld [vmem:[#allocation25_spill] sm:$0xff]  ;;  %v1560_v1 = vadd.f32 %v1559_v43, %v1558_v14  ;;  %v8554_v61 = vld [vmem:[#allocation19_spill] sm:$0xff] }
 0x1cf   :  { %v1595_v3 = vadd.f32 %v1594_v18, %v5853_v40 }
 0x1d0   :  { %3700 = vrot.lane.b32.xlu1 %v3699_v45, %s4186_s1  ;;  %v5879_v32 = vpop.xlane.xlu1 %1616  ;;  %v1572_v7 = vrot.slane %v1571_v51, 4  ;;  %v1671_v22 = vadd.f32 %v1670_v31, %v1613_v44  ;;  %v1584_v55 = vadd.f32 %v1583_v42, %v5840_v57  ;;  %v1561_v44 = vrot.slane %v1560_v1, 2 }
 0x1d1   :  { %v5882_v16 = vpop.xlane.xlu0 %1618  ;;  %v1596_v40 = vadd.f32 %v1595_v3, %v5856_v2 }
 0x1d2   :  { %v1573_v34 = vadd.f32 %v1572_v7, %v1571_v51  ;;  %v1672_v29 = vadd.f32 %v1671_v22, %v5875_v35  ;;  %v1585_v19 = vrot.slane %v1584_v55, 4 }
 0x1d3   :  { %v1597_v33 = vadd.f32 %v1596_v40, %v5859_v10 }
 0x1d4   :  { %2028 = vrot.lane.b32.xlu1 %v8550_v59, %s4186_s1  ;;  %v1621_v6 = vpop.xlane.xlu1 %1620  ;;  %v1574_v57 = vrot.slane %v1573_v34, 2  ;;  %v1673_v14 = vadd.f32 %v1672_v29, %v5879_v32  ;;  %v1586_v51 = vadd.f32 %v1585_v19, %v1584_v55 }
 0x1d5   :  { %v1623_v5 = vpop.xlane.xlu0 %1622  ;;  %v1598_v32 = vrot.slane %v1597_v33, 4 }
 0x1d6   :  { %v1681_v20 = vadd.f32 %v1623_v5, %v1621_v6  ;;  %v1575_v27 = vadd.f32 %v1574_v57, %v1573_v34  ;;  %v1674_v31 = vadd.f32 %v1673_v14, %v5882_v16  ;;  %v1587_v42 = vrot.slane %v1586_v51, 2  ;;  %v8557_v14 = vld [vmem:[#allocation32_spill] sm:$0xff] }
 0x1d7   :  { %v1599_v3 = vadd.f32 %v1598_v32, %v1597_v33  ;;  %v8174_v32 = vrot.slane %v8549_v48, 1 }
 0x1d8   :  { %3710 = vrot.lane.b32.xlu1 %v3709_v39, %s4186_s1  ;;  %v1625_v23 = vpop.xlane.xlu1 %1624  ;;  %v1576_v7 = vrot.slane %v1575_v27, 1  ;;  %v1675_v22 = vrot.slane %v1674_v31, 4  ;;  %v1588_v55 = vadd.f32 %v1587_v42, %v1586_v51  ;;  %v2267_v51 = vrot.slane %v8549_v48, 7 }
 0x1d9   :  { %v1627_v63 = vpop.xlane.xlu0 %1626  ;;  %v1682_v37 = vadd.f32 %v1681_v20, %v1625_v23  ;;  %v1562_v23 = vadd.f32 %v1561_v44, %v1560_v1  ;;  %v5963_v1 = vpack.i.bf16 %v8539_v15, %v8529_v53  ;;  %v2155_v42 = vrot.slane %v8547_v25, 1 }
 0x1da   :  { %v5967_v34 = vadd.f32 %v1576_v7, %v1575_v27  ;;  %v1676_v57 = vadd.f32 %v1675_v22, %v1674_v31  ;;  %v6002_v7 = vpack.i.bf16 %v8540_v46, %v8530_v38  ;;  %v8561_v22 = vld [vmem:[#allocation34_spill] sm:$0xff] }
 0x1db   :  { %v1683_v6 = vadd.f32 %v1682_v37, %v1627_v63  ;;  %v1563_v43 = vrot.slane %v1562_v23, 1 }
 0x1dc   :  { %1926 = vrot.lane.b32.xlu0 %v8549_v48, %s4185_s0  ;;  %2030 = vrot.lane.b32.xlu1 %v8551_v26, %s4186_s1  ;;  %v1629_v11 = vpop.xlane.xlu1 %1628  ;;  %v2268_v48 = vrot.slane %v8547_v25, 7 }
 0x1dd   :  { %v5900_v36 = vpop.xlane.xlu0 %1630  ;;  %v1684_v2 = vadd.f32 %v1683_v6, %v1629_v11  ;;  %v8556_v11 = vld [vmem:[#allocation29_spill] sm:$0xff]  ;;  %v5965_v16 = vadd.f32 %v1563_v43, %v1562_v23  ;;  %v1600_v6 = vrot.slane %v1599_v3, 2 }
 0x1df   :  { %v1685_v10 = vadd.f32 %v1684_v2, %v5900_v36  ;;  %v8169_v36 = vlaneseq  ;;  %v1836_v29 = vadd.f32 1e-06, %v5965_v16  ;;  %v1677_v2 = vrot.slane %v1676_v57, 2 }
 0x1e0   :  { %3695 = vrot.lane.b32.xlu0 %v3699_v45, %s4185_s0  ;;  %2032 = vrot.lane.b32.xlu1 %v8552_v50, %s4186_s1  ;;  %v5907_v17 = vpop.xlane.xlu1 %1632 }
 0x1e1   :  { %v5912_v58 = vpop.xlane.xlu0 %1634  ;;  %v1686_v37 = vadd.f32 %v1685_v10, %v5907_v17  ;;  %v5978_v40 = vshrl.u32 %v8169_v36, 7  ;;  %v5991_v33 = vmul.f32 1.49, %v1836_v29  ;;  %v6021_v29 = vpack.i.bf16 %v8541_v54, %v8532_v8 }
 0x1e3   :  { %v1687_v17 = vadd.f32 %v1686_v37, %v5912_v58  ;;  %8558 = vst [vmem:[#allocation45_spill] sm:$0xff] %v5991_v33  ;;  %vm2299_vm14 = vcmp.lt.s32.totalorder %v5978_v40, 1  ;;  %v1601_v58 = vadd.f32 %v1600_v6, %v1599_v3  ;;  %vm1918_vm15 = vcmp.gt.s32.totalorder %v5978_v40, 0  ;;  %v8563_v6 = vld [vmem:[#allocation12_spill] sm:$0xff] }
 0x1e4   :  { %1930 = vrot.lane.b32.xlu0 %v8550_v59, %s4185_s0  ;;  %3720 = vrot.lane.b32.xlu1 %v3719_v47, %s4186_s1  ;;  %v1637_v45 = vpop.xlane.xlu1 %1636  ;;  %vm2186_vm0 = vcmp.lt.s32.totalorder %v5978_v40, 7  ;;  %v2330_v8 = vsel %vm2299_vm14, %v2267_v51, %v2268_v48 }
 0x1e5   :  { %v1639_v41 = vpop.xlane.xlu0 %1638  ;;  %v1688_v10 = vrot.slane %v1687_v17, 4 }
 0x1e6   :  { %v1694_v20 = vadd.f32 %v1639_v41, %v1637_v45  ;;  %v1837_v45 = vadd.f32 1e-06, %v5967_v34  ;;  %v1589_v41 = vrot.slane %v1588_v55, 1 }
 0x1e7   :  { %v1689_v36 = vadd.f32 %v1688_v10, %v1687_v17  ;;  %v8566_v17 = vld [vmem:[#allocation39_spill] sm:$0xff]  ;;  %v8567_v10 = vld [vmem:[#allocation42_spill] sm:$0xff] }
 0x1e8   :  { %3705 = vrot.lane.b32.xlu0 %v3709_v39, %s4185_s0  ;;  %2034 = vrot.lane.b32.xlu1 %v8553_v21, %s4186_s1  ;;  %v1641_v0 = vpop.xlane.xlu1 %1640  ;;  %v5994_v31 = vmul.f32 1.49, %v1837_v45  ;;  %v6025_v45 = vpack.i.bf16 %v8542_v52, %v8534_v62  ;;  %v2766_v52 = vrot.slane %v8526_v13, 1  ;;  %v6054_v62 = vpack.i.bf16 %v8567_v10, %v8566_v17 }
 0x1e9   :  { %v1643_v12 = vpop.xlane.xlu0 %1642  ;;  %v1695_v19 = vadd.f32 %v1694_v20, %v1641_v0  ;;  %v8168_v0 = vrot.slane %v8524_v60, 7  ;;  %v1678_v20 = vadd.f32 %v1677_v2, %v1676_v57  ;;  %v2860_v2 = vrot.slane %v8563_v6, 7 }
 0x1ea   :  { %8559 = vst [vmem:[#allocation85_spill] sm:$0xff] %v5994_v31  ;;  %v2156_v60 = vrot.slane %v8550_v59, 1  ;;  %v1690_v17 = vrot.slane %v1689_v36, 2  ;;  %v8573_v10 = vrot.slane %v8563_v6, 1 }
 0x1eb   :  { %v1696_v43 = vadd.f32 %v1695_v19, %v1643_v12  ;;  %v2331_v3 = vsel %vm2299_vm14, %v8168_v0, %v2267_v51  ;;  %v1602_v19 = vrot.slane %v1601_v58, 1 }
 0x1ec   :  { %1932 = vrot.lane.b32.xlu0 %v8551_v26, %s4185_s0  ;;  %2036 = vrot.lane.b32.xlu1 %v8554_v61, %s4186_s1  ;;  %v5931_v39 = vpop.xlane.xlu1 %1644  ;;  %v2348_v57 = vsel %vm1918_vm15, %v2331_v3, 0.0  ;;  %v8565_v3 = vld [vmem:[#allocation11_spill] sm:$0xff] }
 0x1ed   :  { %v5944_v35 = vpop.xlane.xlu0 %1646  ;;  %v1697_v37 = vadd.f32 %v1696_v43, %v5931_v39  ;;  %v2217_v39 = vsel %vm2186_vm0, %v8174_v32, %v2155_v42  ;;  %v8564_v43 = vld [vmem:[#allocation82_spill] sm:$0xff]  ;;  %v1679_v32 = vrot.slane %v1678_v20, 1  ;;  %v2765_v33 = vrot.slane %v8565_v3, 1 }
 0x1ee   :  { %v2861_v54 = vrot.slane %v8565_v3, 7  ;;  %v6058_v25 = vadd.f32 %v1602_v19, %v1601_v58  ;;  %v8571_v46 = vrot.slane %v8564_v43, 7  ;;  %v8572_v3 = vld [vmem:[#allocation35_spill] sm:$0xff]  ;;  %v2380_v19 = vsub.f32 %v2217_v39, %v2348_v57 }
 0x1ef   :  { %v1698_v31 = vadd.f32 %v1697_v37, %v5944_v35  ;;  %v8569_v35 = vld [vmem:[#allocation46_spill] sm:$0xff]  ;;  %v8570_v37 = vld [vmem:[#allocation52_spill] sm:$0xff]  ;;  %v2826_v43 = vsel %vm2186_vm0, %v8573_v10, %v2765_v33 }
 0x1f0   :  { %1934 = vrot.lane.b32.xlu0 %v8552_v50, %s4185_s0  ;;  %3730 = vrot.lane.b32.xlu1 %v3729_v49, %s4186_s1  ;;  %v5940_v5 = vpop.xlane.xlu1 %1648  ;;  %8568 = vst [vmem:[#allocation99_spill] sm:$0xff] %v6058_v25  ;;  %v2923_v38 = vsel %vm2299_vm14, %v8571_v46, %v2860_v2  ;;  %v1680_v25 = vadd.f32 %v1679_v32, %v1678_v20  ;;  %v8574_v32 = vrot.slane %v8551_v26, 1  ;;  %v2862_v20 = vrot.slane %v8526_v13, 7 }
 0x1f1   :  { %v5955_v18 = vpop.xlane.xlu0 %1650  ;;  %v2825_v46 = vsel %vm2186_vm0, %v2765_v33, %v2766_v52  ;;  %v2924_v51 = vsel %vm1918_vm15, %v2923_v38, 0.0  ;;  %v1691_v38 = vadd.f32 %v1690_v17, %v1689_v36 }
 0x1f2   :  { %v1840_v36 = vsub.f32 %v1680_v25, %v5965_v16 }
 0x1f3   :  { %v1692_v25 = vrot.slane %v1691_v38, 1 }
 0x1f4   :  { %3715 = vrot.lane.b32.xlu0 %v3719_v47, %s4185_s0  ;;  %2038 = vrot.lane.b32.xlu1 %v8555_v56, %s4186_s1  ;;  %v5949_v63 = vpop.xlane.xlu1 %1652 }
 0x1f5   :  { %v5981_v23 = vpop.xlane.xlu0 %1654 }
 0x1f6   :  { %v1707_v39 = vadd.f32 %v5981_v23, %v5949_v63  ;;  %v2767_v63 = vrot.slane %v8533_v9, 1  ;;  %v6117_v23 = vmul.f32 %v2380_v19, %v2380_v19 }
 0x1f8   :  { %1936 = vrot.lane.b32.xlu0 %v8553_v21, %s4185_s0  ;;  %2040 = vrot.lane.b32.xlu1 %v8556_v11, %s4186_s1  ;;  %v5959_v47 = vpop.xlane.xlu1 %1656  ;;  %8578 = vst [vmem:[#allocation90_spill] sm:$0xff] %v6117_v23 }
 0x1f9   :  { %v6006_v12 = vpop.xlane.xlu0 %1658  ;;  %v1708_v57 = vadd.f32 %v1707_v39, %v5959_v47  ;;  %v2956_v47 = vsub.f32 %v2826_v43, %v2924_v51 }
 0x1fb   :  { %v1709_v43 = vadd.f32 %v1708_v57, %v6006_v12  ;;  %v6145_v12 = vadd.f32 1e-06, %v1840_v36  ;;  %v6159_v36 = vadd.f32 %v1692_v25, %v1691_v38 }
 0x1fc   :  { %1938 = vrot.lane.b32.xlu0 %v8554_v61, %s4185_s0  ;;  %3740 = vrot.lane.b32.xlu1 %v5963_v1, %s4186_s1  ;;  %v5974_v44 = vpop.xlane.xlu1 %1660 }
 0x1fd   :  { %v6050_v0 = vpop.xlane.xlu0 %1662 }
 0x200   :  { %3725 = vrot.lane.b32.xlu0 %v3729_v49, %s4185_s0  ;;  %2042 = vrot.lane.b32.xlu1 %v8557_v14, %s4186_s1  ;;  %v5987_v27 = vpop.xlane.xlu1 %1664  ;;  %v5996_v49 = vadd.f32 %v1589_v41, %v1588_v55 }
 0x202   :  { %8560 = vst [vmem:[#allocation92_spill] sm:$0xff] %v5996_v49  ;;  %v6028_v41 = vadd.f32 1e-06, %v5996_v49  ;;  %v6064_v49 = vpack.i.bf16 %v8570_v37, %v8569_v35  ;;  %v1699_v37 = vadd.f32 %v1698_v31, %v5940_v5  ;;  %v2215_v5 = vsel %vm2186_vm0, %v2156_v60, %v8574_v32 }
 0x203   :  { %v8575_v31 = vrot.slane %v8550_v59, 7  ;;  %v8579_v35 = vrot.slane %v8527_v24, 1 }
 0x204   :  { %1940 = vrot.lane.b32.xlu0 %v8555_v56, %s4185_s0  ;;  %2044 = vrot.lane.b32.xlu1 %v8561_v22, %s4186_s1  ;;  %v6010_v55 = vpop.xlane.xlu1 %1720  ;;  %8562 = vst [vmem:[#allocation87_spill] sm:$0xff] %v6028_v41 }
 0x205   :  { %v2329_v33 = vsel %vm2299_vm14, %v2268_v48, %v8575_v31  ;;  %v1700_v48 = vadd.f32 %v1699_v37, %v5955_v18  ;;  %v8577_v31 = vlaneseq  ;;  %v2823_v32 = vsel %vm2186_vm0, %v2767_v63, %v8579_v35 }
 0x206   :  { %v2382_v39 = vsub.f32 %v2215_v5, %v2329_v33  ;;  %v2824_v18 = vsel %vm2186_vm0, %v2766_v52, %v2767_v63  ;;  %v2921_v37 = vsel %vm2299_vm14, %v2861_v54, %v2862_v20  ;;  %v2270_v52 = vrot.slane %v8551_v26, 7 }
 0x207   :  { %v6115_v6 = vand.u32 127, %v8577_v31  ;;  %v6147_v33 = vmul.f32 %v2956_v47, %v2956_v47  ;;  %v2958_v57 = vsub.f32 %v2824_v18, %v2921_v37  ;;  %v1710_v47 = vadd.f32 %v1709_v43, %v5974_v44 }
 0x208   :  { %1942 = vrot.lane.b32.xlu0 %v8556_v11, %s4185_s0  ;;  %3750 = vrot.lane.b32.xlu1 %v6002_v7, %s4186_s1  ;;  %v6042_v41 = vpop.xlane.xlu1 %1724  ;;  %v8586_v37 = vrot.slane %v8550_v59, 7  ;;  %v8587_v44 = vrot.slane %v8552_v50, 7  ;;  %v2770_v59 = vrot.slane %v8528_v28, 1 }
 0x209   :  { %8581 = vst [vmem:[#allocation93_spill] sm:$0xff] %v6147_v33  ;;  %v8595_v33 = vrot.slane %v8552_v50, 7  ;;  %vm1908_vm2 = vcmp.lt.s32.totalorder %v6115_v6, 127  ;;  %vm1909_vm4 = vcmp.gt.s32.totalorder %v6115_v6, 0 }
 0x20a   :  { %v2327_v25 = vsel %vm2299_vm14, %v2270_v52, %v8587_v44 }
 0x20c   :  { %3735 = vrot.lane.b32.xlu0 %v5963_v1, %s4185_s0  ;;  %2046 = vrot.lane.b32.xlu1 %v8572_v3, %s4186_s1  ;;  %v6073_v58 = vpop.xlane.xlu1 %1728  ;;  %v2216_v1 = vsel %vm2186_vm0, %v2155_v42, %v2156_v60  ;;  %v2922_v42 = vsel %vm2299_vm14, %v2860_v2, %v2861_v54  ;;  %v6106_v2 = vpop.xlane.xlu0 %1666  ;;  %v8576_v60 = vld [vmem:[#allocation40_spill] sm:$0xff]  ;;  %v8186_v54 = vrot.slane %v8553_v21, 1 }
 0x20d   :  { %v2381_v13 = vsub.f32 %v2216_v1, %v2330_v8  ;;  %v2957_v17 = vsub.f32 %v2825_v46, %v2922_v42  ;;  %v2158_v8 = vrot.slane %v8552_v50, 1  ;;  %v8580_v1 = vrot.slane %v8533_v9, 7 }
 0x20e   :  { %v1701_v46 = vrot.slane %v1700_v48, 4 }
 0x20f   :  { %v2920_v35 = vsel %vm2299_vm14, %v2862_v20, %v8580_v1  ;;  %v6141_v42 = vmul.f32 %v2381_v13, %v2381_v13  ;;  %v6149_v63 = vmul.f32 %v2957_v17, %v2957_v17  ;;  %v6153_v20 = vmul.f32 %v2382_v39, %v2382_v39  ;;  %v8585_v17 = vld [vmem:[#allocation41_spill] sm:$0xff] }
 0x210   :  { %1944 = vrot.lane.b32.xlu0 %v8557_v14, %s4185_s0  ;;  %2048 = vrot.lane.b32.xlu1 %v8576_v60, %s4186_s1  ;;  %v6110_v10 = vpop.xlane.xlu1 %1732  ;;  %v2959_v13 = vsub.f32 %v2823_v32, %v2920_v35  ;;  %v8584_v1 = vrot.slane %v8551_v26, 1  ;;  %v2769_v32 = vrot.slane %v8535_v30, 1  ;;  %v1702_v26 = vadd.f32 %v1701_v46, %v1700_v48 }
 0x211   :  { %8582 = vst [vmem:[#allocation101_spill] sm:$0xff] %v6149_v63  ;;  %8583 = vst [vmem:[#allocation94_spill] sm:$0xff] %v6153_v20  ;;  %v2213_v38 = vsel %vm2186_vm0, %v2158_v8, %v8186_v54  ;;  %v6179_v35 = vmul.f32 %v2958_v57, %v2958_v57  ;;  %v2865_v48 = vrot.slane %v8535_v30, 7  ;;  %v1711_v57 = vadd.f32 %v1710_v47, %v6050_v0 }
 0x212   :  { %v2214_v51 = vsel %vm2186_vm0, %v8584_v1, %v2158_v8  ;;  %v2864_v1 = vrot.slane %v8527_v24, 7  ;;  %v2384_v30 = vsub.f32 %v2213_v38, %v2327_v25  ;;  %v1703_v54 = vrot.slane %v1702_v26, 2 }
 0x213   :  { %8588 = vst [vmem:[#allocation95_spill] sm:$0xff] %v6179_v35  ;;  %v2821_v0 = vsel %vm2186_vm0, %v2769_v32, %v2770_v59  ;;  %v8592_v38 = vrot.slane %v8533_v9, 7  ;;  %v2272_v25 = vrot.slane %v8553_v21, 7  ;;  %v8594_v20 = vrot.slane %v8553_v21, 1 }
 0x214   :  { %1946 = vrot.lane.b32.xlu0 %v8561_v22, %s4185_s0  ;;  %3760 = vrot.lane.b32.xlu1 %v6021_v29, %s4186_s1  ;;  %v6134_v19 = vpop.xlane.xlu1 %1736  ;;  %v2918_v47 = vsel %vm2299_vm14, %v2864_v1, %v2865_v48 }
 0x215   :  { %v2326_v23 = vsel %vm2299_vm14, %v8595_v33, %v2272_v25 }
 0x217   :  { %v1384_v5 = vpop.xlane.xlu0 %1383 }
 0x218   :  { %v1385_v31 = vrot.slane %v1384_v5, 4  ;;  %3745 = vrot.lane.b32.xlu0 %v6002_v7, %s4185_s0  ;;  %2050 = vrot.lane.b32.xlu1 %v8585_v17, %s4186_s1  ;;  %v6164_v18 = vpop.xlane.xlu1 %1740  ;;  %v2328_v7 = vsel %vm2299_vm14, %v8586_v37, %v2270_v52  ;;  %v1841_v52 = vsub.f32 %v6159_v36, %v5967_v34  ;;  %v8590_v37 = vld [vmem:[#allocation43_spill] sm:$0xff] }
 0x21a   :  { %v1386_v39 = vadd.f32 %v1385_v31, %v1384_v5  ;;  %v6187_v5 = vmul.f32 %v2959_v13, %v2959_v13  ;;  %v2383_v31 = vsub.f32 %v2214_v51, %v2328_v7  ;;  %v2160_v7 = vrot.slane %v8554_v61, 1 }
 0x21b   :  { %v1723_v43 = vpop.xlane.xlu0 %1722 }
 0x21c   :  { %v1784_v46 = vadd.f32 %v1723_v43, %v6010_v55  ;;  %1948 = vrot.lane.b32.xlu0 %v8572_v3, %s4185_s0  ;;  %v1387_v8 = vrot.slane %v1386_v39, 2  ;;  %8589 = vst [vmem:[#allocation103_spill] sm:$0xff] %v6187_v5  ;;  %2052 = vrot.lane.b32.xlu1 %v8590_v37, %s4186_s1  ;;  %v6194_v44 = vpop.xlane.xlu1 %1744  ;;  %v8591_v55 = vrot.slane %v8527_v24, 1  ;;  %v2919_v24 = vsel %vm2299_vm14, %v8592_v38, %v2864_v1 }
 0x21d   :  { %v6221_v1 = vadd.s32 56, %v5978_v40  ;;  %v2212_v63 = vsel %vm2186_vm0, %v8594_v20, %v2160_v7  ;;  %v8597_v20 = vld [vmem:[#allocation44_spill] sm:$0xff] }
 0x21e   :  { %v2822_v43 = vsel %vm2186_vm0, %v8591_v55, %v2769_v32  ;;  %v1785_v13 = vadd.f32 %v1784_v46, %v6042_v41  ;;  %v1388_v51 = vadd.f32 %v1387_v8, %v1386_v39  ;;  %v2161_v39 = vrot.slane %v8555_v56, 1 }
 0x21f   :  { %v1727_v36 = vpop.xlane.xlu0 %1726  ;;  %v1712_v32 = vadd.f32 %v1711_v57, %v5987_v27  ;;  %8593 = vst [vmem:[#allocation97_spill] sm:$0xff] %v6221_v1  ;;  %v2771_v8 = vrot.slane %v8537_v4, 1  ;;  %v2866_v46 = vrot.slane %v8528_v28, 7  ;;  %v2960_v27 = vsub.f32 %v2822_v43, %v2919_v24 }
 0x220   :  { %v1786_v55 = vadd.f32 %v1785_v13, %v1727_v36  ;;  %1950 = vrot.lane.b32.xlu0 %v8576_v60, %s4185_s0  ;;  %v1389_v41 = vrot.slane %v1388_v51, 1  ;;  %3770 = vrot.lane.b32.xlu1 %v6025_v45, %s4186_s1  ;;  %v6218_v9 = vpop.xlane.xlu1 %1748  ;;  %v1704_v36 = vadd.f32 %v1703_v54, %v1702_v26  ;;  %v2961_v57 = vsub.f32 %v2821_v0, %v2918_v47 }
 0x221   :  { %v2211_v28 = vsel %vm2186_vm0, %v2160_v7, %v2161_v39  ;;  %v2867_v54 = vrot.slane %v8537_v4, 7  ;;  %v1713_v50 = vadd.f32 %v1712_v32, %v6106_v2  ;;  %vm1917_vm1 = vcmp.lt.s32.totalorder %v6221_v1, 63 }
 0x222   :  { %v1787_v38 = vadd.f32 %v1786_v55, %v6073_v58  ;;  %v1390_v5 = vadd.f32 %v1389_v41, %v1388_v51  ;;  %v8596_v58 = vrot.slane %v8554_v61, 7  ;;  %v2385_v43 = vsub.f32 %v2212_v63, %v2326_v23 }
 0x223   :  { %v1731_v35 = vpop.xlane.xlu0 %1730  ;;  %v2820_v4 = vsel %vm2186_vm0, %v2770_v59, %v2771_v8  ;;  %v2917_v2 = vsel %vm2299_vm14, %v2865_v48, %v2866_v46  ;;  %v6260_v0 = vmul.f32 %v2383_v31, %v2383_v31  ;;  %v8187_v24 = vrot.slane %v8556_v11, 7  ;;  %v8599_v48 = vld [vmem:[#allocation48_spill] sm:$0xff] }
 0x224   :  { %v1788_v13 = vadd.f32 %v1787_v38, %v1731_v35  ;;  %3755 = vrot.lane.b32.xlu0 %v6021_v29, %s4185_s0  ;;  %3679 = vpush %v1390_v5  ;;  %v2325_v21 = vsel %vm2299_vm14, %v2272_v25, %v8596_v58  ;;  %2054 = vrot.lane.b32.xlu1 %v8597_v20, %s4186_s1  ;;  %v6247_v33 = vpop.xlane.xlu1 %1752  ;;  %v8598_v29 = vrot.slane %v8529_v53, 1  ;;  %v2162_v35 = vrot.slane %v8556_v11, 1 }
 0x225   :  { %v1705_v5 = vrot.slane %v1704_v36, 1  ;;  %v2386_v47 = vsub.f32 %v2211_v28, %v2325_v21  ;;  %v6263_v25 = vadd.f32 1e-06, %v1841_v52  ;;  %v6267_v23 = vmul.f32 %v2384_v30, %v2384_v30 }
 0x226   :  { %v2819_v26 = vsel %vm2186_vm0, %v2771_v8, %v8598_v29  ;;  %v1789_v51 = vadd.f32 %v1788_v13, %v6110_v10  ;;  %v2916_v59 = vsel %vm2299_vm14, %v2866_v46, %v2867_v54  ;;  %v1714_v10 = vrot.slane %v1713_v50, 4 }
 0x227   :  { %v1735_v7 = vpop.xlane.xlu0 %1734  ;;  %v2835_v63 = vsel %vm1917_vm1, %v2819_v26, 0.0  ;;  %v2962_v55 = vsub.f32 %v2820_v4, %v2917_v2  ;;  %v2210_v52 = vsel %vm2186_vm0, %v2161_v39, %v2162_v35  ;;  %v2274_v41 = vrot.slane %v8555_v56, 7  ;;  %v8604_v4 = vld [vmem:[#allocation55_spill] sm:$0xff] }
 0x228   :  { %1952 = vrot.lane.b32.xlu0 %v8585_v17, %s4185_s0  ;;  %2056 = vrot.lane.b32.xlu1 %v8599_v48, %s4186_s1  ;;  %v6275_v31 = vpop.xlane.xlu1 %1756  ;;  %v6280_v30 = vadd.f32 %v1705_v5, %v1704_v36  ;;  %v6282_v32 = vmul.f32 %v2960_v27, %v2960_v27  ;;  %v6284_v8 = vmul.f32 %v2961_v57, %v2961_v57  ;;  %v2163_v58 = vrot.slane %v8557_v14, 1 }
 0x229   :  { %v6286_v13 = vmul.f32 %v2385_v43, %v2385_v43  ;;  %v1790_v46 = vadd.f32 %v1789_v51, %v1735_v7  ;;  %v6288_v28 = vmul.f32 %v2386_v47, %v2386_v47  ;;  %v2323_v39 = vsel %vm2299_vm14, %v2274_v41, %v8187_v24  ;;  %v8603_v43 = vld [vmem:[#allocation54_spill] sm:$0xff] }
 0x22a   :  { %8600 = vst [vmem:[#allocation98_spill] sm:$0xff] %v6280_v30  ;;  %v2963_v36 = vsub.f32 %v2835_v63, %v2916_v59  ;;  %v2242_v27 = vsel %vm1917_vm1, %v2210_v52, 0.0  ;;  %v2868_v57 = vrot.slane %v8529_v53, 7  ;;  %v1715_v21 = vadd.f32 %v1714_v10, %v1713_v50  ;;  %v8606_v47 = vld [vmem:[#allocation30_spill] sm:$0xff] }
 0x22b   :  { %v1739_v38 = vpop.xlane.xlu0 %1738  ;;  %v6305_v26 = vmul.f32 %v2962_v55, %v2962_v55  ;;  %v8602_v5 = vrot.slane %v8554_v61, 7  ;;  %v6313_v2 = vpack.i.bf16 %v8604_v4, %v8603_v43  ;;  %v2356_v50 = vsel %vm1918_vm15, %v2323_v39, 0.0 }
 0x22c   :  { %v1797_v56 = vadd.f32 %v1739_v38, %v6134_v19  ;;  %1954 = vrot.lane.b32.xlu0 %v8590_v37, %s4185_s0  ;;  %3780 = vrot.lane.b32.xlu1 %v6054_v62, %s4186_s1  ;;  %v6303_v29 = vpop.xlane.xlu1 %1760  ;;  %v2773_v7 = vrot.slane %v8539_v15, 1  ;;  %v2774_v63 = vrot.slane %v8606_v47, 1  ;;  %v1791_v59 = vrot.slane %v1790_v46, 4 }
 0x22d   :  { %8601 = vst [vmem:[#allocation107_spill] sm:$0xff] %v6305_v26  ;;  %v2324_v19 = vsel %vm2299_vm14, %v8602_v5, %v2274_v41  ;;  %8605 = vst [vmem:[#allocation104_spill] sm:$0xff] %v6313_v2  ;;  %v2209_v61 = vsel %vm2186_vm0, %v2162_v35, %v2163_v58  ;;  %v2869_v55 = vrot.slane %v8539_v15, 7  ;;  %v2164_v52 = vrot.slane %v8561_v22, 1  ;;  %v8608_v5 = vld [vmem:[#allocation50_spill] sm:$0xff] }
 0x22e   :  { %v1798_v51 = vadd.f32 %v1797_v56, %v6164_v18  ;;  %v6326_v18 = vmul.f32 %v2963_v36, %v2963_v36  ;;  %v2915_v38 = vsel %vm2299_vm14, %v2867_v54, %v2868_v57  ;;  %v2276_v39 = vrot.slane %v8557_v14, 7 }
 0x22f   :  { %v1743_v10 = vpop.xlane.xlu0 %1742  ;;  %v1716_v56 = vrot.slane %v1715_v21, 2  ;;  %v2387_v15 = vsub.f32 %v2242_v27, %v2324_v19  ;;  %v2165_v24 = vrot.slane %v8572_v3, 1  ;;  %v2388_v36 = vsub.f32 %v2209_v61, %v2356_v50 }
 0x230   :  { %v1799_v41 = vadd.f32 %v1798_v51, %v1743_v10  ;;  %3765 = vrot.lane.b32.xlu0 %v6025_v45, %s4185_s0  ;;  %8607 = vst [vmem:[#allocation102_spill] sm:$0xff] %v6326_v18  ;;  %2058 = vrot.lane.b32.xlu1 %v8608_v5, %s4186_s1  ;;  %v6333_v35 = vpop.xlane.xlu1 %1764  ;;  %v2277_v51 = vrot.slane %v8561_v22, 7  ;;  %v2817_v10 = vsel %vm2186_vm0, %v2773_v7, %v2774_v63  ;;  %v8609_v54 = vrot.slane %v8529_v53, 1 }
 0x231   :  { %v1792_v4 = vadd.f32 %v1791_v59, %v1790_v46  ;;  %v2914_v27 = vsel %vm2299_vm14, %v2868_v57, %v2869_v55  ;;  %v2932_v19 = vsel %vm1918_vm15, %v2915_v38, 0.0  ;;  %v2208_v22 = vsel %vm2186_vm0, %v2163_v58, %v2164_v52  ;;  %v8611_v46 = vld [vmem:[#allocation31_spill] sm:$0xff]  ;;  %v8612_v59 = vld [vmem:[#allocation33_spill] sm:$0xff] }
 0x232   :  { %v1800_v45 = vadd.f32 %v1799_v41, %v6194_v44  ;;  %v2818_v14 = vsel %vm2186_vm0, %v8609_v54, %v2773_v7  ;;  %v8610_v53 = vrot.slane %v8556_v11, 7  ;;  %v2775_v7 = vrot.slane %v8611_v46, 1  ;;  %v8613_v57 = vld [vmem:[#allocation51_spill] sm:$0xff] }
 0x233   :  { %v1747_v30 = vpop.xlane.xlu0 %1746  ;;  %v2776_v61 = vrot.slane %v8612_v59, 1  ;;  %v2321_v58 = vsel %vm2299_vm14, %v2276_v39, %v2277_v51  ;;  %v2870_v11 = vrot.slane %v8606_v47, 7  ;;  %v2871_v38 = vrot.slane %v8611_v46, 7 }
 0x234   :  { %v1801_v44 = vadd.f32 %v1800_v45, %v1747_v30  ;;  %1956 = vrot.lane.b32.xlu0 %v8597_v20, %s4185_s0  ;;  %v2322_v50 = vsel %vm2299_vm14, %v8610_v53, %v2276_v39  ;;  %1962 = vrot.lane.b32.xlu1 %v8613_v57, %s4185_s0  ;;  %v6360_v41 = vpop.xlane.xlu1 %1768  ;;  %v2207_v30 = vsel %vm2186_vm0, %v2164_v52, %v2165_v24  ;;  %v1793_v43 = vrot.slane %v1792_v4, 2 }
 0x235   :  { %8614 = vst [vmem:[#allocation111_spill] sm:$0xff] %v6360_v41  ;;  %v6368_v45 = vadd.f32 %v1716_v56, %v1715_v21  ;;  %v6371_v53 = vmul.f32 %v2387_v15, %v2387_v15  ;;  %v2964_v26 = vsub.f32 %v2818_v14, %v2932_v19  ;;  %v2965_v41 = vsub.f32 %v2817_v10, %v2914_v27 }
 0x236   :  { %v1802_v54 = vadd.f32 %v1801_v44, %v6218_v9  ;;  %v2389_v2 = vsub.f32 %v2208_v22, %v2322_v50  ;;  %v6375_v52 = vmul.f32 %v2388_v36, %v2388_v36  ;;  %v2390_v39 = vsub.f32 %v2207_v30, %v2321_v58  ;;  %v8620_v58 = vld [vmem:[#allocation57_spill] sm:$0xff] }
 0x237   :  { %8615 = vst [vmem:[#allocation106_spill] sm:$0xff] %v6368_v45  ;;  %v1751_v18 = vpop.xlane.xlu0 %1750  ;;  %v2815_v47 = vsel %vm2186_vm0, %v2775_v7, %v2776_v61  ;;  %v2816_v21 = vsel %vm2186_vm0, %v2774_v63, %v2775_v7  ;;  %v2912_v56 = vsel %vm2299_vm14, %v2870_v11, %v2871_v38  ;;  %v2913_v15 = vsel %vm2299_vm14, %v2869_v55, %v2870_v11 }
 0x238   :  { %1958 = vrot.lane.b32.xlu0 %v8599_v48, %s4185_s0  ;;  %2060 = vrot.lane.b32.xlu1 %v8613_v57, %s4186_s1  ;;  %v6383_v9 = vpop.xlane.xlu1 %1772  ;;  %v2166_v36 = vrot.slane %v8576_v60, 1  ;;  %v2278_v10 = vrot.slane %v8572_v3, 7  ;;  %v1803_v27 = vadd.f32 %v1802_v54, %v1751_v18  ;;  %v2167_v63 = vrot.slane %v8585_v17, 1 }
 0x239   :  { %8616 = vst [vmem:[#allocation105_spill] sm:$0xff] %v6383_v9  ;;  %v2279_v19 = vrot.slane %v8576_v60, 7  ;;  %v1794_v22 = vadd.f32 %v1793_v43, %v1792_v4  ;;  %v6394_v50 = vmul.f32 %v2964_v26, %v2964_v26  ;;  %v6396_v46 = vmul.f32 %v2965_v41, %v2965_v41  ;;  %v8618_v4 = vld [vmem:[#allocation36_spill] sm:$0xff] }
 0x23a   :  { %v6398_v7 = vmul.f32 %v2389_v2, %v2389_v2  ;;  %v6403_v3 = vmul.f32 %v2390_v39, %v2390_v39  ;;  %v2966_v18 = vsub.f32 %v2816_v21, %v2913_v15  ;;  %v2967_v30 = vsub.f32 %v2815_v47, %v2912_v56  ;;  %v8619_v41 = vld [vmem:[#allocation56_spill] sm:$0xff] }
 0x23b   :  { %v1755_v44 = vpop.xlane.xlu0 %1754  ;;  %v2206_v26 = vsel %vm2186_vm0, %v2165_v24, %v2166_v36  ;;  %v2320_v43 = vsel %vm2299_vm14, %v2277_v51, %v2278_v10  ;;  %v2872_v2 = vrot.slane %v8612_v59, 7  ;;  %v6417_v11 = vpack.i.bf16 %v8620_v58, %v8619_v41  ;;  %v8621_v51 = vld [vmem:[#allocation37_spill] sm:$0xff] }
 0x23c   :  { %v1810_v55 = vadd.f32 %v1755_v44, %v6247_v33  ;;  %3775 = vrot.lane.b32.xlu0 %v6054_v62, %s4185_s0  ;;  %3785 = vrot.lane.b32.xlu1 %v6064_v49, %s4185_s0  ;;  %v6407_v60 = vpop.xlane.xlu1 %1776  ;;  %v2777_v33 = vrot.slane %v8618_v4, 1  ;;  %v1804_v62 = vrot.slane %v1803_v27, 4  ;;  %v2205_v54 = vsel %vm2186_vm0, %v2166_v36, %v2167_v63 }
 0x23d   :  { %8617 = vst [vmem:[#allocation117_spill] sm:$0xff] %v6407_v60  ;;  %v2319_v39 = vsel %vm2299_vm14, %v2278_v10, %v2279_v19  ;;  %v1795_v47 = vrot.slane %v1794_v22, 1  ;;  %v2778_v56 = vrot.slane %v8621_v51, 1  ;;  %v2391_v59 = vsub.f32 %v2206_v26, %v2320_v43 }
 0x23e   :  { %v1811_v24 = vadd.f32 %v1810_v55, %v6275_v31  ;;  %v2168_v44 = vrot.slane %v8590_v37, 1  ;;  %v2280_v14 = vrot.slane %v8585_v17, 7  ;;  %v2814_v31 = vsel %vm2186_vm0, %v2776_v61, %v2777_v33 }
 0x23f   :  { %v1759_v21 = vpop.xlane.xlu0 %1758  ;;  %v2911_v10 = vsel %vm2299_vm14, %v2871_v38, %v2872_v2  ;;  %v2169_v55 = vrot.slane %v8597_v20, 1  ;;  %v2281_v15 = vrot.slane %v8590_v37, 7  ;;  %v1805_v26 = vadd.f32 %v1804_v62, %v1803_v27  ;;  %v8625_v62 = vld [vmem:[#allocation38_spill] sm:$0xff] }
 0x240   :  { %1960 = vrot.lane.b32.xlu0 %v8608_v5, %s4185_s0  ;;  %3790 = vrot.lane.b32.xlu1 %v6064_v49, %s4186_s1  ;;  %v6432_v36 = vpop.permute.xlu1 %1928  ;;  %v6440_v43 = vmul.f32 %v2966_v18, %v2966_v18  ;;  %v6442_v58 = vmul.f32 %v2967_v30, %v2967_v30  ;;  %v2392_v17 = vsub.f32 %v2205_v54, %v2319_v39  ;;  %v8623_v61 = vrot.slane %v8618_v4, 7  ;;  %v8626_v39 = vld [vmem:[#allocation39_spill] sm:$0xff] }
 0x241   :  { %v1796_v41 = vadd.f32 %v1795_v47, %v1794_v22  ;;  %v1812_v49 = vadd.f32 %v1811_v24, %v1759_v21  ;;  %v2813_v9 = vsel %vm2186_vm0, %v2777_v33, %v2778_v56  ;;  %v6450_v45 = vmul.f32 %v2391_v59, %v2391_v59 }
 0x242   :  { %8622 = vst [vmem:[#allocation108_spill] sm:$0xff] %v6440_v43  ;;  %v2910_v38 = vsel %vm2299_vm14, %v2872_v2, %v8623_v61  ;;  %v2968_v37 = vsub.f32 %v2814_v31, %v2911_v10  ;;  %v2204_v27 = vsel %vm2186_vm0, %v2167_v63, %v2168_v44  ;;  %v2318_v18 = vsel %vm2299_vm14, %v2279_v19, %v2280_v14 }
 0x243   :  { %v1763_v60 = vpop.xlane.xlu0 %1762  ;;  %8624 = vst [vmem:[#allocation110_spill] sm:$0xff] %v6450_v45  ;;  %v2203_v30 = vsel %vm2186_vm0, %v2168_v44, %v2169_v55  ;;  %v2317_v33 = vsel %vm2299_vm14, %v2280_v14, %v2281_v15  ;;  %v2779_v54 = vrot.slane %v8625_v62, 1  ;;  %v2780_v2 = vrot.slane %v8626_v39, 1  ;;  %v8628_v14 = vld [vmem:[#allocation58_spill] sm:$0xff] }
 0x244   :  { %v2025_v22 = vpop.permute.xlu1 %2024  ;;  %v1806_v47 = vrot.slane %v1805_v26, 2  ;;  %v6462_v24 = vmul.f32 %v2392_v17, %v2392_v17  ;;  %v2969_v21 = vsub.f32 %v2813_v9, %v2910_v38  ;;  %v2170_v63 = vrot.slane %v8599_v48, 1  ;;  %v8629_v44 = vld [vmem:[#allocation62_spill] sm:$0xff] }
 0x245   :  { %v1848_v59 = vsub.f32 %v1796_v41, %v5965_v16  ;;  %v1813_v19 = vadd.f32 %v1812_v49, %v6303_v29  ;;  %v6471_v10 = vpack.i.bf16 %v8629_v44, %v8628_v14  ;;  %v6474_v17 = vmul.f32 %v2968_v37, %v2968_v37 }
 0x246   :  { %8627 = vst [vmem:[#allocation122_spill] sm:$0xff] %v6462_v24  ;;  %v2393_v9 = vsub.f32 %v2204_v27, %v2318_v18  ;;  %v2394_v38 = vsub.f32 %v2203_v30, %v2317_v33  ;;  %v2811_v16 = vsel %vm2186_vm0, %v2779_v54, %v2780_v2  ;;  %v2874_v29 = vrot.slane %v8621_v51, 7 }
 0x247   :  { %v1767_v31 = vpop.xlane.xlu0 %1766  ;;  %v2875_v41 = vrot.slane %v8625_v62, 7  ;;  %v2282_v49 = vrot.slane %v8597_v20, 7  ;;  %v1807_v45 = vadd.f32 %v1806_v47, %v1805_v26  ;;  %v6481_v43 = vmul.f32 %v2969_v21, %v2969_v21 }
 0x248   :  { %v2027_v24 = vpop.permute.xlu1 %2026  ;;  %v2202_v61 = vsel %vm2186_vm0, %v2169_v55, %v2170_v63  ;;  %v8193_v37 = vrot.slane %v8608_v5, 1  ;;  %v1852_v27 = vadd.f32 1e-06, %v1848_v59  ;;  %v1814_v18 = vadd.f32 %v1813_v19, %v1763_v60 }
 0x249   :  { %v8631_v33 = vrot.slane %v8599_v48, 7  ;;  %v2876_v62 = vrot.slane %v8626_v39, 7  ;;  %v6493_v20 = vmul.f32 %v2393_v9, %v2393_v9  ;;  %v6495_v26 = vmul.f32 %v2394_v38, %v2394_v38  ;;  %v8634_v9 = vld [vmem:[#allocation42_spill] sm:$0xff] }
 0x24a   :  { %v2812_v55 = vsel %vm2186_vm0, %v2778_v56, %v2779_v54  ;;  %v2843_v47 = vsel %vm1917_vm1, %v2811_v16, 0.0  ;;  %v2908_v21 = vsel %vm2299_vm14, %v2874_v29, %v2875_v41  ;;  %v8633_v59 = vrot.slane %v8618_v4, 7 }
 0x24b   :  { %v6486_v30 = vpop.xlane.xlu0 %1770  ;;  %v2315_v51 = vsel %vm2299_vm14, %v2282_v49, %v8631_v33  ;;  %8632 = vst [vmem:[#allocation112_spill] sm:$0xff] %v6495_v26  ;;  %v2250_v39 = vsel %vm1917_vm1, %v2202_v61, 0.0  ;;  %v2781_v38 = vrot.slane %v8634_v9, 1  ;;  %v1808_v33 = vrot.slane %v1807_v45, 1  ;;  %v8636_v61 = vld [vmem:[#allocation46_spill] sm:$0xff] }
 0x24c   :  { %8630 = vst [vmem:[#allocation113_spill] sm:$0xff] %v6486_v30  ;;  %v3701_v60 = vpop.permute.xlu1 %3700  ;;  %v2909_v19 = vsel %vm2299_vm14, %v8633_v59, %v2874_v29  ;;  %v2316_v56 = vsel %vm2299_vm14, %v2281_v15, %v2282_v49  ;;  %v2201_v54 = vsel %vm2186_vm0, %v2170_v63, %v8193_v37  ;;  %v2364_v4 = vsel %vm1918_vm15, %v2315_v51, 0.0  ;;  %v8637_v51 = vld [vmem:[#allocation63_spill] sm:$0xff] }
 0x24d   :  { %v1860_v16 = vmul.f32 0.49, %v1852_v27  ;;  %v1815_v29 = vadd.f32 %v1814_v18, %v6333_v35  ;;  %v2907_v1 = vsel %vm2299_vm14, %v2875_v41, %v2876_v62  ;;  %v2091_v15 = vsel %vm1909_vm4, %v2027_v24, 0.0  ;;  %v8638_v27 = vld [vmem:[#allocation65_spill] sm:$0xff] }
 0x24e   :  { %v2970_v49 = vsub.f32 %v2812_v55, %v2909_v19  ;;  %v2971_v14 = vsub.f32 %v2843_v47, %v2908_v21  ;;  %v8194_v63 = vrot.slane %v8634_v9, 7  ;;  %v2395_v30 = vsub.f32 %v2250_v39, %v2316_v56  ;;  %v8639_v47 = vld [vmem:[#allocation45_spill] sm:$0xff] }
 0x24f   :  { %v6519_v59 = vpop.xlane.xlu0 %1774  ;;  %v6529_v26 = vpack.i.bf16 %v8638_v27, %v8637_v51  ;;  %v2396_v35 = vsub.f32 %v2201_v54, %v2364_v4  ;;  %v2810_v18 = vsel %vm2186_vm0, %v2780_v2, %v2781_v38  ;;  %v1809_v44 = vadd.f32 %v1808_v33, %v1807_v45 }
 0x250   :  { %8635 = vst [vmem:[#allocation124_spill] sm:$0xff] %v6519_v59  ;;  %v2029_v37 = vpop.permute.xlu1 %2028  ;;  %v1993_v41 = vsel %vm1908_vm2, %v6432_v36, 0.0  ;;  %v2090_v24 = vsel %vm1909_vm4, %v2025_v22, 0.0  ;;  %v2940_v55 = vsel %vm1918_vm15, %v2907_v1, 0.0  ;;  %v1864_v21 = vadd.f32 %v1860_v16, %v8639_v47 }
 0x251   :  { %v1816_v19 = vadd.f32 %v1815_v29, %v1767_v31  ;;  %v2123_v56 = vsub.f32 %v1993_v41, %v2091_v15  ;;  %v8640_v54 = vrot.slane %v8636_v61, 1  ;;  %v3703_v36 = vunpack.i.h.bf16 %v3701_v60 }
 0x252   :  { %v3702_v33 = vunpack.i.l.bf16 %v3701_v60  ;;  %v2906_v1 = vsel %vm2299_vm14, %v2876_v62, %v8194_v63  ;;  %v6551_v31 = vmul.f32 %v2970_v49, %v2970_v49  ;;  %v2972_v16 = vsub.f32 %v2810_v18, %v2940_v55 }
 0x253   :  { %v1927_v39 = vpop.permute.xlu0 %1926  ;;  %v2809_v45 = vsel %vm2186_vm0, %v2781_v38, %v8640_v54  ;;  %v1849_v29 = vsub.f32 %v1809_v44, %v5967_v34  ;;  %v6554_v15 = vmul.f32 %v2971_v14, %v2971_v14  ;;  %v6556_v38 = vmul.f32 %v2395_v30, %v2395_v30 }
 0x254   :  { %v1992_v2 = vsel %vm1908_vm2, %v1927_v39, 0.0  ;;  %v3711_v4 = vpop.permute.xlu1 %3710  ;;  %v6558_v41 = vmul.f32 %v2396_v35, %v2396_v35  ;;  %v6561_v60 = vadd.f32 %v1864_v21, %v6145_v12  ;;  %v1817_v39 = vrot.slane %v1816_v19, 4 }
 0x255   :  { %v2122_v22 = vsub.f32 %v1992_v2, %v2090_v24  ;;  %v2413_v27 = vmul.f32 %v2123_v56, %v2123_v56  ;;  %v2973_v62 = vsub.f32 %v2809_v45, %v2906_v1  ;;  %v2701_v49 = vsel %vm1909_vm4, %v3703_v36, 0.0  ;;  %s3680_s23 = spop %3679 }
 0x256   :  { %v2700_v34 = vsel %vm1909_vm4, %v3702_v33, 0.0  ;;  %v6567_v30 = vmul.f32 %v2972_v16, %v2972_v16  ;;  %v2172_v35 = vrot.slane %v8613_v57, 1  ;;  %v2284_v12 = vrot.slane %v8608_v5, 7 }
 0x257   :  { %v3696_v54 = vpop.permute.xlu0 %3695  ;;  %v2412_v14 = vmul.f32 %v2122_v22, %v2122_v22  ;;  %v1853_v18 = vadd.f32 1e-06, %v1849_v29  ;;  %v2092_v56 = vsel %vm1909_vm4, %v2029_v37, 0.0  ;;  %v1818_v45 = vadd.f32 %v1817_v39, %v1816_v19 }
 0x258   :  { %v3698_v24 = vunpack.i.h.bf16 %v3696_v54  ;;  %v3697_v2 = vunpack.i.l.bf16 %v3696_v54  ;;  %v2031_v44 = vpop.permute.xlu1 %2030  ;;  %8641 = vst [vmem:[#allocation115_spill] sm:$0xff] %v6567_v30  ;;  %v2477_v36 = vadd.f32 %v6141_v42, %v2413_v27  ;;  %v3713_v54 = vunpack.i.h.bf16 %v3711_v4 }
 0x259   :  { %v3712_v29 = vunpack.i.l.bf16 %v3711_v4  ;;  %v6580_v63 = vmul.f32 %v2973_v62, %v2973_v62  ;;  %v1861_v37 = vmul.f32 0.49, %v1853_v18  ;;  %v8644_v19 = vrot.slane %v8608_v5, 1  ;;  %v8646_v4 = vld [vmem:[#allocation59_spill] sm:$0xff]  ;;  %v8650_v62 = vld [vmem:[#allocation85_spill] sm:$0xff] }
 0x25a   :  { %v2605_v55 = vsel %vm1908_vm2, %v3698_v24, 0.0  ;;  %v2604_v21 = vsel %vm1908_vm2, %v3697_v2, 0.0  ;;  %v8643_v24 = vld [vmem:[#allocation90_spill] sm:$0xff]  ;;  %v8645_v27 = vrot.slane %v8599_v48, 7 }
 0x25b   :  { %v1931_v33 = vpop.permute.xlu0 %1930  ;;  %v2732_v1 = vsub.f32 %v2604_v21, %v2700_v34  ;;  %v2733_v22 = vsub.f32 %v2605_v55, %v2701_v49  ;;  %8642 = vst [vmem:[#allocation114_spill] sm:$0xff] %v6580_v63  ;;  %v2476_v51 = vadd.f32 %v8643_v24, %v2412_v14  ;;  %v2200_v42 = vsel %vm2186_vm0, %v8644_v19, %v2172_v35  ;;  %v8647_v14 = vld [vmem:[#allocation93_spill] sm:$0xff] }
 0x25c   :  { %v1994_v16 = vsel %vm1908_vm2, %v1931_v33, 0.0  ;;  %v2033_v30 = vpop.permute.xlu1 %2032  ;;  %v2314_v39 = vsel %vm2299_vm14, %v8645_v27, %v2284_v12  ;;  %v1819_v49 = vrot.slane %v1818_v45, 2  ;;  %v2509_v34 = vadd.f32 1e-06, %v2477_v36  ;;  %v8648_v21 = vld [vmem:[#allocation101_spill] sm:$0xff]  ;;  %v8649_v33 = vld [vmem:[#allocation70_spill] sm:$0xff] }
 0x25d   :  { %v2988_v47 = vmul.f32 %v2732_v1, %v2732_v1  ;;  %v2989_v2 = vmul.f32 %v2733_v22, %v2733_v22  ;;  %v2124_v59 = vsub.f32 %v1994_v16, %v2092_v56  ;;  %v2703_v22 = vsel %vm1909_vm4, %v3713_v54, 0.0 }
 0x25e   :  { %v2702_v48 = vsel %vm1909_vm4, %v3712_v29, 0.0  ;;  %v2508_v16 = vadd.f32 1e-06, %v2476_v51  ;;  %v2397_v36 = vsub.f32 %v2200_v42, %v2314_v39  ;;  %v6613_v39 = vadd.f32 %v1819_v49, %v1818_v45 }
 0x25f   :  { %v3052_v55 = vadd.f32 %v8647_v14, %v2988_v47  ;;  %v3053_v56 = vadd.f32 %v8648_v21, %v2989_v2  ;;  %1778 = vadd.xlane.f32.xlu0 %v8649_v33  ;;  %v3706_v18 = vpop.permute.xlu0 %3705  ;;  %v1865_v47 = vadd.f32 %v1861_v37, %v8650_v62  ;;  %v2414_v14 = vmul.f32 %v2124_v59, %v2124_v59  ;;  %v8651_v2 = vld [vmem:[#allocation66_spill] sm:$0xff] }
 0x260   :  { %v3708_v5 = vunpack.i.h.bf16 %v3706_v18  ;;  %v3707_v1 = vunpack.i.l.bf16 %v3706_v18  ;;  %v3721_v27 = vpop.permute.xlu1 %3720  ;;  %v6602_v21 = vpack.i.bf16 %v8649_v33, %v8651_v2  ;;  %v6619_v33 = vmul.f32 %v2397_v36, %v2397_v36 }
 0x261   :  { %v3084_v24 = vadd.f32 1e-06, %v3052_v55  ;;  %v3085_v19 = vadd.f32 1e-06, %v3053_v56  ;;  %v2093_v55 = vsel %vm1909_vm4, %v2031_v44, 0.0  ;;  %v8652_v56 = vld [vmem:[#allocation80_spill] sm:$0xff]  ;;  %v6640_v2 = vadd.f32 %v1865_v47, %v6263_v25 }
 0x262   :  { %v2607_v51 = vsel %vm1908_vm2, %v3708_v5, 0.0  ;;  %v2606_v29 = vsel %vm1908_vm2, %v3707_v1, 0.0  ;;  %8653 = vst [vmem:[#allocation126_spill] sm:$0xff] %v6619_v33  ;;  %v8654_v5 = vrot.slane %v8646_v4, 1  ;;  %v2094_v44 = vsel %vm1909_vm4, %v2033_v30, 0.0  ;;  %v8663_v47 = vld [vmem:[#allocation52_spill] sm:$0xff] }
 0x263   :  { %v6605_v63 = vmul.f32 %v3084_v24, %v2508_v16  ;;  %v6607_v54 = vmul.f32 %v3085_v19, %v2509_v34  ;;  %v1933_v42 = vpop.permute.xlu0 %1932  ;;  %v2734_v59 = vsub.f32 %v2606_v29, %v2702_v48  ;;  %v2735_v37 = vsub.f32 %v2607_v51, %v2703_v22  ;;  %v8658_v48 = vld [vmem:[#allocation94_spill] sm:$0xff]  ;;  %8659 = vst [vmem:[#allocation127_spill] sm:$0xff] %v6640_v2 }
 0x264   :  { %1780 = vadd.xlane.f32.xlu1 %v8652_v56  ;;  %v2035_v18 = vpop.permute.xlu1 %2034  ;;  %v6625_v1 = vsel %vm2186_vm0, %v2172_v35, %v8654_v5  ;;  %v1995_v45 = vsel %vm1908_vm2, %v1933_v42, 0.0  ;;  %v8656_v49 = vrot.slane %v8613_v57, 7  ;;  %v2478_v36 = vadd.f32 %v8658_v48, %v2414_v14  ;;  %v8660_v57 = vld [vmem:[#allocation82_spill] sm:$0xff] }
 0x265   :  { %4041 = vrsqrt.f32 %v6605_v63  ;;  %8655 = vst [vmem:[#allocation118_spill] sm:$0xff] %v6625_v1  ;;  %v2990_v51 = vmul.f32 %v2734_v59, %v2734_v59  ;;  %v2991_v29 = vmul.f32 %v2735_v37, %v2735_v37  ;;  %v2125_v5 = vsub.f32 %v1995_v45, %v2093_v55  ;;  %v8661_v1 = vld [vmem:[#allocation95_spill] sm:$0xff] }
 0x266   :  { %4043 = vrsqrt.f32 %v6607_v54  ;;  %v6636_v22 = vsel %vm2299_vm14, %v2284_v12, %v8656_v49  ;;  %v3723_v14 = vunpack.i.h.bf16 %v3721_v27  ;;  %v8662_v37 = vld [vmem:[#allocation103_spill] sm:$0xff]  ;;  %v3722_v25 = vunpack.i.l.bf16 %v3721_v27 }
 0x267   :  { %8657 = vst [vmem:[#allocation119_spill] sm:$0xff] %v6636_v22  ;;  %v1935_v35 = vpop.permute.xlu0 %1934  ;;  %v3054_v12 = vadd.f32 %v8661_v1, %v2990_v51  ;;  %v2415_v49 = vmul.f32 %v2125_v5, %v2125_v5  ;;  %v3055_v55 = vadd.f32 %v8662_v37, %v2991_v29  ;;  %v6652_v42 = vadd.f32 %v3084_v24, %v2508_v16 }
 0x268   :  { %v1996_v30 = vsel %vm1908_vm2, %v1935_v35, 0.0  ;;  %1782 = vadd.xlane.f32.xlu1 %v8660_v57  ;;  %v2037_v59 = vpop.permute.xlu1 %2036  ;;  %v2510_v35 = vadd.f32 1e-06, %v2478_v36  ;;  %v6655_v51 = vadd.f32 %v3085_v19, %v2509_v34  ;;  %vm3182_vm6 = vcmp.eq.f32.partialorder %v6605_v63, inf }
 0x269   :  { %v2126_v22 = vsub.f32 %v1996_v30, %v2094_v44  ;;  %v3086_v2 = vadd.f32 1e-06, %v3054_v12  ;;  %v2479_v62 = vadd.f32 %v6260_v0, %v2415_v49  ;;  %vm3184_vm7 = vcmp.eq.f32.partialorder %v6605_v63, 0.0 }
 0x26a   :  { %v2705_v16 = vsel %vm1909_vm4, %v3723_v14, 0.0  ;;  %v3087_v0 = vadd.f32 1e-06, %v3055_v55  ;;  %v2704_v34 = vsel %vm1909_vm4, %v3722_v25, 0.0  ;;  %v2095_v19 = vsel %vm1909_vm4, %v2035_v18, 0.0 }
 0x26b   :  { %v3716_v1 = vpop.permute.xlu0 %3715  ;;  %v6659_v27 = vadd.f32 %v3086_v2, %v2510_v35  ;;  %v6661_v29 = vmul.f32 %v3086_v2, %v2510_v35  ;;  %v2511_v30 = vadd.f32 1e-06, %v2479_v62  ;;  %v2416_v36 = vmul.f32 %v2126_v22, %v2126_v22 }
 0x26c   :  { %v3718_v44 = vunpack.i.h.bf16 %v3716_v1  ;;  %v3717_v5 = vunpack.i.l.bf16 %v3716_v1  ;;  %v6665_v24 = vpop.permute.xlu1 %3730  ;;  %v3185_v12 = vand.u32 2147483648, %v6605_v63  ;;  %vm3189_vm8 = vcmp.eq.f32.partialorder %v6607_v54, inf }
 0x26d   :  { %4045 = vrsqrt.f32 %v6661_v29  ;;  %v6676_v49 = vadd.f32 %v3087_v0, %v2511_v30  ;;  %v6678_v14 = vmul.f32 %v3087_v0, %v2511_v30  ;;  %vm3191_vm9 = vcmp.eq.f32.partialorder %v6607_v54, 0.0 }
 0x26e   :  { %v2609_v62 = vsel %vm1908_vm2, %v3718_v44, 0.0  ;;  %v2608_v22 = vsel %vm1908_vm2, %v3717_v5, 0.0  ;;  %v3192_v44 = vand.u32 2147483648, %v6607_v54  ;;  %v2480_v30 = vadd.f32 %v6267_v23, %v2416_v36 }
 0x26f   :  { %v1937_v2 = vpop.permute.xlu0 %1936  ;;  %v2736_v37 = vsub.f32 %v2608_v22, %v2704_v34  ;;  %v2737_v55 = vsub.f32 %v2609_v62, %v2705_v16  ;;  %4047 = vrsqrt.f32 %v6678_v14  ;;  %v2096_v0 = vsel %vm1909_vm4, %v2037_v59, 0.0 }
 0x270   :  { %v1997_v18 = vsel %vm1908_vm2, %v1937_v2, 0.0  ;;  %v2039_v35 = vpop.permute.xlu1 %2038  ;;  %v3733_v62 = vunpack.i.h.bf16 %v6665_v24  ;;  %v3732_v22 = vunpack.i.l.bf16 %v6665_v24  ;;  %vm3196_vm10 = vcmp.eq.f32.partialorder %v6661_v29, inf }
 0x271   :  { %v2127_v25 = vsub.f32 %v1997_v18, %v2095_v19  ;;  %v2992_v2 = vmul.f32 %v2736_v37, %v2736_v37  ;;  %v2993_v45 = vmul.f32 %v2737_v55, %v2737_v55  ;;  %vm3198_vm11 = vcmp.eq.f32.partialorder %v6661_v29, 0.0 }
 0x272   :  { %v4042_v1 = vpop.eup %4041  ;;  %vm3203_vm12 = vcmp.eq.f32.partialorder %v6678_v14, inf  ;;  %vm3205_vm13 = vcmp.eq.f32.partialorder %v6678_v14, 0.0 }
 0x273   :  { %v4044_v5 = vpop.eup %4043  ;;  %v3181_v48 = vmul.f32 %v4042_v1, %v6605_v63  ;;  %v1939_v33 = vpop.permute.xlu0 %1938  ;;  %v2417_v34 = vmul.f32 %v2127_v25, %v2127_v25  ;;  %v3056_v59 = vadd.f32 %v6282_v32, %v2992_v2  ;;  %v3057_v36 = vadd.f32 %v6284_v8, %v2993_v45 }
 0x274   :  { %v3188_v16 = vmul.f32 %v4044_v5, %v6607_v54  ;;  %v1998_v19 = vsel %vm1908_vm2, %v1939_v33, 0.0  ;;  %v2041_v37 = vpop.permute.xlu1 %2040 }
 0x275   :  { %v3183_v23 = vsel %vm3182_vm6, %v6605_v63, %v3181_v48  ;;  %v2481_v18 = vadd.f32 %v6286_v13, %v2417_v34  ;;  %1964 = vrot.lane.b32.xlu0 %v8646_v4, %s4185_s0  ;;  %v2128_v48 = vsub.f32 %v1998_v19, %v2096_v0  ;;  %v2512_v13 = vadd.f32 1e-06, %v2480_v30 }
 0x276   :  { %v3186_v33 = vsel %vm3184_vm7, %v3185_v12, %v3183_v23  ;;  %v3190_v24 = vsel %vm3189_vm8, %v6607_v54, %v3188_v16  ;;  %v3088_v45 = vadd.f32 1e-06, %v3056_v59  ;;  %v3089_v1 = vadd.f32 1e-06, %v3057_v36 }
 0x277   :  { %v3193_v32 = vsel %vm3191_vm9, %v3192_v44, %v3190_v24  ;;  %v3404_v8 = vmul.f32 2.0, %v3186_v33  ;;  %v3726_v55 = vpop.permute.xlu0 %3725  ;;  %v2513_v63 = vadd.f32 1e-06, %v2481_v18  ;;  %v3199_v30 = vand.u32 2147483648, %v6661_v29 }
 0x278   :  { %v3405_v25 = vmul.f32 2.0, %v3193_v32  ;;  %v3728_v12 = vunpack.i.h.bf16 %v3726_v55  ;;  %v6714_v2 = vadd.f32 %v3088_v45, %v2512_v13  ;;  %v6716_v34 = vmul.f32 %v3088_v45, %v2512_v13  ;;  %v6720_v54 = vpop.permute.xlu1 %3740 }
 0x279   :  { %v3436_v5 = vsub.f32 %v6652_v42, %v3404_v8  ;;  %v3727_v0 = vunpack.i.l.bf16 %v3726_v55  ;;  %2062 = vrot.lane.b32.xlu0 %v8646_v4, %s4186_s1  ;;  %v6724_v16 = vadd.f32 %v3089_v1, %v2513_v63  ;;  %v6726_v19 = vmul.f32 %v3089_v1, %v2513_v63  ;;  %v8664_v42 = vld [vmem:[#allocation60_spill] sm:$0xff]  ;;  %v8665_v55 = vld [vmem:[#allocation67_spill] sm:$0xff] }
 0x27a   :  { %v3437_v44 = vsub.f32 %v6655_v51, %v3405_v25  ;;  %2064 = vrot.lane.b32.xlu1 %v8664_v42, %s4186_s1  ;;  %4049 = vrsqrt.f32 %v6716_v34  ;;  %v2418_v23 = vmul.f32 %v2128_v48, %v2128_v48  ;;  %v2707_v36 = vsel %vm1909_vm4, %v3733_v62, 0.0  ;;  %v4046_v51 = vpop.eup %4045 }
 0x27b   :  { %v1941_v59 = vpop.permute.xlu0 %1940  ;;  %v2706_v18 = vsel %vm1909_vm4, %v3732_v22, 0.0  ;;  %4051 = vrsqrt.f32 %v6726_v19  ;;  %v2097_v24 = vsel %vm1909_vm4, %v2039_v35, 0.0  ;;  %v3195_v32 = vmul.f32 %v4046_v51, %v6661_v29 }
 0x27c   :  { %v3468_v33 = vadd.f32 %v3437_v44, %v3436_v5  ;;  %v2611_v48 = vsel %vm1908_vm2, %v3728_v12, 0.0  ;;  %v2610_v62 = vsel %vm1908_vm2, %v3727_v0, 0.0  ;;  %v6747_v22 = vpop.permute.xlu1 %2042  ;;  %v3206_v8 = vand.u32 2147483648, %v6678_v14  ;;  %v4048_v25 = vpop.eup %4047 }
 0x27d   :  { %1966 = vrot.lane.b32.xlu0 %v8664_v42, %s4185_s0  ;;  %v1999_v35 = vsel %vm1908_vm2, %v1941_v59, 0.0  ;;  %v2738_v13 = vsub.f32 %v2610_v62, %v2706_v18  ;;  %v2739_v45 = vsub.f32 %v2611_v48, %v2707_v36  ;;  %v3197_v1 = vsel %vm3196_vm10, %v6661_v29, %v3195_v32  ;;  %v8666_v32 = vld [vmem:[#allocation104_spill] sm:$0xff] }
 0x27e   :  { %1970 = vrot.lane.b32.xlu1 %v8665_v55, %s4185_s0  ;;  %v2482_v63 = vadd.f32 %v6288_v28, %v2418_v23  ;;  %v2129_v5 = vsub.f32 %v1999_v35, %v2097_v24  ;;  %v2098_v0 = vsel %vm1909_vm4, %v2041_v37, 0.0  ;;  %v3200_v44 = vsel %vm3198_vm11, %v3199_v30, %v3197_v1  ;;  %v8667_v37 = vld [vmem:[#allocation107_spill] sm:$0xff]  ;;  %v8668_v24 = vld [vmem:[#allocation102_spill] sm:$0xff] }
 0x27f   :  { %v1943_v12 = vpop.permute.xlu0 %1942  ;;  %v3202_v59 = vmul.f32 %v4048_v25, %v6678_v14  ;;  %v2994_v36 = vmul.f32 %v2738_v13, %v2738_v13  ;;  %v2995_v18 = vmul.f32 %v2739_v45, %v2739_v45  ;;  %v3406_v51 = vmul.f32 2.0, %v3200_v44 }
 0x280   :  { %v2000_v48 = vsel %vm1908_vm2, %v1943_v12, 0.0  ;;  %v2419_v62 = vmul.f32 %v2129_v5, %v2129_v5  ;;  %v3743_v28 = vunpack.i.h.bf16 %v6720_v54  ;;  %v6768_v23 = vpop.permute.xlu1 %2044  ;;  %vm3210_vm3 = vcmp.eq.f32.partialorder %v6716_v34, inf }
 0x281   :  { %3795 = vrot.lane.b32.xlu0 %v8666_v32, %s4185_s0  ;;  %v3204_v29 = vsel %vm3203_vm12, %v6678_v14, %v3202_v59  ;;  %v3058_v30 = vadd.f32 %v8667_v37, %v2994_v36  ;;  %v3059_v35 = vadd.f32 %v8668_v24, %v2995_v18  ;;  %v2130_v13 = vsub.f32 %v2000_v48, %v2098_v0 }
 0x282   :  { %3805 = vrot.lane.b32.xlu1 %v6417_v11, %s4185_s0  ;;  %v3438_v45 = vsub.f32 %v6659_v27, %v3406_v51  ;;  %v3207_v25 = vsel %vm3205_vm13, %v3206_v8, %v3204_v29  ;;  %vm3212_vm5 = vcmp.eq.f32.partialorder %v6716_v34, 0.0  ;;  %v2514_v1 = vadd.f32 1e-06, %v2482_v63  ;;  %v8669_v51 = vld [vmem:[#allocation71_spill] sm:$0xff] }
 0x283   :  { %v2483_v12 = vadd.f32 %v6371_v53, %v2419_v62  ;;  %v3736_v5 = vpop.permute.xlu0 %3735  ;;  %v3407_v44 = vmul.f32 2.0, %v3207_v25  ;;  %v3090_v59 = vadd.f32 1e-06, %v3058_v30  ;;  %v3091_v36 = vadd.f32 1e-06, %v3059_v35 }
 0x284   :  { %v3742_v18 = vunpack.i.l.bf16 %v6720_v54  ;;  %v3469_v0 = vadd.f32 %v3468_v33, %v3438_v45  ;;  %v3738_v37 = vunpack.i.h.bf16 %v3736_v5  ;;  %v3737_v24 = vunpack.i.l.bf16 %v3736_v5  ;;  %v6786_v27 = vpop.permute.xlu1 %3750 }
 0x285   :  { %v2515_v48 = vadd.f32 1e-06, %v2483_v12  ;;  %3800 = vrot.lane.b32.xlu0 %v8666_v32, %s4186_s1  ;;  %v3439_v14 = vsub.f32 %v6676_v49, %v3407_v44  ;;  %v6789_v8 = vadd.f32 %v3090_v59, %v2514_v1  ;;  %v6791_v53 = vmul.f32 %v3090_v59, %v2514_v1  ;;  %v8670_v1 = vld [vmem:[#allocation61_spill] sm:$0xff] }
 0x286   :  { %v2420_v63 = vmul.f32 %v2130_v13, %v2130_v13  ;;  %1972 = vrot.lane.b32.xlu1 %v8669_v51, %s4185_s0  ;;  %v3213_v54 = vand.u32 2147483648, %v6716_v34  ;;  %vm3217_vm6 = vcmp.eq.f32.partialorder %v6726_v19, inf  ;;  %v2709_v49 = vsel %vm1909_vm4, %v3743_v28, 0.0 }
 0x287   :  { %v6797_v33 = vadd.f32 %v3091_v36, %v2515_v48  ;;  %v6799_v62 = vmul.f32 %v3091_v36, %v2515_v48  ;;  %v1945_v32 = vpop.permute.xlu0 %1944  ;;  %v4050_v29 = vpop.eup %4049  ;;  %v3470_v30 = vadd.f32 %v3469_v0, %v3439_v14  ;;  %4053 = vrsqrt.f32 %v6791_v53  ;;  %v8671_v36 = vld [vmem:[#allocation79_spill] sm:$0xff] }
 0x288   :  { %v2708_v35 = vsel %vm1909_vm4, %v3742_v18, 0.0  ;;  %v4052_v13 = vpop.eup %4051  ;;  %v3209_v45 = vmul.f32 %v4050_v29, %v6716_v34  ;;  %vm3219_vm7 = vcmp.eq.f32.partialorder %v6726_v19, 0.0  ;;  %v3220_v25 = vand.u32 2147483648, %v6726_v19  ;;  %v6812_v12 = vpop.permute.xlu1 %2046 }
 0x289   :  { %4055 = vrsqrt.f32 %v6799_v62  ;;  %1968 = vrot.lane.b32.xlu0 %v8670_v1, %s4185_s0  ;;  %v3216_v5 = vmul.f32 %v4052_v13, %v6726_v19  ;;  %v2613_v28 = vsel %vm1908_vm2, %v3738_v37, 0.0  ;;  %v2612_v44 = vsel %vm1908_vm2, %v3737_v24, 0.0 }
 0x28a   :  { %v2484_v59 = vadd.f32 %v6375_v52, %v2420_v63  ;;  %1974 = vrot.lane.b32.xlu1 %v8671_v36, %s4185_s0  ;;  %v3211_v18 = vsel %vm3210_vm3, %v6716_v34, %v3209_v45  ;;  %v2001_v0 = vsel %vm1908_vm2, %v1945_v32, 0.0  ;;  %v2740_v48 = vsub.f32 %v2612_v44, %v2708_v35 }
 0x28b   :  { %v2741_v14 = vsub.f32 %v2613_v28, %v2709_v49  ;;  %v1947_v29 = vpop.permute.xlu0 %1946  ;;  %v3214_v37 = vsel %vm3212_vm5, %v3213_v54, %v3211_v18  ;;  %v3218_v52 = vsel %vm3217_vm6, %v6726_v19, %v3216_v5  ;;  %v2099_v63 = vsel %vm1909_vm4, %v6747_v22, 0.0 }
 0x28c   :  { %v2002_v24 = vsel %vm1908_vm2, %v1947_v29, 0.0  ;;  %v3408_v13 = vmul.f32 2.0, %v3214_v37  ;;  %v3221_v32 = vsel %vm3219_vm7, %v3220_v25, %v3218_v52  ;;  %v2996_v49 = vmul.f32 %v2740_v48, %v2740_v48  ;;  %v6841_v34 = vpop.permute.xlu1 %2048 }
 0x28d   :  { %v2997_v35 = vmul.f32 %v2741_v14, %v2741_v14  ;;  %2066 = vrot.lane.b32.xlu0 %v8670_v1, %s4186_s1  ;;  %v3409_v54 = vmul.f32 2.0, %v3221_v32  ;;  %v2131_v45 = vsub.f32 %v2001_v0, %v2099_v63  ;;  %v2100_v5 = vsel %vm1909_vm4, %v6768_v23, 0.0 }
 0x28e   :  { %v3753_v28 = vunpack.i.h.bf16 %v6786_v27  ;;  %3815 = vrot.lane.b32.xlu1 %v6471_v10, %s4185_s0  ;;  %v8672_v19 = vrot.slane %v6613_v39, 1  ;;  %v3440_v25 = vsub.f32 %v6714_v2, %v3408_v13  ;;  %v3060_v44 = vadd.f32 %v6394_v50, %v2996_v49 }
 0x28f   :  { %v3746_v18 = vpop.permute.xlu0 %3745  ;;  %v2132_v0 = vsub.f32 %v2002_v24, %v2100_v5  ;;  %v3441_v48 = vsub.f32 %v6724_v16, %v3409_v54  ;;  %v3061_v23 = vadd.f32 %v6396_v46, %v2997_v35  ;;  %v2421_v14 = vmul.f32 %v2131_v45, %v2131_v45  ;;  %v8673_v16 = vld [vmem:[#allocation81_spill] sm:$0xff] }
 0x290   :  { %v6852_v22 = vadd.f32 %v8672_v19, %v6613_v39  ;;  %v3748_v29 = vunpack.i.h.bf16 %v3746_v18  ;;  %v3471_v37 = vadd.f32 %v3470_v30, %v3440_v25  ;;  %vm3224_vm8 = vcmp.eq.f32.partialorder %v6791_v53, inf  ;;  %v6861_v39 = vpop.permute.xlu1 %3760 }
 0x291   :  { %v2516_v52 = vadd.f32 1e-06, %v2484_v59  ;;  %v3092_v63 = vadd.f32 1e-06, %v3060_v44  ;;  %2068 = vrot.lane.b32.xlu0 %v8665_v55, %s4186_s1  ;;  %vm3226_vm9 = vcmp.eq.f32.partialorder %v6791_v53, 0.0  ;;  %v2485_v50 = vadd.f32 %v6398_v7, %v2421_v14 }
 0x292   :  { %v3747_v2 = vunpack.i.l.bf16 %v3746_v18  ;;  %v2711_v46 = vsel %vm1909_vm4, %v3753_v28, 0.0  ;;  %1976 = vrot.lane.b32.xlu1 %v8673_v16, %s4185_s0  ;;  %v3472_v30 = vadd.f32 %v3471_v37, %v3441_v48  ;;  %v2615_v13 = vsel %vm1908_vm2, %v3748_v29, 0.0  ;;  %v8674_v48 = vld [vmem:[#allocation89_spill] sm:$0xff] }
 0x293   :  { %v6869_v24 = vadd.f32 %v3092_v63, %v2516_v52  ;;  %v6871_v59 = vmul.f32 %v3092_v63, %v2516_v52  ;;  %v1949_v32 = vpop.permute.xlu0 %1948  ;;  %v3093_v49 = vadd.f32 1e-06, %v3061_v23  ;;  %v2517_v35 = vadd.f32 1e-06, %v2485_v50 }
 0x294   :  { %v3752_v7 = vunpack.i.l.bf16 %v6786_v27  ;;  %v2743_v54 = vsub.f32 %v2615_v13, %v2711_v46  ;;  %v4054_v45 = vpop.eup %4053  ;;  %v3227_v5 = vand.u32 2147483648, %v6791_v53  ;;  %vm3231_vm10 = vcmp.eq.f32.partialorder %v6799_v62, inf  ;;  %v2051_v19 = vpop.permute.xlu1 %2050 }
 0x295   :  { %4057 = vrsqrt.f32 %v6871_v59  ;;  %v2422_v28 = vmul.f32 %v2132_v0, %v2132_v0  ;;  %3810 = vrot.lane.b32.xlu0 %v6417_v11, %s4186_s1  ;;  %v3223_v44 = vmul.f32 %v4054_v45, %v6791_v53  ;;  %vm3233_vm11 = vcmp.eq.f32.partialorder %v6799_v62, 0.0 }
 0x296   :  { %v4056_v25 = vpop.eup %4055  ;;  %v6883_v18 = vadd.f32 %v3093_v49, %v2517_v35  ;;  %v6885_v27 = vmul.f32 %v3093_v49, %v2517_v35  ;;  %1978 = vrot.lane.b32.xlu1 %v8674_v48, %s4185_s0  ;;  %v3234_v0 = vand.u32 2147483648, %v6799_v62  ;;  %v2710_v11 = vsel %vm1909_vm4, %v3752_v7, 0.0 }
 0x297   :  { %v3230_v23 = vmul.f32 %v4056_v25, %v6799_v62  ;;  %v2999_v14 = vmul.f32 %v2743_v54, %v2743_v54  ;;  %v1951_v29 = vpop.permute.xlu0 %1950  ;;  %v3225_v37 = vsel %vm3224_vm8, %v6791_v53, %v3223_v44  ;;  %v2614_v52 = vsel %vm1908_vm2, %v3747_v2, 0.0 }
 0x298   :  { %4059 = vrsqrt.f32 %v6885_v27  ;;  %v2101_v63 = vsel %vm1909_vm4, %v6812_v12, 0.0  ;;  %v3228_v50 = vsel %vm3226_vm9, %v3227_v5, %v3225_v37  ;;  %v2486_v13 = vadd.f32 %v6403_v3, %v2422_v28  ;;  %v6910_v35 = vpop.permute.xlu1 %2052 }
 0x299   :  { %v3232_v46 = vsel %vm3231_vm10, %v6799_v62, %v3230_v23  ;;  %v2742_v49 = vsub.f32 %v2614_v52, %v2710_v11  ;;  %2070 = vrot.lane.b32.xlu0 %v8669_v51, %s4186_s1  ;;  %v3410_v2 = vmul.f32 2.0, %v3228_v50  ;;  %v2003_v53 = vsel %vm1908_vm2, %v1949_v32, 0.0  ;;  %v8677_v11 = vld [vmem:[#allocation108_spill] sm:$0xff] }
 0x29a   :  { %v3235_v7 = vsel %vm3233_vm11, %v3234_v0, %v3232_v46  ;;  %v3063_v12 = vadd.f32 %v6442_v58, %v2999_v14  ;;  %3825 = vrot.lane.b32.xlu1 %v6529_v26, %s4185_s0  ;;  %v2133_v45 = vsub.f32 %v2003_v53, %v2101_v63  ;;  %v2102_v28 = vsel %vm1909_vm4, %v6841_v34, 0.0  ;;  %v8678_v46 = vld [vmem:[#allocation91_spill] sm:$0xff] }
 0x29b   :  { %v3411_v54 = vmul.f32 2.0, %v3235_v7  ;;  %v2998_v3 = vmul.f32 %v2742_v49, %v2742_v49  ;;  %v3756_v5 = vpop.permute.xlu0 %3755  ;;  %v3442_v25 = vsub.f32 %v6789_v8, %v3410_v2  ;;  %v2004_v62 = vsel %vm1908_vm2, %v1951_v29, 0.0  ;;  %v8679_v2 = vld [vmem:[#allocation110_spill] sm:$0xff] }
 0x29c   :  { %v3758_v44 = vunpack.i.h.bf16 %v3756_v5  ;;  %v8675_v32 = vrot.slane %v8663_v47, 1  ;;  %v8676_v58 = vrot.slane %v8636_v61, 1  ;;  %v2423_v37 = vmul.f32 %v2133_v45, %v2133_v45  ;;  %v6937_v8 = vpop.permute.xlu1 %3770 }
 0x29d   :  { %v3443_v0 = vsub.f32 %v6797_v33, %v3411_v54  ;;  %v3062_v14 = vadd.f32 %v8677_v11, %v2998_v3  ;;  %v2134_v34 = vsub.f32 %v2004_v62, %v2102_v28  ;;  %2072 = vrot.lane.b32.xlu0 %v8671_v36, %s4186_s1  ;;  %v3473_v29 = vadd.f32 %v3472_v30, %v3442_v25 }
 0x29e   :  { %v6931_v23 = vsel %vm2186_vm0, %v8676_v58, %v8675_v32  ;;  %v2518_v52 = vadd.f32 1e-06, %v2486_v13  ;;  %v3095_v63 = vadd.f32 1e-06, %v3063_v12  ;;  %v3763_v50 = vunpack.i.h.bf16 %v6861_v39  ;;  %1980 = vrot.lane.b32.xlu1 %v8678_v46, %s4185_s0 }
 0x29f   :  { %v3094_v49 = vadd.f32 1e-06, %v3062_v14  ;;  %v2487_v33 = vadd.f32 %v8679_v2, %v2423_v37  ;;  %v3757_v7 = vunpack.i.l.bf16 %v3756_v5  ;;  %v1953_v53 = vpop.permute.xlu0 %1952  ;;  %v3762_v54 = vunpack.i.l.bf16 %v6861_v39 }
 0x2a0   :  { %v3474_v3 = vadd.f32 %v3473_v29, %v3443_v0  ;;  %v2617_v45 = vsel %vm1908_vm2, %v3758_v44, 0.0  ;;  %v2713_v30 = vsel %vm1909_vm4, %v3763_v50, 0.0  ;;  %v2103_v13 = vsel %vm1909_vm4, %v2051_v19, 0.0  ;;  %v6958_v39 = vpop.permute.xlu1 %2054  ;;  %v8680_v0 = vld [vmem:[#allocation100_spill] sm:$0xff] }
 0x2a1   :  { %v6950_v12 = vadd.f32 %v3094_v49, %v2518_v52  ;;  %v6952_v28 = vmul.f32 %v3094_v49, %v2518_v52  ;;  %v2519_v25 = vadd.f32 1e-06, %v2487_v33  ;;  %v2005_v5 = vsel %vm1908_vm2, %v1953_v53, 0.0  ;;  %3820 = vrot.lane.b32.xlu0 %v6471_v10, %s4186_s1 }
 0x2a2   :  { %v4058_v62 = vpop.eup %4057  ;;  %v2424_v44 = vmul.f32 %v2134_v34, %v2134_v34  ;;  %v2712_v32 = vsel %vm1909_vm4, %v3762_v54, 0.0  ;;  %v2745_v58 = vsub.f32 %v2617_v45, %v2713_v30  ;;  %v2135_v19 = vsub.f32 %v2005_v5, %v2103_v13  ;;  %1982 = vrot.lane.b32.xlu1 %v8680_v0, %s4185_s0 }
 0x2a3   :  { %v3237_v11 = vmul.f32 %v4058_v62, %v6871_v59  ;;  %vm3238_vm12 = vcmp.eq.f32.partialorder %v6871_v59, inf  ;;  %vm3240_vm13 = vcmp.eq.f32.partialorder %v6871_v59, 0.0  ;;  %4061 = vrsqrt.f32 %v6952_v28  ;;  %v1955_v10 = vpop.permute.xlu0 %1954 }
 0x2a4   :  { %v3241_v14 = vand.u32 2147483648, %v6871_v59  ;;  %v6969_v37 = vadd.f32 %v3095_v63, %v2519_v25  ;;  %v6971_v34 = vmul.f32 %v3095_v63, %v2519_v25  ;;  %v2616_v29 = vsel %vm1908_vm2, %v3757_v7, 0.0  ;;  %v6979_v33 = vpop.permute.xlu1 %2056  ;;  %v8681_v63 = vld [vmem:[#allocation122_spill] sm:$0xff] }
 0x2a5   :  { %v4060_v52 = vpop.eup %4059  ;;  %v3239_v50 = vsel %vm3238_vm12, %v6871_v59, %v3237_v11  ;;  %vm3245_vm3 = vcmp.eq.f32.partialorder %v6885_v27, inf  ;;  %v2744_v49 = vsub.f32 %v2616_v29, %v2712_v32  ;;  %v3001_v2 = vmul.f32 %v2745_v58, %v2745_v58  ;;  %2074 = vrot.lane.b32.xlu0 %v8673_v16, %s4186_s1 }
 0x2a6   :  { %v3242_v53 = vsel %vm3240_vm13, %v3241_v14, %v3239_v50  ;;  %v3244_v54 = vmul.f32 %v4060_v52, %v6885_v27  ;;  %4063 = vrsqrt.f32 %v6971_v34  ;;  %v2488_v45 = vadd.f32 %v8681_v63, %v2424_v44  ;;  %3835 = vrot.lane.b32.xlu1 %v6602_v21, %s4185_s0  ;;  %v8682_v44 = vld [vmem:[#allocation92_spill] sm:$0xff] }
 0x2a7   :  { %v3412_v59 = vmul.f32 2.0, %v3242_v53  ;;  %vm3247_vm5 = vcmp.eq.f32.partialorder %v6885_v27, 0.0  ;;  %v3248_v7 = vand.u32 2147483648, %v6885_v27  ;;  %v3000_v30 = vmul.f32 %v2744_v49, %v2744_v49  ;;  %v3766_v13 = vpop.permute.xlu0 %3765  ;;  %v8683_v50 = vld [vmem:[#allocation116_spill] sm:$0xff] }
 0x2a8   :  { %v3246_v25 = vsel %vm3245_vm3, %v6885_v27, %v3244_v54  ;;  %v3065_v5 = vadd.f32 %v6481_v43, %v3001_v2  ;;  %v2425_v62 = vmul.f32 %v2135_v19, %v2135_v19  ;;  %v2104_v32 = vsel %vm1909_vm4, %v6910_v35, 0.0  ;;  %v6999_v52 = vpop.permute.xlu1 %3780 }
 0x2a9   :  { %v1850_v58 = vsub.f32 %v6852_v22, %v8682_v44  ;;  %v3444_v11 = vsub.f32 %v6869_v24, %v3412_v59  ;;  %v3249_v14 = vsel %vm3247_vm5, %v3248_v7, %v3246_v25  ;;  %v3064_v29 = vadd.f32 %v6474_v17, %v3000_v30  ;;  %2076 = vrot.lane.b32.xlu0 %v8674_v48, %s4186_s1 }
 0x2aa   :  { %v3413_v27 = vmul.f32 2.0, %v3249_v14  ;;  %vm3252_vm6 = vcmp.eq.f32.partialorder %v6952_v28, inf  ;;  %v2520_v43 = vadd.f32 1e-06, %v2488_v45  ;;  %v2006_v35 = vsel %vm1908_vm2, %v1955_v10, 0.0  ;;  %1984 = vrot.lane.b32.xlu1 %v8683_v50, %s4185_s0 }
 0x2ab   :  { %v2489_v19 = vadd.f32 %v6493_v20, %v2425_v62  ;;  %v3475_v24 = vadd.f32 %v3474_v3, %v3444_v11  ;;  %v3096_v49 = vadd.f32 1e-06, %v3064_v29  ;;  %v3768_v17 = vunpack.i.h.bf16 %v3766_v13  ;;  %v1957_v53 = vpop.permute.xlu0 %1956 }
 0x2ac   :  { %v2136_v2 = vsub.f32 %v2006_v35, %v2104_v32  ;;  %v3445_v54 = vsub.f32 %v6883_v18, %v3413_v27  ;;  %v3097_v63 = vadd.f32 1e-06, %v3065_v5  ;;  %v3773_v7 = vunpack.i.h.bf16 %v6937_v8  ;;  %v7016_v3 = vpop.permute.xlu1 %2058  ;;  %v8684_v32 = vld [vmem:[#allocation123_spill] sm:$0xff] }
 0x2ad   :  { %v2521_v59 = vadd.f32 1e-06, %v2489_v19  ;;  %v7009_v45 = vadd.f32 %v3096_v49, %v2520_v43  ;;  %v7011_v30 = vmul.f32 %v3096_v49, %v2520_v43  ;;  %v3767_v10 = vunpack.i.l.bf16 %v3766_v13  ;;  %3830 = vrot.lane.b32.xlu0 %v6529_v26, %s4186_s1 }
 0x2ae   :  { %v3772_v20 = vunpack.i.l.bf16 %v6937_v8  ;;  %v3476_v25 = vadd.f32 %v3475_v24, %v3445_v54  ;;  %v2715_v5 = vsel %vm1909_vm4, %v3773_v7, 0.0  ;;  %1986 = vrot.lane.b32.xlu1 %v8684_v32, %s4185_s0  ;;  %vm3254_vm7 = vcmp.eq.f32.partialorder %v6952_v28, 0.0 }
 0x2af   :  { %v7018_v62 = vadd.f32 %v3097_v63, %v2521_v59  ;;  %v7020_v18 = vmul.f32 %v3097_v63, %v2521_v59  ;;  %v3255_v8 = vand.u32 2147483648, %v6952_v28  ;;  %vm3259_vm8 = vcmp.eq.f32.partialorder %v6971_v34, inf  ;;  %v1959_v26 = vpop.permute.xlu0 %1958 }
 0x2b0   :  { %4065 = vrsqrt.f32 %v7011_v30  ;;  %v4062_v13 = vpop.eup %4061  ;;  %vm3261_vm9 = vcmp.eq.f32.partialorder %v6971_v34, 0.0  ;;  %v2619_v11 = vsel %vm1908_vm2, %v3768_v17, 0.0  ;;  %v2426_v14 = vmul.f32 %v2136_v2, %v2136_v2  ;;  %v7047_v2 = vpop.permute.xlu1 %1962 }
 0x2b1   :  { %4067 = vrsqrt.f32 %v7020_v18  ;;  %v3251_v29 = vmul.f32 %v4062_v13, %v6952_v28  ;;  %v2618_v27 = vsel %vm1908_vm2, %v3767_v10, 0.0  ;;  %v2714_v43 = vsel %vm1909_vm4, %v3772_v20, 0.0  ;;  %2078 = vrot.lane.b32.xlu0 %v8678_v46, %s4186_s1 }
 0x2b2   :  { %v2747_v35 = vsub.f32 %v2619_v11, %v2715_v5  ;;  %v3262_v19 = vand.u32 2147483648, %v6971_v34  ;;  %v2007_v24 = vsel %vm1908_vm2, %v1957_v53, 0.0  ;;  %v2746_v49 = vsub.f32 %v2618_v27, %v2714_v43  ;;  %v8686_v5 = vld [vmem:[#allocation112_spill] sm:$0xff] }
 0x2b3   :  { %v2105_v17 = vsel %vm1909_vm4, %v6958_v39, 0.0  ;;  %v8685_v54 = vpack.i.bf16 %v8660_v57, %v8652_v56  ;;  %v4064_v63 = vpop.eup %4063  ;;  %v3253_v59 = vsel %vm3252_vm6, %v6952_v28, %v3251_v29  ;;  %v2106_v53 = vsel %vm1909_vm4, %v6979_v33, 0.0 }
 0x2b4   :  { %v3003_v7 = vmul.f32 %v2747_v35, %v2747_v35  ;;  %v2137_v10 = vsub.f32 %v2007_v24, %v2105_v17  ;;  %v3256_v39 = vsel %vm3254_vm7, %v3255_v8, %v3253_v59  ;;  %v3258_v20 = vmul.f32 %v4064_v63, %v6971_v34  ;;  %v3776_v24 = vpop.permute.xlu0 %3775 }
 0x2b5   :  { %3845 = vrot.lane.b32.xlu1 %v8685_v54, %s4185_s0  ;;  %v2490_v13 = vadd.f32 %v8686_v5, %v2426_v14  ;;  %v3002_v11 = vmul.f32 %v2746_v49, %v2746_v49  ;;  %v3414_v27 = vmul.f32 2.0, %v3256_v39  ;;  %v2008_v29 = vsel %vm1908_vm2, %v1959_v26, 0.0  ;;  %2080 = vrot.lane.b32.xlu0 %v8680_v0, %s4186_s1  ;;  %v8687_v14 = vld [vmem:[#allocation125_spill] sm:$0xff] }
 0x2b6   :  { %v3067_v43 = vadd.f32 %v6554_v15, %v3003_v7  ;;  %v2427_v35 = vmul.f32 %v2137_v10, %v2137_v10  ;;  %v3260_v28 = vsel %vm3259_vm8, %v6971_v34, %v3258_v20  ;;  %vm3266_vm10 = vcmp.eq.f32.partialorder %v7011_v30, inf }
 0x2b7   :  { %v3066_v33 = vadd.f32 %v6551_v31, %v3002_v11  ;;  %v2138_v8 = vsub.f32 %v2008_v29, %v2106_v53  ;;  %v3446_v15 = vsub.f32 %v6950_v12, %v3414_v27  ;;  %v3263_v26 = vsel %vm3261_vm9, %v3262_v19, %v3260_v28  ;;  %v7081_v31 = vpop.permute.xlu1 %2060 }
 0x2b8   :  { %vm3268_vm11 = vcmp.eq.f32.partialorder %v7011_v30, 0.0  ;;  %v3269_v49 = vand.u32 2147483648, %v7011_v30  ;;  %v2491_v17 = vadd.f32 %v6556_v38, %v2427_v35  ;;  %v3415_v54 = vmul.f32 2.0, %v3263_v26 }
 0x2b9   :  { %1988 = vrot.lane.b32.xlu1 %v8687_v14, %s4185_s0  ;;  %v2522_v63 = vadd.f32 1e-06, %v2490_v13  ;;  %v3098_v59 = vadd.f32 1e-06, %v3066_v33  ;;  %v3778_v7 = vunpack.i.h.bf16 %v3776_v24  ;;  %v3477_v10 = vadd.f32 %v3476_v25, %v3446_v15  ;;  %3840 = vrot.lane.b32.xlu0 %v6602_v21, %s4186_s1  ;;  %v1961_v13 = vpop.permute.xlu0 %1960 }
 0x2ba   :  { %v3099_v53 = vadd.f32 1e-06, %v3067_v43  ;;  %v2523_v39 = vadd.f32 1e-06, %v2491_v17  ;;  %v3783_v12 = vunpack.i.h.bf16 %v6999_v52  ;;  %v3447_v34 = vsub.f32 %v6969_v37, %v3415_v54 }
 0x2bb   :  { %v7087_v19 = vadd.f32 %v3098_v59, %v2522_v63  ;;  %v7089_v20 = vmul.f32 %v3098_v59, %v2522_v63  ;;  %v3777_v38 = vunpack.i.l.bf16 %v3776_v24  ;;  %vm3273_vm12 = vcmp.eq.f32.partialorder %v7020_v18, inf  ;;  %v7115_v26 = vpop.permute.xlu1 %3785 }
 0x2bc   :  { %v7094_v25 = vadd.f32 %v3099_v53, %v2523_v39  ;;  %v7096_v5 = vmul.f32 %v3099_v53, %v2523_v39  ;;  %v3782_v11 = vunpack.i.l.bf16 %v6999_v52  ;;  %v3478_v27 = vadd.f32 %v3477_v10, %v3447_v34 }
 0x2bd   :  { %2698 = vrot.lane.b32.xlu1 %v8660_v57, %s4186_s1  ;;  %v4066_v21 = vpop.eup %4065  ;;  %vm3275_vm13 = vcmp.eq.f32.partialorder %v7020_v18, 0.0  ;;  %4069 = vrsqrt.f32 %v7089_v20  ;;  %v2717_v37 = vsel %vm1909_vm4, %v3783_v12, 0.0  ;;  %v3276_v35 = vand.u32 2147483648, %v7020_v18  ;;  %2082 = vrot.lane.b32.xlu0 %v8683_v50, %s4186_s1 }
 0x2be   :  { %v4068_v43 = vpop.eup %4067  ;;  %v3265_v29 = vmul.f32 %v4066_v21, %v7011_v30  ;;  %4071 = vrsqrt.f32 %v7096_v5  ;;  %v2428_v24 = vmul.f32 %v2138_v8, %v2138_v8  ;;  %v2621_v28 = vsel %vm1908_vm2, %v3778_v7, 0.0 }
 0x2bf   :  { %v3272_v52 = vmul.f32 %v4068_v43, %v7020_v18  ;;  %v2620_v33 = vsel %vm1908_vm2, %v3777_v38, 0.0  ;;  %v2009_v15 = vsel %vm1908_vm2, %v1961_v13, 0.0  ;;  %v2716_v17 = vsel %vm1909_vm4, %v3782_v11, 0.0 }
 0x2c0   :  { %v3267_v8 = vsel %vm3266_vm10, %v7011_v30, %v3265_v29  ;;  %v2749_v54 = vsub.f32 %v2621_v28, %v2717_v37  ;;  %v2107_v63 = vsel %vm1909_vm4, %v7016_v3, 0.0  ;;  %v2748_v10 = vsub.f32 %v2620_v33, %v2716_v17  ;;  %v8691_v37 = vld [vmem:[#allocation113_spill] sm:$0xff]  ;;  %v8692_v29 = vld [vmem:[#allocation114_spill] sm:$0xff] }
 0x2c1   :  { %v3270_v59 = vsel %vm3268_vm11, %v3269_v49, %v3267_v8  ;;  %v3274_v7 = vsel %vm3273_vm12, %v7020_v18, %v3272_v52  ;;  %v2139_v53 = vsub.f32 %v2009_v15, %v2107_v63  ;;  %v2492_v34 = vadd.f32 %v6558_v41, %v2428_v24  ;;  %2084 = vrot.lane.b32.xlu0 %v8684_v32, %s4186_s1  ;;  %v8690_v18 = vld [vmem:[#allocation111_spill] sm:$0xff]  ;;  %v8694_v33 = vld [vmem:[#allocation126_spill] sm:$0xff] }
 0x2c2   :  { %v3416_v39 = vmul.f32 2.0, %v3270_v59  ;;  %v3277_v12 = vsel %vm3275_vm13, %v3276_v35, %v3274_v7  ;;  %v3005_v38 = vmul.f32 %v2749_v54, %v2749_v54  ;;  %v3004_v13 = vmul.f32 %v2748_v10, %v2748_v10  ;;  %v8693_v52 = vld [vmem:[#allocation115_spill] sm:$0xff]  ;;  %v8696_v8 = vld [vmem:[#allocation118_spill] sm:$0xff]  ;;  %v7153_v54 = vpop.permute.xlu1 %3790 }
 0x2c3   :  { %v3417_v3 = vmul.f32 2.0, %v3277_v12  ;;  %v2429_v30 = vmul.f32 %v2139_v53, %v2139_v53  ;;  %v8688_v49 = vrot.slane %v8636_v61, 7  ;;  %v8689_v11 = vrot.slane %v8634_v9, 7  ;;  %v8695_v9 = vld [vmem:[#allocation119_spill] sm:$0xff] }
 0x2c4   :  { %4073 = vrcp.f32 %v6561_v60  ;;  %v7144_v43 = vadd.f32 %v8691_v37, %v8690_v18  ;;  %v3448_v41 = vsub.f32 %v7009_v45, %v3416_v39  ;;  %v3069_v35 = vadd.f32 %v8692_v29, %v3005_v38 }
 0x2c5   :  { %v2905_v21 = vsel %vm2299_vm14, %v8689_v11, %v8688_v49  ;;  %v3449_v24 = vsub.f32 %v7018_v62, %v3417_v3  ;;  %v3068_v28 = vadd.f32 %v8693_v52, %v3004_v13  ;;  %v2493_v15 = vadd.f32 %v8694_v33, %v2429_v30  ;;  %2696 = vrot.lane.b32.xlu0 %v8652_v56, %s4186_s1  ;;  %v8697_v62 = vld [vmem:[#allocation127_spill] sm:$0xff] }
 0x2c6   :  { %v2398_v17 = vsub.f32 %v8696_v8, %v8695_v9  ;;  %v1854_v60 = vadd.f32 1e-06, %v1850_v58  ;;  %v3479_v63 = vadd.f32 %v3478_v27, %v3448_v41  ;;  %v2524_v59 = vadd.f32 1e-06, %v2492_v34 }
 0x2c7   :  { %v2974_v45 = vsub.f32 %v6931_v23, %v2905_v21  ;;  %4075 = vrcp.f32 %v8697_v62  ;;  %v3100_v7 = vadd.f32 1e-06, %v3068_v28  ;;  %v3101_v10 = vadd.f32 1e-06, %v3069_v35 }
 0x2c8   :  { %v2525_v53 = vadd.f32 1e-06, %v2493_v15  ;;  %v3480_v39 = vadd.f32 %v3479_v63, %v3449_v24  ;;  %v2108_v12 = vsel %vm1909_vm4, %v7081_v31, 0.0  ;;  %v3787_v22 = vunpack.i.l.bf16 %v7115_v26 }
 0x2c9   :  { %v3792_v58 = vunpack.i.l.bf16 %v7153_v54  ;;  %v7167_v27 = vadd.f32 %v3100_v7, %v2524_v59  ;;  %v7169_v34 = vmul.f32 %v3100_v7, %v2524_v59  ;;  %vm3280_vm3 = vcmp.eq.f32.partialorder %v7089_v20, inf  ;;  %2086 = vrot.lane.b32.xlu0 %v8687_v14, %s4186_s1 }
 0x2ca   :  { %v7171_v38 = vadd.f32 %v3101_v10, %v2525_v53  ;;  %v7173_v23 = vmul.f32 %v3101_v10, %v2525_v53  ;;  %v4070_v3 = vpop.eup %4069  ;;  %v2010_v13 = vsel %vm1908_vm2, %v7047_v2, 0.0  ;;  %v3038_v31 = vmul.f32 %v2974_v45, %v2974_v45  ;;  %v8698_v45 = vld [vmem:[#allocation54_spill] sm:$0xff] }
 0x2cb   :  { %v2718_v30 = vsel %vm1909_vm4, %v3792_v58, 0.0  ;;  %v4072_v49 = vpop.eup %4071  ;;  %v3279_v11 = vmul.f32 %v4070_v3, %v7089_v20  ;;  %vm3282_vm5 = vcmp.eq.f32.partialorder %v7089_v20, 0.0  ;;  %4077 = vrsqrt.f32 %v7169_v34  ;;  %v8701_v58 = vld [vmem:[#allocation106_spill] sm:$0xff] }
 0x2cc   :  { %v2140_v21 = vsub.f32 %v2010_v13, %v2108_v12  ;;  %v3283_v18 = vand.u32 2147483648, %v7089_v20  ;;  %v3286_v37 = vmul.f32 %v4072_v49, %v7096_v5  ;;  %4079 = vrsqrt.f32 %v7173_v23  ;;  %v8699_v12 = vld [vmem:[#allocation87_spill] sm:$0xff] }
 0x2cd   :  { %v2622_v2 = vsel %vm1908_vm2, %v3787_v22, 0.0  ;;  %v3281_v41 = vsel %vm3280_vm3, %v7089_v20, %v3279_v11  ;;  %vm3287_vm6 = vcmp.eq.f32.partialorder %v7096_v5, inf  ;;  %v3290_v29 = vand.u32 2147483648, %v7096_v5  ;;  %v8704_v11 = vld [vmem:[#allocation105_spill] sm:$0xff] }
 0x2ce   :  { %v2750_v35 = vsub.f32 %v2622_v2, %v2718_v30  ;;  %v3284_v24 = vsel %vm3282_vm5, %v3283_v18, %v3281_v41  ;;  %v3288_v52 = vsel %vm3287_vm6, %v7096_v5, %v3286_v37  ;;  %vm3289_vm7 = vcmp.eq.f32.partialorder %v7096_v5, 0.0  ;;  %v8700_v5 = vld [vmem:[#allocation98_spill] sm:$0xff]  ;;  %v8703_v30 = vld [vmem:[#allocation99_spill] sm:$0xff] }
 0x2cf   :  { %v2462_v28 = vmul.f32 %v2398_v17, %v2398_v17  ;;  %v3418_v33 = vmul.f32 2.0, %v3284_v24  ;;  %v3291_v15 = vsel %vm3289_vm7, %v3290_v29, %v3288_v52  ;;  %v2430_v9 = vmul.f32 %v2140_v21, %v2140_v21 }
 0x2d0   :  { %v3006_v8 = vmul.f32 %v2750_v35, %v2750_v35  ;;  %v1862_v63 = vmul.f32 0.49, %v1854_v60  ;;  %v3419_v59 = vmul.f32 2.0, %v3291_v15  ;;  %v2784_v62 = vrot.slane %v8698_v45, 1 }
 0x2d1   :  { %v4074_v20 = vpop.eup %4073  ;;  %v3450_v7 = vsub.f32 %v7087_v19, %v3418_v33  ;;  %v2879_v10 = vrot.slane %v8663_v47, 7  ;;  %v7200_v22 = vmul.f32 1.49, %v8699_v12  ;;  %v1842_v17 = vsub.f32 %v8700_v5, %v8682_v44 }
 0x2d2   :  { %v3070_v53 = vadd.f32 %v3038_v31, %v3006_v8  ;;  %v8702_v3 = vrot.slane %v8701_v58, 1  ;;  %v3451_v60 = vsub.f32 %v7094_v25, %v3419_v59  ;;  %v1839_v49 = vadd.f32 1e-06, %v8703_v30 }
 0x2d3   :  { %v1824_v19 = vadd.f32 %v7144_v43, %v8704_v11  ;;  %v3481_v21 = vadd.f32 %v3480_v39, %v3450_v7  ;;  %v2494_v18 = vadd.f32 %v2462_v28, %v2430_v9  ;;  %v8705_v37 = vrot.slane %v8663_v47, 1  ;;  %v8707_v28 = vld [vmem:[#allocation124_spill] sm:$0xff]  ;;  %v8708_v9 = vld [vmem:[#allocation45_spill] sm:$0xff] }
 0x2d4   :  { %v1719_v13 = vadd.f32 %v8702_v3, %v8701_v58  ;;  %v4076_v31 = vpop.eup %4075  ;;  %v1866_v2 = vadd.f32 %v1862_v63, %v7200_v22  ;;  %v8706_v25 = vrot.slane %v8636_v61, 7  ;;  %v3793_v39 = vunpack.i.h.bf16 %v7153_v54  ;;  %v8709_v54 = vld [vmem:[#allocation85_spill] sm:$0xff] }
 0x2d5   :  { %v2807_v44 = vsel %vm2186_vm0, %v8705_v37, %v2784_v62  ;;  %v3482_v41 = vadd.f32 %v3481_v21, %v3451_v60  ;;  %v7225_v29 = vadd.f32 1e-06, %v3070_v53  ;;  %v1846_v35 = vadd.f32 1e-06, %v1842_v17 }
 0x2d6   :  { %v2904_v43 = vsel %vm2299_vm14, %v8706_v25, %v2879_v10  ;;  %v1843_v24 = vsub.f32 %v1719_v13, %v8703_v30  ;;  %v7228_v52 = vmul.f32 1.49, %v1839_v49  ;;  %v1825_v33 = vadd.f32 %v1824_v19, %v8707_v28  ;;  %v8712_v28 = vld [vmem:[#allocation51_spill] sm:$0xff] }
 0x2d7   :  { %v7231_v15 = vadd.f32 1e-06, %v2494_v18  ;;  %v1873_v8 = vmul.f32 %v4074_v20, %v8708_v9  ;;  %vm1880_vm8 = vcmask 0   ;;  %v3788_v63 = vunpack.i.h.bf16 %v7115_v26 }
 0x2d8   :  { %v4078_v61 = vpop.eup %4077  ;;  %v2975_v59 = vsub.f32 %v2807_v44, %v2904_v43  ;;  %v1870_v7 = vadd.f32 %v1866_v2, %v1846_v35  ;;  %v1875_v53 = vmul.f32 %v4076_v31, %v8709_v54  ;;  %v2719_v17 = vsel %vm1909_vm4, %v3793_v39, 0.0  ;;  %v8710_v2 = vld [vmem:[#allocation55_spill] sm:$0xff] }
 0x2d9   :  { %v4080_v12 = vpop.eup %4079  ;;  %v3293_v5 = vmul.f32 %v4078_v61, %v7169_v34  ;;  %v7241_v58 = vmul.f32 %v7225_v29, %v7231_v15  ;;  %v2174_v20 = vrot.slane %v8664_v42, 1  ;;  %vm3294_vm9 = vcmp.eq.f32.partialorder %v7169_v34, inf }
 0x2da   :  { %vm3296_vm10 = vcmp.eq.f32.partialorder %v7169_v34, 0.0  ;;  %v3297_v26 = vand.u32 2147483648, %v7169_v34  ;;  %v3300_v3 = vmul.f32 %v4080_v12, %v7173_v23  ;;  %vm3301_vm11 = vcmp.eq.f32.partialorder %v7173_v23, inf  ;;  %v8714_v12 = vld [vmem:[#allocation117_spill] sm:$0xff] }
 0x2db   :  { %v3295_v13 = vsel %vm3294_vm9, %v7169_v34, %v3293_v5  ;;  %v3304_v60 = vand.u32 2147483648, %v7173_v23  ;;  %v2286_v49 = vrot.slane %v8646_v4, 7  ;;  %vm3303_vm12 = vcmp.eq.f32.partialorder %v7173_v23, 0.0 }
 0x2dc   :  { %v3298_v11 = vsel %vm3296_vm10, %v3297_v26, %v3295_v13  ;;  %v3302_v19 = vsel %vm3301_vm11, %v7173_v23, %v3300_v3  ;;  %v2623_v21 = vsel %vm1908_vm2, %v3788_v63, 0.0  ;;  %4081 = vrsqrt.f32 %v7241_v58  ;;  %v8715_v3 = vld [vmem:[#allocation56_spill] sm:$0xff] }
 0x2dd   :  { %v3420_v18 = vmul.f32 2.0, %v3298_v11  ;;  %v3305_v31 = vsel %vm3303_vm12, %v3304_v60, %v3302_v19  ;;  %v2751_v37 = vsub.f32 %v2623_v21, %v2719_v17  ;;  %v7257_v34 = vadd.f32 1e-06, %v1843_v24  ;;  %v8716_v21 = vld [vmem:[#allocation57_spill] sm:$0xff] }
 0x2de   :  { %v3421_v44 = vmul.f32 2.0, %v3305_v31  ;;  %v2785_v25 = vrot.slane %v8710_v2, 1  ;;  %v1882_v43 = vsel %vm1880_vm8, %v1875_v53, 0.0  ;;  %v8711_v35 = vrot.slane %v8646_v4, 1  ;;  %v8717_v31 = vld [vmem:[#allocation58_spill] sm:$0xff] }
 0x2df   :  { %v3452_v39 = vsub.f32 %v7167_v27, %v3420_v18  ;;  %v8713_v9 = vrot.slane %v8712_v28, 7  ;;  %v2880_v24 = vrot.slane %v8698_v45, 7  ;;  %v3039_v54 = vmul.f32 %v2975_v59, %v2975_v59 }
 0x2e0   :  { %v2198_v23 = vsel %vm2186_vm0, %v8711_v35, %v2174_v20  ;;  %v3453_v63 = vsub.f32 %v7171_v38, %v3421_v44  ;;  %v7273_v5 = vadd.f32 %v1825_v33, %v8714_v12  ;;  %v1881_v27 = vsel %vm1880_vm8, %v1873_v8, 0.0 }
 0x2e1   :  { %v2312_v61 = vsel %vm2299_vm14, %v8713_v9, %v2286_v49  ;;  %v3483_v53 = vadd.f32 %v3482_v41, %v3452_v39  ;;  %v3007_v4 = vmul.f32 %v2751_v37, %v2751_v37  ;;  %4083 = vrcp.f32 %v1870_v7 }
 0x2e2   :  { %v7276_v17 = vadd.f32 %v1882_v43, %v1881_v27  ;;  %v2399_v26 = vsub.f32 %v2198_v23, %v2312_v61  ;;  %v2786_v13 = vrot.slane %v8715_v3, 1  ;;  %v2806_v60 = vsel %vm2186_vm0, %v2784_v62, %v2785_v25 }
 0x2e3   :  { %v2881_v38 = vrot.slane %v8710_v2, 7  ;;  %v7284_v59 = vadd.f32 %v3483_v53, %v3453_v63  ;;  %v2903_v41 = vsel %vm2299_vm14, %v2879_v10, %v2880_v24  ;;  %v2175_v33 = vrot.slane %v8670_v1, 1 }
 0x2e4   :  { %v2176_v8 = vrot.slane %v8665_v55, 1  ;;  %v2287_v7 = vrot.slane %v8664_v42, 7  ;;  %v2288_v45 = vrot.slane %v8670_v1, 7  ;;  %v2177_v11 = vrot.slane %v8669_v51, 1 }
 0x2e5   :  { %v2289_v62 = vrot.slane %v8665_v55, 7  ;;  %v3071_v19 = vadd.f32 %v3039_v54, %v3007_v4  ;;  %v2787_v18 = vrot.slane %v8716_v21, 1  ;;  %v2788_v47 = vrot.slane %v8717_v31, 1 }
 0x2e6   :  { %v2882_v37 = vrot.slane %v8715_v3, 7  ;;  %v7299_v10 = vmul.f32 %v2399_v26, %v2399_v26  ;;  %v2805_v44 = vsel %vm2186_vm0, %v2785_v25, %v2786_v13  ;;  %v2902_v42 = vsel %vm2299_vm14, %v2880_v24, %v2881_v38 }
 0x2e7   :  { %v2976_v1 = vsub.f32 %v2806_v60, %v2903_v41  ;;  %v2196_v2 = vsel %vm2186_vm0, %v2175_v33, %v2176_v8  ;;  %v2197_v55 = vsel %vm2186_vm0, %v2174_v20, %v2175_v33  ;;  %v2311_v43 = vsel %vm2299_vm14, %v2286_v49, %v2287_v7 }
 0x2e8   :  { %v2178_v39 = vrot.slane %v8671_v36, 1  ;;  %v2310_v35 = vsel %vm2299_vm14, %v2287_v7, %v2288_v45  ;;  %v2195_v25 = vsel %vm2186_vm0, %v2176_v8, %v2177_v11  ;;  %v2309_v23 = vsel %vm2299_vm14, %v2288_v45, %v2289_v62  ;;  %v1779_v9 = vpop.xlane.xlu0 %1778 }
 0x2e9   :  { %v2883_v28 = vrot.slane %v8716_v21, 7  ;;  %v2977_v61 = vsub.f32 %v2805_v44, %v2902_v42  ;;  %v2803_v20 = vsel %vm2186_vm0, %v2787_v18, %v2788_v47  ;;  %v2804_v49 = vsel %vm2186_vm0, %v2786_v13, %v2787_v18  ;;  %v4082_v63 = vpop.eup %4081 }
 0x2ea   :  { %v2901_v24 = vsel %vm2299_vm14, %v2881_v38, %v2882_v37  ;;  %v7327_v54 = vadd.f32 1e-06, %v3071_v19  ;;  %v7331_v12 = vadd.f32 %v7225_v29, %v7231_v15  ;;  %v2400_v27 = vsub.f32 %v2197_v55, %v2311_v43 }
 0x2eb   :  { %v2290_v53 = vrot.slane %v8669_v51, 7  ;;  %vm3308_vm13 = vcmp.eq.f32.partialorder %v7241_v58, inf  ;;  %v2401_v4 = vsub.f32 %v2196_v2, %v2310_v35  ;;  %v2402_v26 = vsub.f32 %v2195_v25, %v2309_v23  ;;  %v8719_v23 = vld [vmem:[#allocation62_spill] sm:$0xff] }
 0x2ec   :  { %v2194_v3 = vsel %vm2186_vm0, %v2177_v11, %v2178_v39  ;;  %vm3310_vm3 = vcmp.eq.f32.partialorder %v7241_v58, 0.0  ;;  %v2851_v60 = vsel %vm1917_vm1, %v2803_v20, 0.0  ;;  %v2900_v38 = vsel %vm2299_vm14, %v2882_v37, %v2883_v28  ;;  %v1965_v41 = vpop.permute.xlu0 %1964  ;;  %v8720_v20 = vld [vmem:[#allocation63_spill] sm:$0xff] }
 0x2ed   :  { %v2978_v29 = vsub.f32 %v2804_v49, %v2901_v24  ;;  %v3307_v15 = vmul.f32 %v4082_v63, %v7241_v58  ;;  %v3311_v51 = vand.u32 2147483648, %v7241_v58  ;;  %v7344_v33 = vmul.f32 %v2976_v1, %v2976_v1  ;;  %v1781_v18 = vpop.xlane.xlu1 %1780 }
 0x2ee   :  { %v7346_v8 = vmul.f32 %v2977_v61, %v2977_v61  ;;  %v7348_v7 = vpop.eup %4083  ;;  %v7350_v45 = vmul.f32 %v2400_v27, %v2400_v27  ;;  %v2258_v11 = vsel %vm1917_vm1, %v2194_v3, 0.0  ;;  %v2308_v19 = vsel %vm2299_vm14, %v2289_v62, %v2290_v53 }
 0x2ef   :  { %v2291_v21 = vrot.slane %v8671_v36, 7  ;;  %v7357_v37 = vmul.f32 %v2401_v4, %v2401_v4  ;;  %v7359_v44 = vmul.f32 %v2402_v26, %v2402_v26  ;;  %v2979_v42 = vsub.f32 %v2851_v60, %v2900_v38 }
 0x2f0   :  { %v2884_v1 = vrot.slane %v8717_v31, 7  ;;  %v1827_v2 = vadd.f32 %v7273_v5, %v1779_v9  ;;  %v2011_v55 = vsel %vm1908_vm2, %v1965_v41, 0.0  ;;  %v7365_v43 = vmul.f32 %v2978_v29, %v2978_v29  ;;  %v2063_v62 = vpop.permute.xlu0 %2062 }
 0x2f1   :  { %v2179_v35 = vrot.slane %v8673_v16, 1  ;;  %v3309_v36 = vsel %vm3308_vm13, %v7241_v58, %v3307_v15  ;;  %v2403_v25 = vsub.f32 %v2258_v11, %v2308_v19  ;;  %v2789_v61 = vrot.slane %v8719_v23, 1  ;;  %v1783_v4 = vpop.xlane.xlu1 %1782 }
 0x2f2   :  { %v2790_v49 = vrot.slane %v8720_v20, 1  ;;  %v2109_v5 = vsel %vm1909_vm4, %v2063_v62, 0.0  ;;  %v1828_v9 = vadd.f32 %v1827_v2, %v1781_v18  ;;  %v2307_v24 = vsel %vm2299_vm14, %v2290_v53, %v2291_v21 }
 0x2f3   :  { %v2885_v63 = vrot.slane %v8719_v23, 7  ;;  %v2141_v27 = vsub.f32 %v2011_v55, %v2109_v5  ;;  %v2899_v26 = vsel %vm2299_vm14, %v2883_v28, %v2884_v1  ;;  %v2180_v3 = vrot.slane %v8674_v48, 1  ;;  %v8721_v23 = vld [vmem:[#allocation65_spill] sm:$0xff] }
 0x2f4   :  { %v2292_v60 = vrot.slane %v8673_v16, 7  ;;  %v3312_v38 = vsel %vm3310_vm3, %v3311_v51, %v3309_v36  ;;  %v1829_v29 = vadd.f32 %v1828_v9, %v1783_v4  ;;  %v2193_v15 = vsel %vm2186_vm0, %v2178_v39, %v2179_v35  ;;  %v7387_v11 = vpop.permute.xlu0 %1966 }
 0x2f5   :  { %v2181_v53 = vrot.slane %v8678_v46, 1  ;;  %v2431_v41 = vmul.f32 %v2141_v27, %v2141_v27  ;;  %v2372_v19 = vsel %vm1918_vm15, %v2307_v24, 0.0  ;;  %v2801_v28 = vsel %vm2186_vm0, %v2789_v61, %v2790_v49  ;;  %v2065_v36 = vpop.permute.xlu1 %2064 }
 0x2f6   :  { %v2293_v16 = vrot.slane %v8674_v48, 7  ;;  %v1830_v18 = vrot.slane %v1829_v29, 4  ;;  %v2802_v58 = vsel %vm2186_vm0, %v2788_v47, %v2789_v61  ;;  %v2898_v39 = vsel %vm2299_vm14, %v2884_v1, %v2885_v63  ;;  %v8722_v1 = vld [vmem:[#allocation66_spill] sm:$0xff] }
 0x2f7   :  { %v2948_v51 = vsel %vm1918_vm15, %v2899_v26, 0.0  ;;  %v3422_v2 = vmul.f32 2.0, %v3312_v38  ;;  %v2495_v55 = vadd.f32 %v7299_v10, %v2431_v41  ;;  %v2192_v62 = vsel %vm2186_vm0, %v2179_v35, %v2180_v3 }
 0x2f8   :  { %v2306_v48 = vsel %vm2299_vm14, %v2291_v21, %v2292_v60  ;;  %v1831_v31 = vadd.f32 %v1830_v18, %v1829_v29  ;;  %v2191_v47 = vsel %vm2186_vm0, %v2180_v3, %v2181_v53  ;;  %v2791_v61 = vrot.slane %v8721_v23, 1  ;;  %v7413_v24 = vpop.permute.xlu0 %3795 }
 0x2f9   :  { %v7411_v9 = vadd.f32 1e-06, %v2495_v55  ;;  %v2305_v10 = vsel %vm2299_vm14, %v2292_v60, %v2293_v16  ;;  %v2886_v35 = vrot.slane %v8720_v20, 7  ;;  %v2887_v27 = vrot.slane %v8721_v23, 7  ;;  %v7424_v29 = vpop.permute.xlu1 %1970 }
 0x2fa   :  { %v1832_v21 = vrot.slane %v1831_v31, 2  ;;  %v7419_v4 = vmul.f32 %v2979_v42, %v2979_v42  ;;  %v7421_v26 = vmul.f32 %v2403_v25, %v2403_v25  ;;  %v2404_v3 = vsub.f32 %v2193_v15, %v2372_v19 }
 0x2fb   :  { %v3454_v38 = vsub.f32 %v7331_v12, %v3422_v2  ;;  %v2980_v41 = vsub.f32 %v2802_v58, %v2948_v51  ;;  %v2981_v18 = vsub.f32 %v2801_v28, %v2898_v39  ;;  %v2405_v55 = vsub.f32 %v2192_v62, %v2306_v48 }
 0x2fc   :  { %v1833_v5 = vadd.f32 %v1832_v21, %v1831_v31  ;;  %v2406_v13 = vsub.f32 %v2191_v47, %v2305_v10  ;;  %v8723_v60 = vrot.slane %v8722_v1, 1  ;;  %v2800_v42 = vsel %vm2186_vm0, %v2790_v49, %v2791_v61  ;;  %v3801_v12 = vpop.permute.xlu0 %3800 }
 0x2fd   :  { %v7434_v25 = vmul.f32 %v7327_v54, %v7411_v9  ;;  %v2896_v15 = vsel %vm2299_vm14, %v2886_v35, %v2887_v27  ;;  %v2897_v19 = vsel %vm2299_vm14, %v2885_v63, %v2886_v35  ;;  %v2182_v28 = vrot.slane %v8680_v0, 1  ;;  %v7450_v62 = vpop.permute.xlu1 %3805 }
 0x2fe   :  { %v2799_v20 = vsel %vm2186_vm0, %v2791_v61, %v8723_v60  ;;  %v1834_v58 = vrot.slane %v1833_v5, 1  ;;  %v7443_v39 = vmul.f32 %v2404_v3, %v2404_v3  ;;  %v2294_v49 = vrot.slane %v8678_v46, 7 }
 0x2ff   :  { %v8198_v51 = vrot.slane %v8683_v50, 1  ;;  %v7448_v2 = vadd.f32 %v7284_v59, %v3454_v38  ;;  %v7452_v48 = vmul.f32 %v2980_v41, %v2980_v41  ;;  %v7454_v31 = vmul.f32 %v2981_v18, %v2981_v18  ;;  %v8724_v18 = vld [vmem:[#allocation70_spill] sm:$0xff] }
 0x300   :  { %v7456_v47 = vmul.f32 %v2405_v55, %v2405_v55  ;;  %v1835_v63 = vadd.f32 %v1834_v58, %v1833_v5  ;;  %v2982_v61 = vsub.f32 %v2800_v42, %v2897_v19  ;;  %v2983_v10 = vsub.f32 %v2799_v20, %v2896_v15  ;;  %v1969_v46 = vpop.permute.xlu0 %1968 }
 0x301   :  { %v8199_v35 = vrot.slane %v8680_v0, 7  ;;  %4085 = vrsqrt.f32 %v7434_v25  ;;  %v7460_v21 = vmul.f32 %v2406_v13, %v2406_v13  ;;  %v2190_v59 = vsel %vm2186_vm0, %v2181_v53, %v2182_v28  ;;  %v7475_v20 = vpop.permute.xlu1 %1972 }
 0x302   :  { %v1877_v3 = vmul.f32 %v7348_v7, %v7200_v22  ;;  %v1851_v38 = vsub.f32 %v1835_v63, %v8703_v30  ;;  %v2304_v5 = vsel %vm2299_vm14, %v2293_v16, %v2294_v49  ;;  %v2189_v41 = vsel %vm2186_vm0, %v2182_v28, %v8198_v51 }
 0x303   :  { %v2793_v55 = vrot.slane %v8724_v18, 1  ;;  %v3797_v13 = vunpack.i.l.bf16 %v7413_v24  ;;  %v3802_v60 = vunpack.i.l.bf16 %v3801_v12  ;;  %v8201_v53 = vrot.slane %v8652_v56, 1 }
 0x304   :  { %v2888_v22 = vrot.slane %v8722_v1, 7  ;;  %v3798_v30 = vunpack.i.h.bf16 %v7413_v24  ;;  %v3803_v7 = vunpack.i.h.bf16 %v3801_v12  ;;  %v2110_v16 = vsel %vm1909_vm4, %v2065_v36, 0.0  ;;  %v2067_v15 = vpop.permute.xlu0 %2066 }
 0x305   :  { %v2303_v42 = vsel %vm2299_vm14, %v2294_v49, %v8199_v35  ;;  %v7486_v19 = vmul.f32 %v2982_v61, %v2982_v61  ;;  %v7488_v28 = vmul.f32 %v2983_v10, %v2983_v10  ;;  %v2407_v58 = vsub.f32 %v2190_v59, %v2304_v5  ;;  %v7503_v5 = vpop.permute.xlu1 %1974 }
 0x306   :  { %v8200_v63 = vrot.slane %v8724_v18, 7  ;;  %v2012_v24 = vsel %vm1908_vm2, %v7387_v11, 0.0  ;;  %v1855_v12 = vadd.f32 1e-06, %v1851_v38  ;;  %v1884_v36 = vsel %vm1880_vm8, %v1877_v3, 0.0 }
 0x307   :  { %v8725_v51 = vrot.slane %v8722_v1, 1  ;;  %v2624_v61 = vsel %vm1908_vm2, %v3797_v13, 0.0  ;;  %v2720_v10 = vsel %vm1909_vm4, %v3802_v60, 0.0  ;;  %v2142_v59 = vsub.f32 %v2012_v24, %v2110_v16 }
 0x308   :  { %v2408_v35 = vsub.f32 %v2189_v41, %v2303_v42  ;;  %v2625_v11 = vsel %vm1908_vm2, %v3798_v30, 0.0  ;;  %v2721_v3 = vsel %vm1909_vm4, %v3803_v7, 0.0  ;;  %v2797_v1 = vsel %vm2186_vm0, %v2793_v55, %v8201_v53  ;;  %v2069_v13 = vpop.permute.xlu0 %2068 }
 0x309   :  { %v2798_v49 = vsel %vm2186_vm0, %v8725_v51, %v2793_v55  ;;  %v2895_v51 = vsel %vm2299_vm14, %v2887_v27, %v2888_v22  ;;  %v2013_v38 = vsel %vm1908_vm2, %v1969_v46, 0.0  ;;  %v2111_v41 = vsel %vm1909_vm4, %v2067_v15, 0.0  ;;  %v7530_v42 = vpop.permute.xlu1 %3815 }
 0x30a   :  { %v2894_v60 = vsel %vm2299_vm14, %v2888_v22, %v8200_v63  ;;  %v2184_v30 = vrot.slane %v8684_v32, 1  ;;  %v2752_v55 = vsub.f32 %v2624_v61, %v2720_v10  ;;  %v1863_v7 = vmul.f32 0.49, %v1855_v12 }
 0x30b   :  { %v7527_v23 = vadd.f32 %v1884_v36, %v7276_v17  ;;  %v2296_v27 = vrot.slane %v8683_v50, 7  ;;  %v2753_v16 = vsub.f32 %v2625_v11, %v2721_v3  ;;  %v2432_v46 = vmul.f32 %v2142_v59, %v2142_v59 }
 0x30c   :  { %v7532_v15 = vmul.f32 %v2407_v58, %v2407_v58  ;;  %v7534_v24 = vmul.f32 %v2408_v35, %v2408_v35  ;;  %v7538_v22 = vadd.f32 %v7327_v54, %v7411_v9  ;;  %v2143_v63 = vsub.f32 %v2013_v38, %v2111_v41  ;;  %v3811_v10 = vpop.permute.xlu0 %3810 }
 0x30d   :  { %v2984_v61 = vsub.f32 %v2798_v49, %v2895_v51  ;;  %v2985_v12 = vsub.f32 %v2797_v1, %v2894_v60  ;;  %vm3315_vm15 = vcmp.eq.f32.partialorder %v7434_v25, inf  ;;  %v2014_v17 = vsel %vm1908_vm2, %v7424_v29, 0.0  ;;  %v7557_v51 = vpop.permute.xlu1 %1976 }
 0x30e   :  { %v3807_v36 = vunpack.i.l.bf16 %v7450_v62  ;;  %v8726_v58 = vrot.slane %v8683_v50, 1  ;;  %v4086_v59 = vpop.eup %4085  ;;  %v3008_v54 = vmul.f32 %v2752_v55, %v2752_v55  ;;  %v3812_v9 = vunpack.i.l.bf16 %v3811_v10 }
 0x30f   :  { %v1867_v49 = vadd.f32 %v1863_v7, %v7228_v52  ;;  %v8727_v11 = vrot.slane %v8680_v0, 7  ;;  %vm3317_vm5 = vcmp.eq.f32.partialorder %v7434_v25, 0.0  ;;  %v3009_v29 = vmul.f32 %v2753_v16, %v2753_v16 }
 0x310   :  { %v2188_v35 = vsel %vm2186_vm0, %v8726_v58, %v2184_v30  ;;  %v2496_v1 = vadd.f32 %v7350_v45, %v2432_v46  ;;  %v3808_v50 = vunpack.i.h.bf16 %v7450_v62  ;;  %v3318_v38 = vand.u32 2147483648, %v7434_v25  ;;  %v2071_v58 = vpop.permute.xlu0 %2070 }
 0x311   :  { %v2302_v3 = vsel %vm2299_vm14, %v8727_v11, %v2296_v27  ;;  %v2433_v41 = vmul.f32 %v2143_v63, %v2143_v63  ;;  %v7560_v60 = vmul.f32 %v2984_v61, %v2984_v61  ;;  %v3314_v0 = vmul.f32 %v4086_v59, %v7434_v25  ;;  %v7575_v55 = vpop.permute.xlu1 %1978 }
 0x312   :  { %v2626_v7 = vsel %vm1908_vm2, %v3807_v36, 0.0  ;;  %v7566_v16 = vmul.f32 %v2985_v12, %v2985_v12  ;;  %v2409_v45 = vsub.f32 %v2188_v35, %v2302_v3  ;;  %v3072_v62 = vadd.f32 %v7344_v33, %v3008_v54 }
 0x313   :  { %v3813_v46 = vunpack.i.h.bf16 %v3811_v10  ;;  %v2722_v11 = vsel %vm1909_vm4, %v3812_v9, 0.0  ;;  %v1871_v63 = vadd.f32 %v1867_v49, %v7257_v34  ;;  %v3073_v61 = vadd.f32 %v7346_v8, %v3009_v29 }
 0x314   :  { %v2528_v53 = vadd.f32 1e-06, %v2496_v1  ;;  %v2627_v59 = vsel %vm1908_vm2, %v3808_v50, 0.0  ;;  %v2297_v12 = vrot.slane %v8684_v32, 7  ;;  %v2497_v36 = vadd.f32 %v7357_v37, %v2433_v41  ;;  %v2073_v9 = vpop.permute.xlu0 %2072 }
 0x315   :  { %v2112_v33 = vsel %vm1909_vm4, %v2069_v13, 0.0  ;;  %v2015_v10 = vsel %vm1908_vm2, %v7475_v20, 0.0  ;;  %v8728_v34 = vrot.slane %v8687_v14, 1  ;;  %v3316_v35 = vsel %vm3315_vm15, %v7434_v25, %v3314_v0  ;;  %v7598_v1 = vpop.permute.xlu1 %3825 }
 0x316   :  { %v2754_v54 = vsub.f32 %v2626_v7, %v2722_v11  ;;  %v2113_v37 = vsel %vm1909_vm4, %v2071_v58, 0.0  ;;  %v2795_v13 = vrot.slane %v8660_v57, 1  ;;  %v3104_v49 = vadd.f32 1e-06, %v3072_v62 }
 0x317   :  { %v2187_v8 = vsel %vm2186_vm0, %v2184_v30, %v8728_v34  ;;  %v2723_v20 = vsel %vm1909_vm4, %v3813_v46, 0.0  ;;  %4087 = vrcp.f32 %v1871_v63  ;;  %v7596_v3 = vmul.f32 %v2409_v45, %v2409_v45 }
 0x318   :  { %v3105_v29 = vadd.f32 1e-06, %v3073_v61  ;;  %v2144_v30 = vsub.f32 %v2014_v17, %v2112_v33  ;;  %v2301_v50 = vsel %vm2299_vm14, %v2296_v27, %v2297_v12  ;;  %v2890_v41 = vrot.slane %v8652_v56, 7  ;;  %v3821_v63 = vpop.permute.xlu0 %3820 }
 0x319   :  { %v3319_v0 = vsel %vm3317_vm5, %v3318_v38, %v3316_v35  ;;  %v2529_v7 = vadd.f32 1e-06, %v2497_v36  ;;  %v7607_v58 = vmul.f32 %v3104_v49, %v2528_v53  ;;  %v2145_v62 = vsub.f32 %v2015_v10, %v2113_v37 }
 0x31a   :  { %v2755_v45 = vsub.f32 %v2627_v59, %v2723_v20  ;;  %v3010_v46 = vmul.f32 %v2754_v54, %v2754_v54  ;;  %v2016_v17 = vsel %vm1908_vm2, %v7503_v5, 0.0  ;;  %v3817_v11 = vunpack.i.l.bf16 %v7530_v42  ;;  %v7622_v5 = vpop.permute.xlu1 %1980 }
 0x31b   :  { %v7613_v61 = vadd.f32 %v3104_v49, %v2528_v53  ;;  %v3818_v27 = vunpack.i.h.bf16 %v7530_v42  ;;  %v2410_v33 = vsub.f32 %v2187_v8, %v2301_v50  ;;  %v8729_v25 = vrot.slane %v8652_v56, 1 }
 0x31c   :  { %v3423_v59 = vmul.f32 2.0, %v3319_v0  ;;  %v2434_v36 = vmul.f32 %v2144_v30, %v2144_v30  ;;  %v3823_v10 = vunpack.i.h.bf16 %v3821_v63  ;;  %v3822_v34 = vunpack.i.l.bf16 %v3821_v63  ;;  %v2075_v30 = vpop.permute.xlu0 %2074 }
 0x31d   :  { %v2796_v38 = vsel %vm2186_vm0, %v8729_v25, %v2795_v13  ;;  %v7624_v35 = vmul.f32 %v3105_v29, %v2529_v7  ;;  %4089 = vrsqrt.f32 %v7607_v58  ;;  %v2435_v53 = vmul.f32 %v2145_v62, %v2145_v62 }
 0x31e   :  { %v8730_v42 = vrot.slane %v8724_v18, 7  ;;  %v3011_v54 = vmul.f32 %v2755_v45, %v2755_v45  ;;  %v3074_v37 = vadd.f32 %v7365_v43, %v3010_v46  ;;  %v2114_v49 = vsel %vm1909_vm4, %v2073_v9, 0.0 }
 0x31f   :  { %v2628_v20 = vsel %vm1908_vm2, %v3817_v11, 0.0  ;;  %v2724_v50 = vsel %vm1909_vm4, %v3822_v34, 0.0  ;;  %v2017_v18 = vsel %vm1908_vm2, %v7557_v51, 0.0  ;;  %v2115_v0 = vsel %vm1909_vm4, %v2075_v30, 0.0  ;;  %v7654_v51 = vpop.permute.xlu1 %1982 }
 0x320   :  { %v2893_v8 = vsel %vm2299_vm14, %v8730_v42, %v2890_v41  ;;  %v7645_v62 = vmul.f32 %v2410_v33, %v2410_v33  ;;  %v3455_v43 = vsub.f32 %v7538_v22, %v3423_v59  ;;  %v2498_v9 = vadd.f32 %v7359_v44, %v2434_v36  ;;  %v2077_v59 = vpop.permute.xlu0 %2076 }
 0x321   :  { %v2629_v45 = vsel %vm1908_vm2, %v3818_v27, 0.0  ;;  %v2725_v46 = vsel %vm1909_vm4, %v3823_v10, 0.0  ;;  %v2499_v11 = vadd.f32 %v7421_v26, %v2435_v53  ;;  %v2146_v63 = vsub.f32 %v2016_v17, %v2114_v49 }
 0x322   :  { %v2756_v25 = vsub.f32 %v2628_v20, %v2724_v50  ;;  %v2986_v34 = vsub.f32 %v2796_v38, %v2893_v8  ;;  %4091 = vrsqrt.f32 %v7624_v35  ;;  %v3075_v33 = vadd.f32 %v7419_v4, %v3011_v54 }
 0x323   :  { %v7658_v22 = vadd.f32 1e-06, %v3074_v37  ;;  %v2147_v44 = vsub.f32 %v2017_v18, %v2115_v0  ;;  %v7660_v36 = vadd.f32 %v3105_v29, %v2529_v7  ;;  %v3332_v27 = vand.u32 2147483648, %v7624_v35 }
 0x324   :  { %v3325_v10 = vand.u32 2147483648, %v7607_v58  ;;  %v2757_v26 = vsub.f32 %v2629_v45, %v2725_v46  ;;  %v4088_v17 = vpop.eup %4087  ;;  %v7665_v53 = vadd.f32 %v7448_v2, %v3455_v43  ;;  %v7667_v38 = vadd.f32 1e-06, %v2498_v9  ;;  %v3831_v30 = vpop.permute.xlu0 %3830 }
 0x325   :  { %v3012_v42 = vmul.f32 %v2756_v25, %v2756_v25  ;;  %v2018_v4 = vsel %vm1908_vm2, %v7575_v55, 0.0  ;;  %v7672_v8 = vadd.f32 1e-06, %v2499_v11  ;;  %v2436_v29 = vmul.f32 %v2146_v63, %v2146_v63  ;;  %v7685_v43 = vpop.permute.xlu1 %3835  ;;  %v8731_v11 = vld [vmem:[#allocation21_spill] sm:$0xff] }
 0x326   :  { %v2116_v7 = vsel %vm1909_vm4, %v2077_v59, 0.0  ;;  %v3828_v54 = vunpack.i.h.bf16 %v7598_v1  ;;  %v7677_v37 = vadd.f32 1e-06, %v3075_v33  ;;  %v7681_v2 = vmul.f32 %v7658_v22, %v7667_v38 }
 0x327   :  { %v2437_v49 = vmul.f32 %v2147_v44, %v2147_v44  ;;  %v3827_v20 = vunpack.i.l.bf16 %v7598_v1  ;;  %v3013_v50 = vmul.f32 %v2757_v26, %v2757_v26  ;;  %v3833_v55 = vunpack.i.h.bf16 %v3831_v30 }
 0x328   :  { %v3832_v18 = vunpack.i.l.bf16 %v3831_v30  ;;  %v1879_v0 = vmul.f32 %v4088_v17, %v7228_v52  ;;  %vm3322_vm6 = vcmp.eq.f32.partialorder %v7607_v58, inf  ;;  %v3076_v9 = vadd.f32 %v7452_v48, %v3012_v42  ;;  %v2079_v42 = vpop.permute.xlu0 %2078 }
 0x329   :  { %v2148_v45 = vsub.f32 %v2018_v4, %v2116_v7  ;;  %v7689_v46 = vmul.f32 %v2986_v34, %v2986_v34  ;;  %v8732_v63 = vrot.slane %v8731_v11, 1  ;;  %v8733_v25 = vrot.slane %v8687_v14, 1  ;;  %v8735_v7 = vld [vmem:[#allocation12_spill] sm:$0xff] }
 0x32a   :  { %v7701_v52 = vmul.f32 %v7677_v37, %v7672_v8  ;;  %v2500_v33 = vadd.f32 %v7443_v39, %v2436_v29  ;;  %v2631_v48 = vsel %vm1908_vm2, %v3828_v54, 0.0  ;;  %v2727_v34 = vsel %vm1909_vm4, %v3833_v55, 0.0  ;;  %v4090_v44 = vpop.eup %4089  ;;  %v1985_v55 = vpop.permute.xlu1 %1984 }
 0x32b   :  { %v7697_v1 = vsel %vm2186_vm0, %v8733_v25, %v8732_v63  ;;  %v2501_v59 = vadd.f32 %v7456_v47, %v2437_v49  ;;  %v2630_v26 = vsel %vm1908_vm2, %v3827_v20, 0.0  ;;  %v2726_v17 = vsel %vm1909_vm4, %v3832_v18, 0.0 }
 0x32c   :  { %v8734_v4 = vrot.slane %v8687_v14, 7  ;;  %4093 = vrsqrt.f32 %v7681_v2  ;;  %v3077_v29 = vadd.f32 %v7454_v31, %v3013_v50  ;;  %v1886_v47 = vsel %vm1880_vm8, %v1879_v0, 0.0 }
 0x32d   :  { %v8736_v54 = vrot.slane %v8735_v7, 1  ;;  %vm3324_vm7 = vcmp.eq.f32.partialorder %v7607_v58, 0.0  ;;  %v7731_v32 = vadd.f32 1e-06, %v3076_v9  ;;  %v2438_v14 = vmul.f32 %v2148_v45, %v2148_v45  ;;  %v2081_v9 = vpop.permute.xlu0 %2080 }
 0x32e   :  { %v7719_v39 = vsel %vm2299_vm14, %v2297_v12, %v8734_v4  ;;  %v2759_v12 = vsub.f32 %v2631_v48, %v2727_v34  ;;  %v2019_v20 = vsel %vm1908_vm2, %v7622_v5, 0.0  ;;  %v3321_v31 = vmul.f32 %v4090_v44, %v7607_v58 }
 0x32f   :  { %v2827_v49 = vsel %vm2186_vm0, %v2795_v13, %v8736_v54  ;;  %4095 = vrsqrt.f32 %v7701_v52  ;;  %v7738_v30 = vadd.f32 1e-06, %v2500_v33  ;;  %v2758_v50 = vsub.f32 %v2630_v26, %v2726_v17  ;;  %v4092_v45 = vpop.eup %4091  ;;  %v1987_v54 = vpop.permute.xlu1 %1986 }
 0x330   :  { %vm3329_vm0 = vcmp.eq.f32.partialorder %v7624_v35, inf  ;;  %v7741_v13 = vadd.f32 1e-06, %v2501_v59  ;;  %v2117_v18 = vsel %vm1909_vm4, %v2079_v42, 0.0  ;;  %v1887_v0 = vadd.f32 %v1886_v47, %v7527_v23 }
 0x331   :  { %v3838_v5 = vunpack.i.h.bf16 %v7685_v43  ;;  %v7747_v11 = vadd.f32 1e-06, %v3077_v29  ;;  %v3014_v63 = vmul.f32 %v2758_v50, %v2758_v50  ;;  %v2149_v25 = vsub.f32 %v2019_v20, %v2117_v18  ;;  %v3841_v47 = vpop.permute.xlu0 %3840 }
 0x332   :  { %v2020_v33 = vsel %vm1908_vm2, %v7654_v51, 0.0  ;;  %v7754_v48 = vmul.f32 %v7731_v32, %v7738_v30  ;;  %v2502_v34 = vadd.f32 %v7460_v21, %v2438_v14  ;;  %v3015_v44 = vmul.f32 %v2759_v12, %v2759_v12  ;;  %1888 = vadd.xlane.f32.xlu0 %v1887_v0 }
 0x333   :  { %v2118_v23 = vsel %vm1909_vm4, %v2081_v9, 0.0  ;;  %vm3331_vm8 = vcmp.eq.f32.partialorder %v7624_v35, 0.0  ;;  %v3323_v59 = vsel %vm3322_vm6, %v7607_v58, %v3321_v31  ;;  %v3078_v26 = vadd.f32 %v7486_v19, %v3014_v63 }
 0x334   :  { %v3837_v51 = vunpack.i.l.bf16 %v7685_v43  ;;  %v8737_v17 = vrot.slane %v8660_v57, 7  ;;  %v3328_v42 = vmul.f32 %v4092_v45, %v7624_v35  ;;  %v7776_v4 = vmul.f32 %v7747_v11, %v7741_v13 }
 0x335   :  { %v2439_v29 = vmul.f32 %v2149_v25, %v2149_v25  ;;  %v2633_v19 = vsel %vm1908_vm2, %v3838_v5, 0.0  ;;  %v7780_v43 = vadd.f32 1e-06, %v3078_v26  ;;  %v2150_v57 = vsub.f32 %v2020_v33, %v2118_v23 }
 0x336   :  { %v7771_v21 = vsel %vm2299_vm14, %v2890_v41, %v8737_v17  ;;  %v3843_v7 = vunpack.i.h.bf16 %v3841_v47  ;;  %v3842_v56 = vunpack.i.l.bf16 %v3841_v47  ;;  %4097 = vrsqrt.f32 %v7754_v48 }
 0x337   :  { %v7783_v40 = vadd.f32 1e-06, %v2502_v34  ;;  %v3079_v41 = vadd.f32 %v7488_v28, %v3015_v44  ;;  %v2503_v14 = vadd.f32 %v7532_v15, %v2439_v29  ;;  %v3326_v12 = vsel %vm3324_vm7, %v3325_v10, %v3323_v59  ;;  %v2083_v10 = vpop.permute.xlu0 %2082  ;;  %v7828_v59 = vpop.permute.xlu1 %3845 }
 0x338   :  { %v2632_v20 = vsel %vm1908_vm2, %v3837_v51, 0.0  ;;  %v2729_v31 = vsel %vm1909_vm4, %v3843_v7, 0.0  ;;  %v2266_v18 = vsel %vm1917_vm1, %v7697_v1, 0.0  ;;  %v2728_v58 = vsel %vm1909_vm4, %v3842_v56, 0.0 }
 0x339   :  { %v7800_v28 = vmul.f32 %v7780_v43, %v7783_v40  ;;  %v7802_v15 = vadd.f32 1e-06, %v2503_v14  ;;  %v2761_v0 = vsub.f32 %v2633_v19, %v2729_v31  ;;  %v3330_v9 = vsel %vm3329_vm0, %v7624_v35, %v3328_v42  ;;  %v4094_v45 = vpop.eup %4093 }
 0x33a   :  { %4099 = vrsqrt.f32 %v7776_v4  ;;  %v2440_v5 = vmul.f32 %v2150_v57, %v2150_v57  ;;  %v7812_v1 = vsel %vm1917_vm1, %v2827_v49, 0.0  ;;  %v7816_v63 = vadd.f32 %v7658_v22, %v7667_v38 }
 0x33b   :  { %vm3336_vm14 = vcmp.eq.f32.partialorder %v7681_v2, inf  ;;  %v7819_v25 = vadd.f32 1e-06, %v3079_v41  ;;  %v7822_v33 = vsub.f32 %v2266_v18, %v7719_v39  ;;  %v3424_v34 = vmul.f32 2.0, %v3326_v12  ;;  %v1989_v31 = vpop.permute.xlu1 %1988 }
 0x33c   :  { %v2760_v44 = vsub.f32 %v2632_v20, %v2728_v58  ;;  %v2021_v23 = vsel %vm1908_vm2, %v1985_v55, 0.0  ;;  %v2119_v49 = vsel %vm1909_vm4, %v2083_v10, 0.0  ;;  %v4096_v26 = vpop.eup %4095  ;;  %v3333_v22 = vsel %vm3331_vm8, %v3332_v27, %v3330_v9  ;;  %v2085_v55 = vpop.permute.xlu0 %2084 }
 0x33d   :  { %vm3338_vm1 = vcmp.eq.f32.partialorder %v7681_v2, 0.0  ;;  %4101 = vrsqrt.f32 %v7800_v28  ;;  %v7838_v38 = vmul.f32 %v7819_v25, %v7802_v15  ;;  %v3017_v39 = vmul.f32 %v2761_v0, %v2761_v0 }
 0x33e   :  { %v3339_v51 = vand.u32 2147483648, %v7681_v2  ;;  %v2504_v17 = vadd.f32 %v7534_v24, %v2440_v5  ;;  %v3016_v42 = vmul.f32 %v2760_v44, %v2760_v44  ;;  %v2022_v29 = vsel %vm1908_vm2, %v1987_v54, 0.0 }
 0x33f   :  { %v3335_v35 = vmul.f32 %v4094_v45, %v7681_v2  ;;  %v7847_v27 = vadd.f32 %v7677_v37, %v7672_v8  ;;  %v2151_v19 = vsub.f32 %v2021_v23, %v2119_v49  ;;  %v2120_v47 = vsel %vm1909_vm4, %v2085_v55, 0.0 }
 0x340   :  { %v7851_v57 = vmul.f32 2.0, %v3333_v22  ;;  %v3456_v7 = vsub.f32 %v7613_v61, %v3424_v34  ;;  %v3342_v24 = vmul.f32 %v4096_v26, %v7701_v52  ;;  %v3080_v56 = vadd.f32 %v7560_v60, %v3016_v42  ;;  %v2697_v8 = vpop.permute.xlu0 %2696 }
 0x341   :  { %4103 = vrsqrt.f32 %v7838_v38  ;;  %v3081_v54 = vadd.f32 %v7566_v16, %v3017_v39  ;;  %v2441_v41 = vmul.f32 %v2151_v19, %v2151_v19  ;;  %v2152_v14 = vsub.f32 %v2022_v29, %v2120_v47 }
 0x342   :  { %v7858_v37 = vadd.f32 1e-06, %v2504_v17  ;;  %v7860_v12 = vadd.f32 1e-06, %v3080_v56  ;;  %v3847_v20 = vunpack.i.l.bf16 %v7828_v59  ;;  %v2730_v61 = vsel %vm1909_vm4, %v2697_v8, 0.0  ;;  %v2699_v17 = vpop.permute.xlu1 %2698 }
 0x343   :  { %v3337_v60 = vsel %vm3336_vm14, %v7681_v2, %v3335_v35  ;;  %vm3343_vm9 = vcmp.eq.f32.partialorder %v7701_v52, inf  ;;  %vm3345_vm10 = vcmp.eq.f32.partialorder %v7701_v52, 0.0  ;;  %v2505_v16 = vadd.f32 %v7596_v3, %v2441_v41  ;;  %v4098_v50 = vpop.eup %4097 }
 0x344   :  { %v3346_v18 = vand.u32 2147483648, %v7701_v52  ;;  %v7874_v0 = vmul.f32 %v7860_v12, %v7858_v37  ;;  %v2442_v58 = vmul.f32 %v2152_v14, %v2152_v14  ;;  %v2634_v10 = vsel %vm1908_vm2, %v3847_v20, 0.0  ;;  %v2087_v44 = vpop.permute.xlu0 %2086 }
 0x345   :  { %v3487_v9 = vadd.f32 %v7665_v53, %v3456_v7  ;;  %v7879_v5 = vadd.f32 1e-06, %v3081_v54  ;;  %v7881_v45 = vadd.f32 1e-06, %v2505_v16  ;;  %v2762_v34 = vsub.f32 %v2634_v10, %v2730_v61 }
 0x346   :  { %v3457_v3 = vsub.f32 %v7660_v36, %v7851_v57  ;;  %v3340_v23 = vsel %vm3338_vm1, %v3339_v51, %v3337_v60  ;;  %v3344_v49 = vsel %vm3343_vm9, %v7701_v52, %v3342_v24  ;;  %4105 = vrsqrt.f32 %v7874_v0 }
 0x347   :  { %v4100_v26 = vpop.eup %4099  ;;  %v3349_v22 = vmul.f32 %v4098_v50, %v7754_v48  ;;  %v7892_v53 = vmul.f32 %v7879_v5, %v7881_v45  ;;  %v3848_v39 = vunpack.i.h.bf16 %v7828_v59  ;;  %v2023_v55 = vsel %vm1908_vm2, %v1989_v31, 0.0 }
 0x348   :  { %vm3350_vm11 = vcmp.eq.f32.partialorder %v7754_v48, inf  ;;  %v2506_v36 = vadd.f32 %v7645_v62, %v2442_v58  ;;  %v3018_v2 = vmul.f32 %v2762_v34, %v2762_v34  ;;  %v2121_v51 = vsel %vm1909_vm4, %v2087_v44, 0.0 }
 0x349   :  { %v3426_v42 = vmul.f32 2.0, %v3340_v23  ;;  %v3353_v29 = vand.u32 2147483648, %v7754_v48  ;;  %4107 = vrsqrt.f32 %v7892_v53  ;;  %v2987_v59 = vsub.f32 %v7812_v1, %v7771_v21 }
 0x34a   :  { %v4102_v35 = vpop.eup %4101  ;;  %v3347_v19 = vsel %vm3345_vm10, %v3346_v18, %v3344_v49  ;;  %v3356_v47 = vmul.f32 %v4100_v26, %v7776_v4  ;;  %v3082_v62 = vadd.f32 %v7689_v46, %v3018_v2  ;;  %v2153_v57 = vsub.f32 %v2023_v55, %v2121_v51 }
 0x34b   :  { %v3351_v7 = vsel %vm3350_vm11, %v7754_v48, %v3349_v22  ;;  %v2475_v24 = vmul.f32 %v7822_v33, %v7822_v33  ;;  %v2635_v56 = vsel %vm1908_vm2, %v3848_v39, 0.0  ;;  %v2731_v21 = vsel %vm1909_vm4, %v2699_v17, 0.0 }
 0x34c   :  { %v7916_v1 = vadd.f32 1e-06, %v2506_v36  ;;  %v7918_v52 = vadd.f32 1e-06, %v3082_v62  ;;  %v2443_v54 = vmul.f32 %v2153_v57, %v2153_v57  ;;  %v2763_v41 = vsub.f32 %v2635_v56, %v2731_v21 }
 0x34d   :  { %vm3352_vm12 = vcmp.eq.f32.partialorder %v7754_v48, 0.0  ;;  %vm3357_vm13 = vcmp.eq.f32.partialorder %v7776_v4, inf  ;;  %v3363_v46 = vmul.f32 %v4102_v35, %v7800_v28  ;;  %v3051_v14 = vmul.f32 %v2987_v59, %v2987_v59 }
 0x34e   :  { %v4104_v33 = vpop.eup %4103  ;;  %v3458_v8 = vsub.f32 %v7816_v63, %v3426_v42  ;;  %v3427_v20 = vmul.f32 2.0, %v3347_v19  ;;  %v3354_v61 = vsel %vm3352_vm12, %v3353_v29, %v3351_v7  ;;  %v7926_v31 = vmul.f32 %v7918_v52, %v7916_v1 }
 0x34f   :  { %v3488_v60 = vadd.f32 %v3487_v9, %v3457_v3  ;;  %v3358_v16 = vsel %vm3357_vm13, %v7776_v4, %v3356_v47  ;;  %v2507_v50 = vadd.f32 %v2475_v24, %v2443_v54  ;;  %v3019_v18 = vmul.f32 %v2763_v41, %v2763_v41 }
 0x350   :  { %vm3359_vm2 = vcmp.eq.f32.partialorder %v7776_v4, 0.0  ;;  %v3360_v48 = vand.u32 2147483648, %v7776_v4  ;;  %vm3364_vm4 = vcmp.eq.f32.partialorder %v7800_v28, inf  ;;  %4109 = vrsqrt.f32 %v7926_v31 }
 0x351   :  { %v3428_v63 = vmul.f32 2.0, %v3354_v61  ;;  %v3365_v58 = vsel %vm3364_vm4, %v7800_v28, %v3363_v46  ;;  %v3370_v10 = vmul.f32 %v4104_v33, %v7838_v38  ;;  %v3083_v34 = vadd.f32 %v3051_v14, %v3019_v18 }
 0x352   :  { %v3459_v9 = vsub.f32 %v7847_v27, %v3427_v20  ;;  %v3489_v44 = vadd.f32 %v3488_v60, %v3458_v8  ;;  %v3361_v3 = vsel %vm3359_vm2, %v3360_v48, %v3358_v16  ;;  %v3367_v23 = vand.u32 2147483648, %v7800_v28 }
 0x353   :  { %v4106_v49 = vpop.eup %4105  ;;  %v3140_v4 = vadd.f32 %v7731_v32, %v7738_v30  ;;  %vm3366_vm3 = vcmp.eq.f32.partialorder %v7800_v28, 0.0  ;;  %v7940_v26 = vadd.f32 1e-06, %v2507_v50  ;;  %v3115_v22 = vadd.f32 1e-06, %v3083_v34 }
 0x354   :  { %v3141_v39 = vadd.f32 %v7747_v11, %v7741_v13  ;;  %v3368_v55 = vsel %vm3366_vm3, %v3367_v23, %v3365_v58  ;;  %vm3371_vm15 = vcmp.eq.f32.partialorder %v7838_v38, inf  ;;  %v3377_v27 = vmul.f32 %v4106_v49, %v7874_v0 }
 0x355   :  { %v3460_v36 = vsub.f32 %v3140_v4, %v3428_v63  ;;  %v3429_v2 = vmul.f32 2.0, %v3361_v3  ;;  %v3372_v51 = vsel %vm3371_vm15, %v7838_v38, %v3370_v10  ;;  %v3179_v17 = vmul.f32 %v3115_v22, %v7940_v26 }
 0x356   :  { %v4108_v32 = vpop.eup %4107  ;;  %v3490_v30 = vadd.f32 %v3489_v44, %v3459_v9  ;;  %vm3373_vm5 = vcmp.eq.f32.partialorder %v7838_v38, 0.0  ;;  %v3374_v28 = vand.u32 2147483648, %v7838_v38  ;;  %vm3378_vm6 = vcmp.eq.f32.partialorder %v7874_v0, inf }
 0x357   :  { %v3430_v13 = vmul.f32 2.0, %v3368_v55  ;;  %v3379_v11 = vsel %vm3378_vm6, %v7874_v0, %v3377_v27  ;;  %v3384_v42 = vmul.f32 %v4108_v32, %v7892_v53  ;;  %4111 = vrsqrt.f32 %v3179_v17 }
 0x358   :  { %v3375_v29 = vsel %vm3373_vm5, %v3374_v28, %v3372_v51  ;;  %v3381_v59 = vand.u32 2147483648, %v7874_v0  ;;  %v3461_v35 = vsub.f32 %v3141_v39, %v3429_v2  ;;  %v3491_v19 = vadd.f32 %v3490_v30, %v3460_v36 }
 0x359   :  { %v3142_v47 = vadd.f32 %v7780_v43, %v7783_v40  ;;  %vm3380_vm7 = vcmp.eq.f32.partialorder %v7874_v0, 0.0  ;;  %vm3385_vm0 = vcmp.eq.f32.partialorder %v7892_v53, inf  ;;  %v3431_v57 = vmul.f32 2.0, %v3375_v29 }
 0x35a   :  { %v3382_v62 = vsel %vm3380_vm7, %v3381_v59, %v3379_v11  ;;  %v3386_v7 = vsel %vm3385_vm0, %v7892_v53, %v3384_v42  ;;  %v3388_v24 = vand.u32 2147483648, %v7892_v53  ;;  %v3492_v21 = vadd.f32 %v3491_v19, %v3461_v35 }
 0x35b   :  { %v3462_v38 = vsub.f32 %v3142_v47, %v3430_v13  ;;  %v3143_v54 = vadd.f32 %v7819_v25, %v7802_v15  ;;  %v3432_v41 = vmul.f32 2.0, %v3382_v62  ;;  %vm3387_vm8 = vcmp.eq.f32.partialorder %v7892_v53, 0.0 }
 0x35c   :  { %v3144_v43 = vadd.f32 %v7860_v12, %v7858_v37  ;;  %v3389_v40 = vsel %vm3387_vm8, %v3388_v24, %v3386_v7  ;;  %vm3392_vm14 = vcmp.eq.f32.partialorder %v7926_v31, inf  ;;  %v3395_v33 = vand.u32 2147483648, %v7926_v31 }
 0x35d   :  { %v4110_v56 = vpop.eup %4109  ;;  %v3463_v46 = vsub.f32 %v3143_v54, %v3431_v57  ;;  %v3493_v14 = vadd.f32 %v3492_v21, %v3462_v38  ;;  %vm3394_vm1 = vcmp.eq.f32.partialorder %v7926_v31, 0.0  ;;  %v3433_v25 = vmul.f32 2.0, %v3389_v40 }
 0x35e   :  { %v3391_v0 = vmul.f32 %v4110_v56, %v7926_v31  ;;  %v3464_v15 = vsub.f32 %v3144_v43, %v3432_v41  ;;  %v3145_v37 = vadd.f32 %v7879_v5, %v7881_v45  ;;  %v3146_v16 = vadd.f32 %v7918_v52, %v7916_v1 }
 0x35f   :  { %v3494_v53 = vadd.f32 %v3493_v14, %v3463_v46  ;;  %vm3399_vm9 = vcmp.eq.f32.partialorder %v3179_v17, inf  ;;  %v3402_v48 = vand.u32 2147483648, %v3179_v17  ;;  %vm3401_vm10 = vcmp.eq.f32.partialorder %v3179_v17, 0.0 }
 0x360   :  { %v3393_v8 = vsel %vm3392_vm14, %v7926_v31, %v3391_v0  ;;  %v3465_v60 = vsub.f32 %v3145_v37, %v3433_v25  ;;  %v3147_v10 = vadd.f32 %v3115_v22, %v7940_v26  ;;  %vm3511_vm11 = vcmp.eq.s32.totalorder %v6115_v6, 1 }
 0x361   :  { %v3396_v20 = vsel %vm3394_vm1, %v3395_v33, %v3393_v8  ;;  %v3495_v18 = vadd.f32 %v3494_v53, %v3464_v15  ;;  %vm3508_vm12 = vcmp.eq.s32.totalorder %v6115_v6, 0  ;;  %v3509_v32 = vstv %s3680_s23 }
 0x362   :  { %v3434_v12 = vmul.f32 2.0, %v3396_v20  ;;  %vm3515_vm13 = vcmp.eq.s32.totalorder %v6115_v6, 2  ;;  %v3510_v28 = vsel %vm3508_vm12, %v3509_v32, 0.0 }
 0x363   :  { %v3496_v9 = vadd.f32 %v3495_v18, %v3465_v60 }
 0x364   :  { %v4112_v61 = vpop.eup %4111  ;;  %v3466_v31 = vsub.f32 %v3146_v16, %v3434_v12 }
 0x365   :  { %v3398_v50 = vmul.f32 %v4112_v61, %v3179_v17 }
 0x366   :  { %v3497_v5 = vadd.f32 %v3496_v9, %v3466_v31 }
 0x367   :  { %v3400_v63 = vsel %vm3399_vm9, %v3179_v17, %v3398_v50 }
 0x368   :  { %v3403_v58 = vsel %vm3401_vm10, %v3402_v48, %v3400_v63 }
 0x369   :  { %v3435_v34 = vmul.f32 2.0, %v3403_v58 }
 0x36b   :  { %v3467_v44 = vsub.f32 %v3147_v10, %v3435_v34 }
 0x36d   :  { %v3498_v45 = vadd.f32 %v3497_v5, %v3467_v44 }
 0x36f   :  { %3499 = vadd.xlane.f32.xlu1 %v3498_v45 }
 0x3bb   :  { %v1889_v3 = vpop.xlane.xlu0 %1888 }
 0x3bc   :  { %v1890_v23 = vrot.slane %v1889_v3, 4 }
 0x3be   :  { %v1891_v49 = vadd.f32 %v1890_v23, %v1889_v3 }
 0x3c0   :  { %v1892_v1 = vrot.slane %v1891_v49, 2 }
 0x3c2   :  { %v1893_v52 = vadd.f32 %v1892_v1, %v1891_v49 }
 0x3c4   :  { %v1894_v4 = vrot.slane %v1893_v52, 1 }
 0x3c6   :  { %v1895_v39 = vadd.f32 %v1894_v4, %v1893_v52 }
 0x3c8   :  { %3681 = vpush %v1895_v39 }
 0x3f8   :  { %v3500_v55 = vpop.xlane.xlu1 %3499 }
 0x3f9   :  { %v3501_v27 = vrot.slane %v3500_v55, 4  ;;  %s3682_s24 = spop %3681 }
 0x3fa   :  { %v3512_v17 = vstv %s3682_s24 }
 0x3fb   :  { %v3502_v36 = vadd.f32 %v3501_v27, %v3500_v55  ;;  %v3513_v30 = vsel %vm3511_vm11, %v3512_v17, 0.0 }
 0x3fc   :  { %v3514_v13 = vadd.f32 %v3513_v30, %v3510_v28 }
 0x3fd   :  { %v3503_v2 = vrot.slane %v3502_v36, 2 }
 0x3ff   :  { %v3504_v51 = vadd.f32 %v3503_v2, %v3502_v36 }
 0x401   :  { %v3505_v26 = vrot.slane %v3504_v51, 1 }
 0x403   :  { %v3506_v22 = vadd.f32 %v3505_v26, %v3504_v51 }
 0x405   :  { %3683 = vpush %v3506_v22 }
 0x436   :  { %s3684_s25 = spop %3683 }
 0x437   :  { %v3516_v11 = vstv %s3684_s25 }
 0x438   :  { %v3517_v42 = vsel %vm3515_vm13, %v3516_v11, 0.0 }
 0x439   :  { %v3518_v29 = vadd.f32 %v3517_v42, %v3514_v13 }
 0x43b   :  { %3519 = vst [vmem:[#allocation7] sm:$0xff] %v3518_v29 }
 0x43c   :  { %4164 = shalt.err (!%p4161_p0)
}
 0x43d   :  { %3529 = dma.vmem_to_hbm [thread:$0]  %s3527_s27, 128, %s7983_s2, [#allocation4]  }
 0x43e   :  { %4177 = dma.done.wait [#allocation4], 128  }
 0x43f   :  { %4178 = vsyncadd [#allocation4], 4294967168 }
 0x440   :  { %3533 = vsyncpa [#allocation3], 1 }
 0x441   :  { %3534 = vsyncpa [#allocation6], 1 }
 0x442   :  { %3535 = vsyncpa [#allocation4], 1 }

</bundles_post_ra>
